<compile_context>
chip_gen: v7x
topology: tpu7x:2x2x1
jax: 0.10.0
libtpu: 0.0.40
codegen_flags: <defaults>
</compile_context>

<pallas_src>
import jax
import jax.numpy as jnp
from jax.experimental import pallas as pl
from jax.experimental.pallas import tpu as pltpu

EPS = 1e-5
BF16 = jnp.bfloat16
_TM_MAX = 512            # row-tile size (sweep 256/512/1024 per generation if desired)
_VMEM_LIMIT = 48 * 1024 * 1024


def _round_up(x, m):
    return (x + m - 1) // m * m


def _pick_tm(m):
    return min(_TM_MAX, _round_up(max(m, 1), 8))


def _cparams():
    return pltpu.CompilerParams(
        dimension_semantics=("parallel",),
        vmem_limit_bytes=_VMEM_LIMIT,
    )


# ---------------------------------------------------------------------------
# Pallas kernels
# ---------------------------------------------------------------------------
def _mm_stats_kernel(x_ref, w_ref, y_ref, s_ref, ss_ref):
    # x: (TM, Kd) bf16, w: (Kd, Cp) bf16 -> y: (TM, Cp) bf16 plus per-tile column stats (f32)
    y = jnp.dot(x_ref[...], w_ref[...], preferred_element_type=jnp.float32)
    y_ref[...] = y.astype(y_ref.dtype)
    s_ref[...] = jnp.sum(y, axis=0, keepdims=True).reshape(s_ref.shape)
    ss_ref[...] = jnp.sum(y * y, axis=0, keepdims=True).reshape(ss_ref.shape)


def _affine_relu_kernel(y_ref, scale_ref, shift_ref, o_ref):
    # fused BN-apply + ReLU (scale/shift precomputed from global batch stats)
    y = y_ref[...].astype(jnp.float32)
    o_ref[...] = jnp.maximum(y * scale_ref[...] + shift_ref[...], 0.0).astype(o_ref.dtype)


def _mm_bias_tanh_kernel(x_ref, w_ref, b_ref, o_ref):
    y = jnp.dot(x_ref[...], w_ref[...], preferred_element_type=jnp.float32)
    o_ref[...] = jnp.tanh(y + b_ref[...]).astype(o_ref.dtype)


# ---------------------------------------------------------------------------
# Pallas wrappers (tiled over M, weights resident in VMEM across tiles)
# ---------------------------------------------------------------------------
def _matmul_stats(x, w):
    M, Kd = x.shape
    Cp = w.shape[1]
    tm = _pick_tm(M)
    mp = _round_up(M, tm)
    if mp != M:
        x = jnp.pad(x, ((0, mp - M), (0, 0)))        # zero rows: no effect on sums
    nt = mp // tm
    y, s, ss = pl.pallas_call(
        _mm_stats_kernel,
        out_shape=(jax.ShapeDtypeStruct((mp, Cp), BF16),
                   jax.ShapeDtypeStruct((nt, 1, Cp), jnp.float32),
                   jax.ShapeDtypeStruct((nt, 1, Cp), jnp.float32)),
        grid=(nt,),
        in_specs=[pl.BlockSpec((tm, Kd), lambda i: (i, 0)),
                  pl.BlockSpec((Kd, Cp), lambda i: (0, 0))],
        out_specs=(pl.BlockSpec((tm, Cp), lambda i: (i, 0)),
                   pl.BlockSpec((1, 1, Cp), lambda i: (i, 0, 0)),
                   pl.BlockSpec((1, 1, Cp), lambda i: (i, 0, 0))),
        compiler_params=_cparams(),
    )(x, w)
    return y, s, ss, tm


def _affine_relu(y, scale, shift, tm):
    mp, cp = y.shape
    nt = mp // tm
    return pl.pallas_call(
        _affine_relu_kernel,
        out_shape=jax.ShapeDtypeStruct((mp, cp), BF16),
        grid=(nt,),
        in_specs=[pl.BlockSpec((tm, cp), lambda i: (i, 0)),
                  pl.BlockSpec((1, cp), lambda i: (0, 0)),
                  pl.BlockSpec((1, cp), lambda i: (0, 0))],
        out_specs=pl.BlockSpec((tm, cp), lambda i: (i, 0)),
        compiler_params=_cparams(),
    )(y, scale, shift)


def _matmul_bias_tanh(x, w, bias, n_phase):
    M, Kd = x.shape
    Cp = w.shape[1]
    c_real = n_phase * bias.shape[0]
    b_big = jnp.pad(jnp.tile(bias.astype(jnp.float32), n_phase),
                    (0, Cp - c_real)).reshape(1, Cp)
    tm = _pick_tm(M)
    mp = _round_up(M, tm)
    if mp != M:
        x = jnp.pad(x, ((0, mp - M), (0, 0)))
    nt = mp // tm
    return pl.pallas_call(
        _mm_bias_tanh_kernel,
        out_shape=jax.ShapeDtypeStruct((mp, Cp), jnp.float32),
        grid=(nt,),
        in_specs=[pl.BlockSpec((tm, Kd), lambda i: (i, 0)),
                  pl.BlockSpec((Kd, Cp), lambda i: (0, 0)),
                  pl.BlockSpec((1, Cp), lambda i: (0, 0))],
        out_specs=pl.BlockSpec((tm, Cp), lambda i: (i, 0)),
        compiler_params=_cparams(),
    )(x, w, b_big)


def _bn_scale_shift(s_part, ss_part, gamma, beta, rows, n_phase, cp):
    """Reduce per-tile stats, merge the sub-pixel phases per channel (BatchNorm2d semantics),
    and return per-column scale/shift vectors (padded columns get 0/0)."""
    cout = gamma.shape[0]
    c_real = n_phase * cout
    s = jnp.sum(s_part[:, 0, :c_real], axis=0).reshape(n_phase, cout).sum(axis=0)
    ss = jnp.sum(ss_part[:, 0, :c_real], axis=0).reshape(n_phase, cout).sum(axis=0)
    count = float(rows * n_phase)
    mean = s / count
    var = jnp.maximum(ss / count - mean * mean, 0.0)      # biased (train-mode BN)
    scale = gamma * jax.lax.rsqrt(var + EPS)
    shift = beta - mean * scale
    scale_big = jnp.pad(jnp.tile(scale, n_phase), (0, cp - c_real)).reshape(1, cp)
    shift_big = jnp.pad(jnp.tile(shift, n_phase), (0, cp - c_real)).reshape(1, cp)
    return scale_big, shift_big


# ---------------------------------------------------------------------------
# Sub-pixel decomposition of ConvTranspose2d(5, stride=2, pad=2, output_pad=1)
# ---------------------------------------------------------------------------
def _im2col3x3(x):
    # x: (N, H, W, C) NHWC -> (N*H*W, 9*C), 3x3 neighborhood of the zero-padded input,
    # columns ordered (dh, dw) major / channel minor.
    # TODO(synk): the 9-tap gather still materializes in XLA; a halo-DMA in-kernel gather
    # (manual make_async_copy of overlapping row blocks) would remove this HBM expansion.
    N, H, W, C = x.shape
    xp = jnp.pad(x, ((0, 0), (1, 1), (1, 1), (0, 0)))
    cols = [xp[:, dh:dh + H, dw:dw + W, :] for dh in range(3) for dw in range(3)]
    p = jnp.stack(cols, axis=3)                     # (N, H, W, 9, C)
    return p.reshape(N * H * W, 9 * C)


def dconv_weight_to_mat(w, cp=None):
    """w: (Cin, Cout, 5, 5) (PyTorch ConvTranspose2d layout) -> (9*Cin, Cp) combined matrix.
    Column = phase*Cout + co with phases [ee, eo, oe, oo] = (oh%2, ow%2)."""
    Cin, Cout = int(w.shape[0]), int(w.shape[1])
    wb = jnp.zeros((3, 3, Cin, 4, Cout), jnp.float32)
    for dh in range(3):
        for dw in range(3):
            wb = wb.at[dh, dw, :, 0, :].set(w[:, :, 4 - 2 * dh, 4 - 2 * dw])       # ee
            if dw >= 1:
                wb = wb.at[dh, dw, :, 1, :].set(w[:, :, 4 - 2 * dh, 5 - 2 * dw])   # eo
            if dh >= 1:
                wb = wb.at[dh, dw, :, 2, :].set(w[:, :, 5 - 2 * dh, 4 - 2 * dw])   # oe
            if dh >= 1 and dw >= 1:
                wb = wb.at[dh, dw, :, 3, :].set(w[:, :, 5 - 2 * dh, 5 - 2 * dw])   # oo
    wm = wb.reshape(9 * Cin, 4 * Cout)
    if cp is None:
        cp = _round_up(4 * Cout, 128)               # lane-dense output columns
    if cp > 4 * Cout:
        wm = jnp.pad(wm, ((0, 0), (0, cp - 4 * Cout)))
    return wm


def _interleave_phases(y, N, H, W, cout):
    # y: (N*H*W, 4*cout) -> (N, 2H, 2W, cout), phases (a, b) = (oh%2, ow%2)
    return (y.reshape(N, H, W, 2, 2, cout)
             .transpose(0, 1, 3, 2, 4, 5)
             .reshape(N, 2 * H, 2 * W, cout))


# ---------------------------------------------------------------------------
# Pure-JAX decomposition check (phase path vs. validated dilate+pad+flip path)
# ---------------------------------------------------------------------------
def _ref_dconv(x, w):
    N, Cin, H, W = x.shape
    OH, OW = 2 * H, 2 * W
    xd = jnp.zeros((N, Cin, (H - 1) * 2 + 1, (W - 1) * 2 + 1), x.dtype)
    xd = xd.at[:, :, ::2, ::2].set(x)
    xp = jnp.pad(xd, ((0, 0), (0, 0), (2, 3), (2, 3)))
    cols = [xp[:, :, ki:ki + OH, kj:kj + OW] for ki in range(5) for kj in range(5)]
    p = jnp.stack(cols, axis=2).transpose(0, 3, 4, 1, 2).reshape(N * OH * OW, Cin * 25)
    wf = w[:, :, ::-1, ::-1].transpose(0, 2, 3, 1).reshape(Cin * 25, w.shape[1])
    y = jnp.dot(p, wf, precision=jax.lax.Precision.HIGHEST)
    return y.reshape(N, OH, OW, w.shape[1])


def _phase_dconv(x, w):
    xh = x.transpose(0, 2, 3, 1)
    N, H, W, _ = xh.shape
    cout = w.shape[1]
    patches = _im2col3x3(xh)
    wm = dconv_weight_to_mat(w)
    y = jnp.dot(patches, wm, precision=jax.lax.Precision.HIGHEST)[:, :4 * cout]
    return _interleave_phases(y, N, H, W, cout)


# ---------------------------------------------------------------------------
# Generator parameters + forward
# ---------------------------------------------------------------------------
def init_generator_params(key, in_dim, dim):
    ks = jax.random.split(key, 16)
    p = {}
    f1 = dim * 8 * 4 * 4
    f1p = _round_up(f1, 128)
    w = 0.02 * jax.random.normal(ks[0], (in_dim, f1), jnp.float32)
    p["l1_w"] = jnp.pad(w, ((0, 0), (0, f1p - f1))).astype(BF16)
    p["l1_gamma"] = 1.0 + 0.02 * jax.random.normal(ks[1], (f1,), jnp.float32)
    p["l1_beta"] = jnp.zeros((f1,), jnp.float32)
    chans = [dim * 8, dim * 4, dim * 2, dim]
    for i in range(3):
        cin, cout = chans[i], chans[i + 1]
        w = 0.02 * jax.random.normal(ks[2 + 3 * i], (cin, cout, 5, 5), jnp.float32)
        p[f"d{i}_wmat"] = dconv_weight_to_mat(w).astype(BF16)     # precomputed once
        p[f"d{i}_gamma"] = 1.0 + 0.02 * jax.random.normal(ks[3 + 3 * i], (cout,), jnp.float32)
        p[f"d{i}_beta"] = jnp.zeros((cout,), jnp.float32)
    w = 0.02 * jax.random.normal(ks[11], (dim, 3, 5, 5), jnp.float32)
    p["d3_wmat"] = dconv_weight_to_mat(w).astype(BF16)            # (9*dim, 128)
    p["d3_b"] = 0.02 * jax.random.normal(ks[12], (3,), jnp.float32)
    return p


def generator_forward(params, z, dim):
    N = z.shape[0]
    f1 = dim * 8 * 16
    # l1: Linear(bias=False) + BatchNorm1d + ReLU  (two fused Pallas passes)
    y, s, ss, tm = _matmul_stats(z.astype(BF16), params["l1_w"])
    scale, shift = _bn_scale_shift(s, ss, params["l1_gamma"], params["l1_beta"],
                                   rows=N, n_phase=1, cp=params["l1_w"].shape[1])
    act = _affine_relu(y, scale, shift, tm)
    act = act[:N, :f1].reshape(N, dim * 8, 4, 4).transpose(0, 2, 3, 1)   # NHWC (N,4,4,8*dim)
    # l2..l4: ConvTranspose2d + BN2d + ReLU (phase-combined matmul + two-pass BN)
    for i in range(3):
        Nb, H, W, _ = act.shape
        cout = params[f"d{i}_gamma"].shape[0]
        patches = _im2col3x3(act)
        y, s, ss, tm = _matmul_stats(patches, params[f"d{i}_wmat"])
        scale, shift = _bn_scale_shift(s, ss, params[f"d{i}_gamma"], params[f"d{i}_beta"],
                                       rows=Nb * H * W, n_phase=4,
                                       cp=params[f"d{i}_wmat"].shape[1])
        a = _affine_relu(y, scale, shift, tm)[:Nb * H * W, :4 * cout]
        act = _interleave_phases(a, Nb, H, W, cout)
    # l5: ConvTranspose2d(dim, 3) + bias + Tanh (single fused pass, lane-padded to 128)
    Nb, H, W, _ = act.shape
    out = _matmul_bias_tanh(_im2col3x3(act), params["d3_wmat"], params["d3_b"], n_phase=4)
    out = _interleave_phases(out[:Nb * H * W, :12], Nb, H, W, 3)
    return out.transpose(0, 3, 1, 2)                                     # NCHW (N,3,64,64)


if __name__ == "__main__":
    IN_DIM = 16
    DIM = 8          # small dim; spatial path is fixed 4->8->16->32->64 as in the module
    N = 2

    key = jax.random.PRNGKey(0)
    k_param, k_x, k_cw, k_cx = jax.random.split(key, 4)

    # sanity-check the sub-pixel phase decomposition against the dilated reference (pure JAX f32)
    xt = jax.random.normal(k_cx, (1, 4, 6, 6), jnp.float32)
    wt = 0.02 * jax.random.normal(k_cw, (4, 5, 5, 5), jnp.float32)
    err = float(jnp.max(jnp.abs(_phase_dconv(xt, wt) - _ref_dconv(xt, wt))))
    assert err < 1e-4, f"phase decomposition mismatch: {err}"

    params = init_generator_params(k_param, IN_DIM, DIM)
    x = jax.random.normal(k_x, (N, IN_DIM), jnp.float32)

    fwd = jax.jit(lambda p, z: generator_forward(p, z, DIM))
    out = jax.block_until_ready(fwd(params, x))

    assert out.shape == (N, 3, 64, 64), out.shape
    assert bool(jnp.all(jnp.isfinite(out)))
    assert bool(jnp.all(jnp.abs(out) <= 1.0 + 1e-6))   # tanh range
    print("KERNEL_OK")
</pallas_src>

<mosaic_0001>
module attributes {stable_mosaic.version = 11 : i64} {
  func.func @_mm_stats_kernel(%arg0: i32, %arg1: memref<8x16xbf16, #tpu.memory_space<vmem>>, %arg2: memref<16x1024xbf16, #tpu.memory_space<vmem>>, %arg3: memref<8x1024xbf16, #tpu.memory_space<vmem>>, %arg4: memref<1x1x1024xf32, #tpu.memory_space<vmem>>, %arg5: memref<1x1x1024xf32, #tpu.memory_space<vmem>>) attributes {dimension_semantics = [#tpu.dimension_semantics<parallel>], iteration_bounds = array<i64: 1>, scalar_prefetch = 0 : i64, scratch_operands = 0 : i64, tpu.core_type = #tpu.core_type<tc>, window_params = [{transform_indices = @transform_0, window_bounds = array<i64: 8, 16>}, {pipeline_mode = #tpu.pipeline_mode<synchronous>, transform_indices = @transform_1, window_bounds = array<i64: 16, 1024>}, {transform_indices = @transform_2, window_bounds = array<i64: 8, 1024>}, {transform_indices = @transform_3, window_bounds = array<i64: 1, 1, 1024>}, {transform_indices = @transform_4, window_bounds = array<i64: 1, 1, 1024>}]} {
    %c0 = arith.constant 0 : index
    %c0_0 = arith.constant 0 : index
    %0 = vector.load %arg1[%c0, %c0_0] : memref<8x16xbf16, #tpu.memory_space<vmem>>, vector<8x16xbf16>
    %c0_1 = arith.constant 0 : index
    %c0_2 = arith.constant 0 : index
    %1 = vector.load %arg2[%c0_1, %c0_2] : memref<16x1024xbf16, #tpu.memory_space<vmem>>, vector<16x1024xbf16>
    %cst = arith.constant dense<0.000000e+00> : vector<8x1024xf32>
    %2 = tpu.matmul %0, %1, %cst {dimension_numbers = #tpu.dot_dimension_numbers<[1], [0], [0], [1], [0, 0, 1, 1], [], []>} : vector<8x16xbf16>, vector<16x1024xbf16>, vector<8x1024xf32> -> vector<8x1024xf32>
    %3 = arith.truncf %2 : vector<8x1024xf32> to vector<8x1024xbf16>
    %c0_3 = arith.constant 0 : index
    %c0_4 = arith.constant 0 : index
    %4 = vector.load %arg3[%c0_3, %c0_4] : memref<8x1024xbf16, #tpu.memory_space<vmem>>, vector<8x1024xbf16>
    tpu.vector_store %arg3[%c0_3, %c0_4], %3 {strides = array<i32>} : memref<8x1024xbf16, #tpu.memory_space<vmem>>, vector<8x1024xbf16>,
    %cst_5 = arith.constant dense<0.000000e+00> : vector<1024xf32>
    %5 = vector.multi_reduction <add>, %2, %cst_5 [0] : vector<8x1024xf32> to vector<1024xf32>
    %6 = vector.shape_cast %5 : vector<1024xf32> to vector<1x1024xf32>
    %7 = vector.shape_cast %6 : vector<1x1024xf32> to vector<1x1x1024xf32>
    %c0_6 = arith.constant 0 : index
    %c0_7 = arith.constant 0 : index
    %c0_8 = arith.constant 0 : index
    %8 = vector.load %arg4[%c0_6, %c0_7, %c0_8] : memref<1x1x1024xf32, #tpu.memory_space<vmem>>, vector<1x1x1024xf32>
    tpu.vector_store %arg4[%c0_6, %c0_7, %c0_8], %7 {strides = array<i32>} : memref<1x1x1024xf32, #tpu.memory_space<vmem>>, vector<1x1x1024xf32>,
    %9 = arith.mulf %2, %2 : vector<8x1024xf32>
    %cst_9 = arith.constant dense<0.000000e+00> : vector<1024xf32>
    %10 = vector.multi_reduction <add>, %9, %cst_9 [0] : vector<8x1024xf32> to vector<1024xf32>
    %11 = vector.shape_cast %10 : vector<1024xf32> to vector<1x1024xf32>
    %12 = vector.shape_cast %11 : vector<1x1024xf32> to vector<1x1x1024xf32>
    %c0_10 = arith.constant 0 : index
    %c0_11 = arith.constant 0 : index
    %c0_12 = arith.constant 0 : index
    %13 = vector.load %arg5[%c0_10, %c0_11, %c0_12] : memref<1x1x1024xf32, #tpu.memory_space<vmem>>, vector<1x1x1024xf32>
    tpu.vector_store %arg5[%c0_10, %c0_11, %c0_12], %12 {strides = array<i32>} : memref<1x1x1024xf32, #tpu.memory_space<vmem>>, vector<1x1x1024xf32>,
    return
  }
  func.func @transform_0(%arg0: i32) -> (i32, i32) {
    %c0_i32 = arith.constant 0 : i32
    %c0_i32_0 = arith.constant 0 : i32
    return %arg0, %c0_i32 : i32, i32
  }
  func.func @transform_1(%arg0: i32) -> (i32, i32) {
    %c0_i32 = arith.constant 0 : i32
    %c0_i32_0 = arith.constant 0 : i32
    %c0_i32_1 = arith.constant 0 : i32
    return %c0_i32, %c0_i32_0 : i32, i32
  }
  func.func @transform_2(%arg0: i32) -> (i32, i32) {
    %c0_i32 = arith.constant 0 : i32
    %c0_i32_0 = arith.constant 0 : i32
    return %arg0, %c0_i32 : i32, i32
  }
  func.func @transform_3(%arg0: i32) -> (i32, i32, i32) {
    %c0_i32 = arith.constant 0 : i32
    %c0_i32_0 = arith.constant 0 : i32
    %c0_i32_1 = arith.constant 0 : i32
    return %arg0, %c0_i32, %c0_i32_0 : i32, i32, i32
  }
  func.func @transform_4(%arg0: i32) -> (i32, i32, i32) {
    %c0_i32 = arith.constant 0 : i32
    %c0_i32_0 = arith.constant 0 : i32
    %c0_i32_1 = arith.constant 0 : i32
    return %arg0, %c0_i32, %c0_i32_0 : i32, i32, i32
  }
}

module attributes {stable_mosaic.version = 11 : i64} {
  func.func @_affine_relu_kernel(%arg0: i32, %arg1: memref<8x1024xbf16, #tpu.memory_space<vmem>>, %arg2: memref<1x1024xf32, #tpu.memory_space<vmem>>, %arg3: memref<1x1024xf32, #tpu.memory_space<vmem>>, %arg4: memref<8x1024xbf16, #tpu.memory_space<vmem>>) attributes {dimension_semantics = [#tpu.dimension_semantics<parallel>], iteration_bounds = array<i64: 1>, scalar_prefetch = 0 : i64, scratch_operands = 0 : i64, tpu.core_type = #tpu.core_type<tc>, window_params = [{transform_indices = @transform_0, window_bounds = array<i64: 8, 1024>}, {pipeline_mode = #tpu.pipeline_mode<synchronous>, transform_indices = @transform_1, window_bounds = array<i64: 1, 1024>}, {pipeline_mode = #tpu.pipeline_mode<synchronous>, transform_indices = @transform_2, window_bounds = array<i64: 1, 1024>}, {transform_indices = @transform_3, window_bounds = array<i64: 8, 1024>}]} {
    %c0 = arith.constant 0 : index
    %c0_0 = arith.constant 0 : index
    %0 = vector.load %arg1[%c0, %c0_0] : memref<8x1024xbf16, #tpu.memory_space<vmem>>, vector<8x1024xbf16>
    %1 = arith.extf %0 : vector<8x1024xbf16> to vector<8x1024xf32>
    %c0_1 = arith.constant 0 : index
    %c0_2 = arith.constant 0 : index
    %2 = vector.load %arg2[%c0_1, %c0_2] : memref<1x1024xf32, #tpu.memory_space<vmem>>, vector<1x1024xf32>
    %3 = vector.broadcast %2 : vector<1x1024xf32> to vector<8x1024xf32>
    %4 = arith.mulf %1, %3 : vector<8x1024xf32>
    %c0_3 = arith.constant 0 : index
    %c0_4 = arith.constant 0 : index
    %5 = vector.load %arg3[%c0_3, %c0_4] : memref<1x1024xf32, #tpu.memory_space<vmem>>, vector<1x1024xf32>
    %6 = vector.broadcast %5 : vector<1x1024xf32> to vector<8x1024xf32>
    %7 = arith.addf %4, %6 : vector<8x1024xf32>
    %cst = arith.constant 0.000000e+00 : f32
    %8 = vector.broadcast %cst : f32 to vector<8x1024xf32>
    %9 = arith.maximumf %7, %8 : vector<8x1024xf32>
    %10 = arith.truncf %9 : vector<8x1024xf32> to vector<8x1024xbf16>
    %c0_5 = arith.constant 0 : index
    %c0_6 = arith.constant 0 : index
    %11 = vector.load %arg4[%c0_5, %c0_6] : memref<8x1024xbf16, #tpu.memory_space<vmem>>, vector<8x1024xbf16>
    tpu.vector_store %arg4[%c0_5, %c0_6], %10 {strides = array<i32>} : memref<8x1024xbf16, #tpu.memory_space<vmem>>, vector<8x1024xbf16>,
    return
  }
  func.func @transform_0(%arg0: i32) -> (i32, i32) {
    %c0_i32 = arith.constant 0 : i32
    %c0_i32_0 = arith.constant 0 : i32
    return %arg0, %c0_i32 : i32, i32
  }
  func.func @transform_1(%arg0: i32) -> (i32, i32) {
    %c0_i32 = arith.constant 0 : i32
    %c0_i32_0 = arith.constant 0 : i32
    %c0_i32_1 = arith.constant 0 : i32
    return %c0_i32, %c0_i32_0 : i32, i32
  }
  func.func @transform_2(%arg0: i32) -> (i32, i32) {
    %c0_i32 = arith.constant 0 : i32
    %c0_i32_0 = arith.constant 0 : i32
    %c0_i32_1 = arith.constant 0 : i32
    return %c0_i32, %c0_i32_0 : i32, i32
  }
  func.func @transform_3(%arg0: i32) -> (i32, i32) {
    %c0_i32 = arith.constant 0 : i32
    %c0_i32_0 = arith.constant 0 : i32
    return %arg0, %c0_i32 : i32, i32
  }
}

module attributes {stable_mosaic.version = 11 : i64} {
  func.func @_mm_stats_kernel(%arg0: i32, %arg1: memref<32x576xbf16, #tpu.memory_space<vmem>>, %arg2: memref<576x128xbf16, #tpu.memory_space<vmem>>, %arg3: memref<32x128xbf16, #tpu.memory_space<vmem>>, %arg4: memref<1x1x128xf32, #tpu.memory_space<vmem>>, %arg5: memref<1x1x128xf32, #tpu.memory_space<vmem>>) attributes {dimension_semantics = [#tpu.dimension_semantics<parallel>], iteration_bounds = array<i64: 1>, scalar_prefetch = 0 : i64, scratch_operands = 0 : i64, tpu.core_type = #tpu.core_type<tc>, window_params = [{transform_indices = @transform_0, window_bounds = array<i64: 32, 576>}, {pipeline_mode = #tpu.pipeline_mode<synchronous>, transform_indices = @transform_1, window_bounds = array<i64: 576, 128>}, {transform_indices = @transform_2, window_bounds = array<i64: 32, 128>}, {transform_indices = @transform_3, window_bounds = array<i64: 1, 1, 128>}, {transform_indices = @transform_4, window_bounds = array<i64: 1, 1, 128>}]} {
    %c0 = arith.constant 0 : index
    %c0_0 = arith.constant 0 : index
    %0 = vector.load %arg1[%c0, %c0_0] : memref<32x576xbf16, #tpu.memory_space<vmem>>, vector<32x576xbf16>
    %c0_1 = arith.constant 0 : index
    %c0_2 = arith.constant 0 : index
    %1 = vector.load %arg2[%c0_1, %c0_2] : memref<576x128xbf16, #tpu.memory_space<vmem>>, vector<576x128xbf16>
    %cst = arith.constant dense<0.000000e+00> : vector<32x128xf32>
    %2 = tpu.matmul %0, %1, %cst {dimension_numbers = #tpu.dot_dimension_numbers<[1], [0], [0], [1], [0, 0, 1, 1], [], []>} : vector<32x576xbf16>, vector<576x128xbf16>, vector<32x128xf32> -> vector<32x128xf32>
    %3 = arith.truncf %2 : vector<32x128xf32> to vector<32x128xbf16>
    %c0_3 = arith.constant 0 : index
    %c0_4 = arith.constant 0 : index
    %4 = vector.load %arg3[%c0_3, %c0_4] : memref<32x128xbf16, #tpu.memory_space<vmem>>, vector<32x128xbf16>
    tpu.vector_store %arg3[%c0_3, %c0_4], %3 {strides = array<i32>} : memref<32x128xbf16, #tpu.memory_space<vmem>>, vector<32x128xbf16>,
    %cst_5 = arith.constant dense<0.000000e+00> : vector<128xf32>
    %5 = vector.multi_reduction <add>, %2, %cst_5 [0] : vector<32x128xf32> to vector<128xf32>
    %6 = vector.shape_cast %5 : vector<128xf32> to vector<1x128xf32>
    %7 = vector.shape_cast %6 : vector<1x128xf32> to vector<1x1x128xf32>
    %c0_6 = arith.constant 0 : index
    %c0_7 = arith.constant 0 : index
    %c0_8 = arith.constant 0 : index
    %8 = vector.load %arg4[%c0_6, %c0_7, %c0_8] : memref<1x1x128xf32, #tpu.memory_space<vmem>>, vector<1x1x128xf32>
    tpu.vector_store %arg4[%c0_6, %c0_7, %c0_8], %7 {strides = array<i32>} : memref<1x1x128xf32, #tpu.memory_space<vmem>>, vector<1x1x128xf32>,
    %9 = arith.mulf %2, %2 : vector<32x128xf32>
    %cst_9 = arith.constant dense<0.000000e+00> : vector<128xf32>
    %10 = vector.multi_reduction <add>, %9, %cst_9 [0] : vector<32x128xf32> to vector<128xf32>
    %11 = vector.shape_cast %10 : vector<128xf32> to vector<1x128xf32>
    %12 = vector.shape_cast %11 : vector<1x128xf32> to vector<1x1x128xf32>
    %c0_10 = arith.constant 0 : index
    %c0_11 = arith.constant 0 : index
    %c0_12 = arith.constant 0 : index
    %13 = vector.load %arg5[%c0_10, %c0_11, %c0_12] : memref<1x1x128xf32, #tpu.memory_space<vmem>>, vector<1x1x128xf32>
    tpu.vector_store %arg5[%c0_10, %c0_11, %c0_12], %12 {strides = array<i32>} : memref<1x1x128xf32, #tpu.memory_space<vmem>>, vector<1x1x128xf32>,
    return
  }
  func.func @transform_0(%arg0: i32) -> (i32, i32) {
    %c0_i32 = arith.constant 0 : i32
    %c0_i32_0 = arith.constant 0 : i32
    return %arg0, %c0_i32 : i32, i32
  }
  func.func @transform_1(%arg0: i32) -> (i32, i32) {
    %c0_i32 = arith.constant 0 : i32
    %c0_i32_0 = arith.constant 0 : i32
    %c0_i32_1 = arith.constant 0 : i32
    return %c0_i32, %c0_i32_0 : i32, i32
  }
  func.func @transform_2(%arg0: i32) -> (i32, i32) {
    %c0_i32 = arith.constant 0 : i32
    %c0_i32_0 = arith.constant 0 : i32
    return %arg0, %c0_i32 : i32, i32
  }
  func.func @transform_3(%arg0: i32) -> (i32, i32, i32) {
    %c0_i32 = arith.constant 0 : i32
    %c0_i32_0 = arith.constant 0 : i32
    %c0_i32_1 = arith.constant 0 : i32
    return %arg0, %c0_i32, %c0_i32_0 : i32, i32, i32
  }
  func.func @transform_4(%arg0: i32) -> (i32, i32, i32) {
    %c0_i32 = arith.constant 0 : i32
    %c0_i32_0 = arith.constant 0 : i32
    %c0_i32_1 = arith.constant 0 : i32
    return %arg0, %c0_i32, %c0_i32_0 : i32, i32, i32
  }
}

module attributes {stable_mosaic.version = 11 : i64} {
  func.func @_affine_relu_kernel(%arg0: i32, %arg1: memref<32x128xbf16, #tpu.memory_space<vmem>>, %arg2: memref<1x128xf32, #tpu.memory_space<vmem>>, %arg3: memref<1x128xf32, #tpu.memory_space<vmem>>, %arg4: memref<32x128xbf16, #tpu.memory_space<vmem>>) attributes {dimension_semantics = [#tpu.dimension_semantics<parallel>], iteration_bounds = array<i64: 1>, scalar_prefetch = 0 : i64, scratch_operands = 0 : i64, tpu.core_type = #tpu.core_type<tc>, window_params = [{transform_indices = @transform_0, window_bounds = array<i64: 32, 128>}, {pipeline_mode = #tpu.pipeline_mode<synchronous>, transform_indices = @transform_1, window_bounds = array<i64: 1, 128>}, {pipeline_mode = #tpu.pipeline_mode<synchronous>, transform_indices = @transform_2, window_bounds = array<i64: 1, 128>}, {transform_indices = @transform_3, window_bounds = array<i64: 32, 128>}]} {
    %c0 = arith.constant 0 : index
    %c0_0 = arith.constant 0 : index
    %0 = vector.load %arg1[%c0, %c0_0] : memref<32x128xbf16, #tpu.memory_space<vmem>>, vector<32x128xbf16>
    %1 = arith.extf %0 : vector<32x128xbf16> to vector<32x128xf32>
    %c0_1 = arith.constant 0 : index
    %c0_2 = arith.constant 0 : index
    %2 = vector.load %arg2[%c0_1, %c0_2] : memref<1x128xf32, #tpu.memory_space<vmem>>, vector<1x128xf32>
    %3 = vector.broadcast %2 : vector<1x128xf32> to vector<32x128xf32>
    %4 = arith.mulf %1, %3 : vector<32x128xf32>
    %c0_3 = arith.constant 0 : index
    %c0_4 = arith.constant 0 : index
    %5 = vector.load %arg3[%c0_3, %c0_4] : memref<1x128xf32, #tpu.memory_space<vmem>>, vector<1x128xf32>
    %6 = vector.broadcast %5 : vector<1x128xf32> to vector<32x128xf32>
    %7 = arith.addf %4, %6 : vector<32x128xf32>
    %cst = arith.constant 0.000000e+00 : f32
    %8 = vector.broadcast %cst : f32 to vector<32x128xf32>
    %9 = arith.maximumf %7, %8 : vector<32x128xf32>
    %10 = arith.truncf %9 : vector<32x128xf32> to vector<32x128xbf16>
    %c0_5 = arith.constant 0 : index
    %c0_6 = arith.constant 0 : index
    %11 = vector.load %arg4[%c0_5, %c0_6] : memref<32x128xbf16, #tpu.memory_space<vmem>>, vector<32x128xbf16>
    tpu.vector_store %arg4[%c0_5, %c0_6], %10 {strides = array<i32>} : memref<32x128xbf16, #tpu.memory_space<vmem>>, vector<32x128xbf16>,
    return
  }
  func.func @transform_0(%arg0: i32) -> (i32, i32) {
    %c0_i32 = arith.constant 0 : i32
    %c0_i32_0 = arith.constant 0 : i32
    return %arg0, %c0_i32 : i32, i32
  }
  func.func @transform_1(%arg0: i32) -> (i32, i32) {
    %c0_i32 = arith.constant 0 : i32
    %c0_i32_0 = arith.constant 0 : i32
    %c0_i32_1 = arith.constant 0 : i32
    return %c0_i32, %c0_i32_0 : i32, i32
  }
  func.func @transform_2(%arg0: i32) -> (i32, i32) {
    %c0_i32 = arith.constant 0 : i32
    %c0_i32_0 = arith.constant 0 : i32
    %c0_i32_1 = arith.constant 0 : i32
    return %c0_i32, %c0_i32_0 : i32, i32
  }
  func.func @transform_3(%arg0: i32) -> (i32, i32) {
    %c0_i32 = arith.constant 0 : i32
    %c0_i32_0 = arith.constant 0 : i32
    return %arg0, %c0_i32 : i32, i32
  }
}

module attributes {stable_mosaic.version = 11 : i64} {
  func.func @_mm_stats_kernel(%arg0: i32, %arg1: memref<128x288xbf16, #tpu.memory_space<vmem>>, %arg2: memref<288x128xbf16, #tpu.memory_space<vmem>>, %arg3: memref<128x128xbf16, #tpu.memory_space<vmem>>, %arg4: memref<1x1x128xf32, #tpu.memory_space<vmem>>, %arg5: memref<1x1x128xf32, #tpu.memory_space<vmem>>) attributes {dimension_semantics = [#tpu.dimension_semantics<parallel>], iteration_bounds = array<i64: 1>, scalar_prefetch = 0 : i64, scratch_operands = 0 : i64, tpu.core_type = #tpu.core_type<tc>, window_params = [{transform_indices = @transform_0, window_bounds = array<i64: 128, 288>}, {pipeline_mode = #tpu.pipeline_mode<synchronous>, transform_indices = @transform_1, window_bounds = array<i64: 288, 128>}, {transform_indices = @transform_2, window_bounds = array<i64: 128, 128>}, {transform_indices = @transform_3, window_bounds = array<i64: 1, 1, 128>}, {transform_indices = @transform_4, window_bounds = array<i64: 1, 1, 128>}]} {
    %c0 = arith.constant 0 : index
    %c0_0 = arith.constant 0 : index
    %0 = vector.load %arg1[%c0, %c0_0] : memref<128x288xbf16, #tpu.memory_space<vmem>>, vector<128x288xbf16>
    %c0_1 = arith.constant 0 : index
    %c0_2 = arith.constant 0 : index
    %1 = vector.load %arg2[%c0_1, %c0_2] : memref<288x128xbf16, #tpu.memory_space<vmem>>, vector<288x128xbf16>
    %cst = arith.constant dense<0.000000e+00> : vector<128x128xf32>
    %2 = tpu.matmul %0, %1, %cst {dimension_numbers = #tpu.dot_dimension_numbers<[1], [0], [0], [1], [0, 0, 1, 1], [], []>} : vector<128x288xbf16>, vector<288x128xbf16>, vector<128x128xf32> -> vector<128x128xf32>
    %3 = arith.truncf %2 : vector<128x128xf32> to vector<128x128xbf16>
    %c0_3 = arith.constant 0 : index
    %c0_4 = arith.constant 0 : index
    %4 = vector.load %arg3[%c0_3, %c0_4] : memref<128x128xbf16, #tpu.memory_space<vmem>>, vector<128x128xbf16>
    tpu.vector_store %arg3[%c0_3, %c0_4], %3 {strides = array<i32>} : memref<128x128xbf16, #tpu.memory_space<vmem>>, vector<128x128xbf16>,
    %cst_5 = arith.constant dense<0.000000e+00> : vector<128xf32>
    %5 = vector.multi_reduction <add>, %2, %cst_5 [0] : vector<128x128xf32> to vector<128xf32>
    %6 = vector.shape_cast %5 : vector<128xf32> to vector<1x128xf32>
    %7 = vector.shape_cast %6 : vector<1x128xf32> to vector<1x1x128xf32>
    %c0_6 = arith.constant 0 : index
    %c0_7 = arith.constant 0 : index
    %c0_8 = arith.constant 0 : index
    %8 = vector.load %arg4[%c0_6, %c0_7, %c0_8] : memref<1x1x128xf32, #tpu.memory_space<vmem>>, vector<1x1x128xf32>
    tpu.vector_store %arg4[%c0_6, %c0_7, %c0_8], %7 {strides = array<i32>} : memref<1x1x128xf32, #tpu.memory_space<vmem>>, vector<1x1x128xf32>,
    %9 = arith.mulf %2, %2 : vector<128x128xf32>
    %cst_9 = arith.constant dense<0.000000e+00> : vector<128xf32>
    %10 = vector.multi_reduction <add>, %9, %cst_9 [0] : vector<128x128xf32> to vector<128xf32>
    %11 = vector.shape_cast %10 : vector<128xf32> to vector<1x128xf32>
    %12 = vector.shape_cast %11 : vector<1x128xf32> to vector<1x1x128xf32>
    %c0_10 = arith.constant 0 : index
    %c0_11 = arith.constant 0 : index
    %c0_12 = arith.constant 0 : index
    %13 = vector.load %arg5[%c0_10, %c0_11, %c0_12] : memref<1x1x128xf32, #tpu.memory_space<vmem>>, vector<1x1x128xf32>
    tpu.vector_store %arg5[%c0_10, %c0_11, %c0_12], %12 {strides = array<i32>} : memref<1x1x128xf32, #tpu.memory_space<vmem>>, vector<1x1x128xf32>,
    return
  }
  func.func @transform_0(%arg0: i32) -> (i32, i32) {
    %c0_i32 = arith.constant 0 : i32
    %c0_i32_0 = arith.constant 0 : i32
    return %arg0, %c0_i32 : i32, i32
  }
  func.func @transform_1(%arg0: i32) -> (i32, i32) {
    %c0_i32 = arith.constant 0 : i32
    %c0_i32_0 = arith.constant 0 : i32
    %c0_i32_1 = arith.constant 0 : i32
    return %c0_i32, %c0_i32_0 : i32, i32
  }
  func.func @transform_2(%arg0: i32) -> (i32, i32) {
    %c0_i32 = arith.constant 0 : i32
    %c0_i32_0 = arith.constant 0 : i32
    return %arg0, %c0_i32 : i32, i32
  }
  func.func @transform_3(%arg0: i32) -> (i32, i32, i32) {
    %c0_i32 = arith.constant 0 : i32
    %c0_i32_0 = arith.constant 0 : i32
    %c0_i32_1 = arith.constant 0 : i32
    return %arg0, %c0_i32, %c0_i32_0 : i32, i32, i32
  }
  func.func @transform_4(%arg0: i32) -> (i32, i32, i32) {
    %c0_i32 = arith.constant 0 : i32
    %c0_i32_0 = arith.constant 0 : i32
    %c0_i32_1 = arith.constant 0 : i32
    return %arg0, %c0_i32, %c0_i32_0 : i32, i32, i32
  }
}

module attributes {stable_mosaic.version = 11 : i64} {
  func.func @_affine_relu_kernel(%arg0: i32, %arg1: memref<128x128xbf16, #tpu.memory_space<vmem>>, %arg2: memref<1x128xf32, #tpu.memory_space<vmem>>, %arg3: memref<1x128xf32, #tpu.memory_space<vmem>>, %arg4: memref<128x128xbf16, #tpu.memory_space<vmem>>) attributes {dimension_semantics = [#tpu.dimension_semantics<parallel>], iteration_bounds = array<i64: 1>, scalar_prefetch = 0 : i64, scratch_operands = 0 : i64, tpu.core_type = #tpu.core_type<tc>, window_params = [{transform_indices = @transform_0, window_bounds = array<i64: 128, 128>}, {pipeline_mode = #tpu.pipeline_mode<synchronous>, transform_indices = @transform_1, window_bounds = array<i64: 1, 128>}, {pipeline_mode = #tpu.pipeline_mode<synchronous>, transform_indices = @transform_2, window_bounds = array<i64: 1, 128>}, {transform_indices = @transform_3, window_bounds = array<i64: 128, 128>}]} {
    %c0 = arith.constant 0 : index
    %c0_0 = arith.constant 0 : index
    %0 = vector.load %arg1[%c0, %c0_0] : memref<128x128xbf16, #tpu.memory_space<vmem>>, vector<128x128xbf16>
    %1 = arith.extf %0 : vector<128x128xbf16> to vector<128x128xf32>
    %c0_1 = arith.constant 0 : index
    %c0_2 = arith.constant 0 : index
    %2 = vector.load %arg2[%c0_1, %c0_2] : memref<1x128xf32, #tpu.memory_space<vmem>>, vector<1x128xf32>
    %3 = vector.broadcast %2 : vector<1x128xf32> to vector<128x128xf32>
    %4 = arith.mulf %1, %3 : vector<128x128xf32>
    %c0_3 = arith.constant 0 : index
    %c0_4 = arith.constant 0 : index
    %5 = vector.load %arg3[%c0_3, %c0_4] : memref<1x128xf32, #tpu.memory_space<vmem>>, vector<1x128xf32>
    %6 = vector.broadcast %5 : vector<1x128xf32> to vector<128x128xf32>
    %7 = arith.addf %4, %6 : vector<128x128xf32>
    %cst = arith.constant 0.000000e+00 : f32
    %8 = vector.broadcast %cst : f32 to vector<128x128xf32>
    %9 = arith.maximumf %7, %8 : vector<128x128xf32>
    %10 = arith.truncf %9 : vector<128x128xf32> to vector<128x128xbf16>
    %c0_5 = arith.constant 0 : index
    %c0_6 = arith.constant 0 : index
    %11 = vector.load %arg4[%c0_5, %c0_6] : memref<128x128xbf16, #tpu.memory_space<vmem>>, vector<128x128xbf16>
    tpu.vector_store %arg4[%c0_5, %c0_6], %10 {strides = array<i32>} : memref<128x128xbf16, #tpu.memory_space<vmem>>, vector<128x128xbf16>,
    return
  }
  func.func @transform_0(%arg0: i32) -> (i32, i32) {
    %c0_i32 = arith.constant 0 : i32
    %c0_i32_0 = arith.constant 0 : i32
    return %arg0, %c0_i32 : i32, i32
  }
  func.func @transform_1(%arg0: i32) -> (i32, i32) {
    %c0_i32 = arith.constant 0 : i32
    %c0_i32_0 = arith.constant 0 : i32
    %c0_i32_1 = arith.constant 0 : i32
    return %c0_i32, %c0_i32_0 : i32, i32
  }
  func.func @transform_2(%arg0: i32) -> (i32, i32) {
    %c0_i32 = arith.constant 0 : i32
    %c0_i32_0 = arith.constant 0 : i32
    %c0_i32_1 = arith.constant 0 : i32
    return %c0_i32, %c0_i32_0 : i32, i32
  }
  func.func @transform_3(%arg0: i32) -> (i32, i32) {
    %c0_i32 = arith.constant 0 : i32
    %c0_i32_0 = arith.constant 0 : i32
    return %arg0, %c0_i32 : i32, i32
  }
}

module attributes {stable_mosaic.version = 11 : i64} {
  func.func @_mm_stats_kernel(%arg0: i32, %arg1: memref<512x144xbf16, #tpu.memory_space<vmem>>, %arg2: memref<144x128xbf16, #tpu.memory_space<vmem>>, %arg3: memref<512x128xbf16, #tpu.memory_space<vmem>>, %arg4: memref<1x1x128xf32, #tpu.memory_space<vmem>>, %arg5: memref<1x1x128xf32, #tpu.memory_space<vmem>>) attributes {dimension_semantics = [#tpu.dimension_semantics<parallel>], iteration_bounds = array<i64: 1>, scalar_prefetch = 0 : i64, scratch_operands = 0 : i64, tpu.core_type = #tpu.core_type<tc>, window_params = [{transform_indices = @transform_0, window_bounds = array<i64: 512, 144>}, {pipeline_mode = #tpu.pipeline_mode<synchronous>, transform_indices = @transform_1, window_bounds = array<i64: 144, 128>}, {transform_indices = @transform_2, window_bounds = array<i64: 512, 128>}, {transform_indices = @transform_3, window_bounds = array<i64: 1, 1, 128>}, {transform_indices = @transform_4, window_bounds = array<i64: 1, 1, 128>}]} {
    %c0 = arith.constant 0 : index
    %c0_0 = arith.constant 0 : index
    %0 = vector.load %arg1[%c0, %c0_0] : memref<512x144xbf16, #tpu.memory_space<vmem>>, vector<512x144xbf16>
    %c0_1 = arith.constant 0 : index
    %c0_2 = arith.constant 0 : index
    %1 = vector.load %arg2[%c0_1, %c0_2] : memref<144x128xbf16, #tpu.memory_space<vmem>>, vector<144x128xbf16>
    %cst = arith.constant dense<0.000000e+00> : vector<512x128xf32>
    %2 = tpu.matmul %0, %1, %cst {dimension_numbers = #tpu.dot_dimension_numbers<[1], [0], [0], [1], [0, 0, 1, 1], [], []>} : vector<512x144xbf16>, vector<144x128xbf16>, vector<512x128xf32> -> vector<512x128xf32>
    %3 = arith.truncf %2 : vector<512x128xf32> to vector<512x128xbf16>
    %c0_3 = arith.constant 0 : index
    %c0_4 = arith.constant 0 : index
    %4 = vector.load %arg3[%c0_3, %c0_4] : memref<512x128xbf16, #tpu.memory_space<vmem>>, vector<512x128xbf16>
    tpu.vector_store %arg3[%c0_3, %c0_4], %3 {strides = array<i32>} : memref<512x128xbf16, #tpu.memory_space<vmem>>, vector<512x128xbf16>,
    %cst_5 = arith.constant dense<0.000000e+00> : vector<128xf32>
    %5 = vector.multi_reduction <add>, %2, %cst_5 [0] : vector<512x128xf32> to vector<128xf32>
    %6 = vector.shape_cast %5 : vector<128xf32> to vector<1x128xf32>
    %7 = vector.shape_cast %6 : vector<1x128xf32> to vector<1x1x128xf32>
    %c0_6 = arith.constant 0 : index
    %c0_7 = arith.constant 0 : index
    %c0_8 = arith.constant 0 : index
    %8 = vector.load %arg4[%c0_6, %c0_7, %c0_8] : memref<1x1x128xf32, #tpu.memory_space<vmem>>, vector<1x1x128xf32>
    tpu.vector_store %arg4[%c0_6, %c0_7, %c0_8], %7 {strides = array<i32>} : memref<1x1x128xf32, #tpu.memory_space<vmem>>, vector<1x1x128xf32>,
    %9 = arith.mulf %2, %2 : vector<512x128xf32>
    %cst_9 = arith.constant dense<0.000000e+00> : vector<128xf32>
    %10 = vector.multi_reduction <add>, %9, %cst_9 [0] : vector<512x128xf32> to vector<128xf32>
    %11 = vector.shape_cast %10 : vector<128xf32> to vector<1x128xf32>
    %12 = vector.shape_cast %11 : vector<1x128xf32> to vector<1x1x128xf32>
    %c0_10 = arith.constant 0 : index
    %c0_11 = arith.constant 0 : index
    %c0_12 = arith.constant 0 : index
    %13 = vector.load %arg5[%c0_10, %c0_11, %c0_12] : memref<1x1x128xf32, #tpu.memory_space<vmem>>, vector<1x1x128xf32>
    tpu.vector_store %arg5[%c0_10, %c0_11, %c0_12], %12 {strides = array<i32>} : memref<1x1x128xf32, #tpu.memory_space<vmem>>, vector<1x1x128xf32>,
    return
  }
  func.func @transform_0(%arg0: i32) -> (i32, i32) {
    %c0_i32 = arith.constant 0 : i32
    %c0_i32_0 = arith.constant 0 : i32
    return %arg0, %c0_i32 : i32, i32
  }
  func.func @transform_1(%arg0: i32) -> (i32, i32) {
    %c0_i32 = arith.constant 0 : i32
    %c0_i32_0 = arith.constant 0 : i32
    %c0_i32_1 = arith.constant 0 : i32
    return %c0_i32, %c0_i32_0 : i32, i32
  }
  func.func @transform_2(%arg0: i32) -> (i32, i32) {
    %c0_i32 = arith.constant 0 : i32
    %c0_i32_0 = arith.constant 0 : i32
    return %arg0, %c0_i32 : i32, i32
  }
  func.func @transform_3(%arg0: i32) -> (i32, i32, i32) {
    %c0_i32 = arith.constant 0 : i32
    %c0_i32_0 = arith.constant 0 : i32
    %c0_i32_1 = arith.constant 0 : i32
    return %arg0, %c0_i32, %c0_i32_0 : i32, i32, i32
  }
  func.func @transform_4(%arg0: i32) -> (i32, i32, i32) {
    %c0_i32 = arith.constant 0 : i32
    %c0_i32_0 = arith.constant 0 : i32
    %c0_i32_1 = arith.constant 0 : i32
    return %arg0, %c0_i32, %c0_i32_0 : i32, i32, i32
  }
}

module attributes {stable_mosaic.version = 11 : i64} {
  func.func @_affine_relu_kernel(%arg0: i32, %arg1: memref<512x128xbf16, #tpu.memory_space<vmem>>, %arg2: memref<1x128xf32, #tpu.memory_space<vmem>>, %arg3: memref<1x128xf32, #tpu.memory_space<vmem>>, %arg4: memref<512x128xbf16, #tpu.memory_space<vmem>>) attributes {dimension_semantics = [#tpu.dimension_semantics<parallel>], iteration_bounds = array<i64: 1>, scalar_prefetch = 0 : i64, scratch_operands = 0 : i64, tpu.core_type = #tpu.core_type<tc>, window_params = [{transform_indices = @transform_0, window_bounds = array<i64: 512, 128>}, {pipeline_mode = #tpu.pipeline_mode<synchronous>, transform_indices = @transform_1, window_bounds = array<i64: 1, 128>}, {pipeline_mode = #tpu.pipeline_mode<synchronous>, transform_indices = @transform_2, window_bounds = array<i64: 1, 128>}, {transform_indices = @transform_3, window_bounds = array<i64: 512, 128>}]} {
    %c0 = arith.constant 0 : index
    %c0_0 = arith.constant 0 : index
    %0 = vector.load %arg1[%c0, %c0_0] : memref<512x128xbf16, #tpu.memory_space<vmem>>, vector<512x128xbf16>
    %1 = arith.extf %0 : vector<512x128xbf16> to vector<512x128xf32>
    %c0_1 = arith.constant 0 : index
    %c0_2 = arith.constant 0 : index
    %2 = vector.load %arg2[%c0_1, %c0_2] : memref<1x128xf32, #tpu.memory_space<vmem>>, vector<1x128xf32>
    %3 = vector.broadcast %2 : vector<1x128xf32> to vector<512x128xf32>
    %4 = arith.mulf %1, %3 : vector<512x128xf32>
    %c0_3 = arith.constant 0 : index
    %c0_4 = arith.constant 0 : index
    %5 = vector.load %arg3[%c0_3, %c0_4] : memref<1x128xf32, #tpu.memory_space<vmem>>, vector<1x128xf32>
    %6 = vector.broadcast %5 : vector<1x128xf32> to vector<512x128xf32>
    %7 = arith.addf %4, %6 : vector<512x128xf32>
    %cst = arith.constant 0.000000e+00 : f32
    %8 = vector.broadcast %cst : f32 to vector<512x128xf32>
    %9 = arith.maximumf %7, %8 : vector<512x128xf32>
    %10 = arith.truncf %9 : vector<512x128xf32> to vector<512x128xbf16>
    %c0_5 = arith.constant 0 : index
    %c0_6 = arith.constant 0 : index
    %11 = vector.load %arg4[%c0_5, %c0_6] : memref<512x128xbf16, #tpu.memory_space<vmem>>, vector<512x128xbf16>
    tpu.vector_store %arg4[%c0_5, %c0_6], %10 {strides = array<i32>} : memref<512x128xbf16, #tpu.memory_space<vmem>>, vector<512x128xbf16>,
    return
  }
  func.func @transform_0(%arg0: i32) -> (i32, i32) {
    %c0_i32 = arith.constant 0 : i32
    %c0_i32_0 = arith.constant 0 : i32
    return %arg0, %c0_i32 : i32, i32
  }
  func.func @transform_1(%arg0: i32) -> (i32, i32) {
    %c0_i32 = arith.constant 0 : i32
    %c0_i32_0 = arith.constant 0 : i32
    %c0_i32_1 = arith.constant 0 : i32
    return %c0_i32, %c0_i32_0 : i32, i32
  }
  func.func @transform_2(%arg0: i32) -> (i32, i32) {
    %c0_i32 = arith.constant 0 : i32
    %c0_i32_0 = arith.constant 0 : i32
    %c0_i32_1 = arith.constant 0 : i32
    return %c0_i32, %c0_i32_0 : i32, i32
  }
  func.func @transform_3(%arg0: i32) -> (i32, i32) {
    %c0_i32 = arith.constant 0 : i32
    %c0_i32_0 = arith.constant 0 : i32
    return %arg0, %c0_i32 : i32, i32
  }
}

module attributes {stable_mosaic.version = 11 : i64} {
  func.func @_mm_bias_tanh_kernel(%arg0: i32, %arg1: memref<512x72xbf16, #tpu.memory_space<vmem>>, %arg2: memref<72x128xbf16, #tpu.memory_space<vmem>>, %arg3: memref<1x128xf32, #tpu.memory_space<vmem>>, %arg4: memref<512x128xf32, #tpu.memory_space<vmem>>) attributes {dimension_semantics = [#tpu.dimension_semantics<parallel>], iteration_bounds = array<i64: 4>, scalar_prefetch = 0 : i64, scratch_operands = 0 : i64, tpu.core_type = #tpu.core_type<tc>, window_params = [{transform_indices = @transform_0, window_bounds = array<i64: 512, 72>}, {pipeline_mode = #tpu.pipeline_mode<synchronous>, transform_indices = @transform_1, window_bounds = array<i64: 72, 128>}, {pipeline_mode = #tpu.pipeline_mode<synchronous>, transform_indices = @transform_2, window_bounds = array<i64: 1, 128>}, {transform_indices = @transform_3, window_bounds = array<i64: 512, 128>}]} {
    %c0 = arith.constant 0 : index
    %c0_0 = arith.constant 0 : index
    %0 = vector.load %arg1[%c0, %c0_0] : memref<512x72xbf16, #tpu.memory_space<vmem>>, vector<512x72xbf16>
    %c0_1 = arith.constant 0 : index
    %c0_2 = arith.constant 0 : index
    %1 = vector.load %arg2[%c0_1, %c0_2] : memref<72x128xbf16, #tpu.memory_space<vmem>>, vector<72x128xbf16>
    %cst = arith.constant dense<0.000000e+00> : vector<512x128xf32>
    %2 = tpu.matmul %0, %1, %cst {dimension_numbers = #tpu.dot_dimension_numbers<[1], [0], [0], [1], [0, 0, 1, 1], [], []>} : vector<512x72xbf16>, vector<72x128xbf16>, vector<512x128xf32> -> vector<512x128xf32>
    %c0_3 = arith.constant 0 : index
    %c0_4 = arith.constant 0 : index
    %3 = vector.load %arg3[%c0_3, %c0_4] : memref<1x128xf32, #tpu.memory_space<vmem>>, vector<1x128xf32>
    %4 = vector.broadcast %3 : vector<1x128xf32> to vector<512x128xf32>
    %5 = arith.addf %2, %4 : vector<512x128xf32>
    %6 = math.tanh %5 : vector<512x128xf32>
    %c0_5 = arith.constant 0 : index
    %c0_6 = arith.constant 0 : index
    %7 = vector.load %arg4[%c0_5, %c0_6] : memref<512x128xf32, #tpu.memory_space<vmem>>, vector<512x128xf32>
    tpu.vector_store %arg4[%c0_5, %c0_6], %6 {strides = array<i32>} : memref<512x128xf32, #tpu.memory_space<vmem>>, vector<512x128xf32>,
    return
  }
  func.func @transform_0(%arg0: i32) -> (i32, i32) {
    %c0_i32 = arith.constant 0 : i32
    %c0_i32_0 = arith.constant 0 : i32
    return %arg0, %c0_i32 : i32, i32
  }
  func.func @transform_1(%arg0: i32) -> (i32, i32) {
    %c0_i32 = arith.constant 0 : i32
    %c0_i32_0 = arith.constant 0 : i32
    %c0_i32_1 = arith.constant 0 : i32
    return %c0_i32, %c0_i32_0 : i32, i32
  }
  func.func @transform_2(%arg0: i32) -> (i32, i32) {
    %c0_i32 = arith.constant 0 : i32
    %c0_i32_0 = arith.constant 0 : i32
    %c0_i32_1 = arith.constant 0 : i32
    return %c0_i32, %c0_i32_0 : i32, i32
  }
  func.func @transform_3(%arg0: i32) -> (i32, i32) {
    %c0_i32 = arith.constant 0 : i32
    %c0_i32_0 = arith.constant 0 : i32
    return %arg0, %c0_i32 : i32, i32
  }
}

</mosaic_0001>

<bundles_post_ra>
// kernel: _lambda_.10
= control target key start
LH: loop header
LB: loop body
LE: loop exit
PB: predicated region body
PF: predicated region fallthrough
CT: control target
= control target key end

     0   :  { %v28_v0 = vlaneseq  ;;  %s232_s0 = inlined_call_operand.vmem [shape: bf16[8,1024], index: 0, kind: input, shape index: {}]   ;;  %s233_s1 = inlined_call_operand.vmem [shape: f32[1,1024], index: 1, kind: input, shape index: {}]   ;;  %s234_s2 = inlined_call_operand.vmem [shape: f32[1,1024], index: 2, kind: input, shape index: {}]   ;;  %s235_s3 = inlined_call_operand.vmem [shape: bf16[8,1024], index: 3, kind: output, shape index: {}]  }
   0x1   :  { %v14_v1 = vld [vmem:[%s232_s0] sm:$0xff]  ;;  %v15_v5 = vld [vmem:[%s232_s0 + $0x8] sm:$0xff]  ;;  %v16_v6 = vld [vmem:[%s232_s0 + $0x10] sm:$0xff] }
   0x2   :  { %v18_v2 = vunpack.c.l.bf16 %v14_v1  ;;  %v19_v3 = vunpack.c.h.bf16 %v14_v1  ;;  %v29_v4 = vshrl.u32 %v28_v0, 7  ;;  %v17_v7 = vld [vmem:[%s232_s0 + $0x18] sm:$0xff]  ;;  %v26_v8 = vld [vmem:[%s233_s1] sm:$0xff]  ;;  %v20_v10 = vunpack.c.l.bf16 %v15_v5 }
   0x3   :  { %v76_v9 = vld [vmem:[%s234_s2] sm:$0xff]  ;;  %v21_v11 = vunpack.c.h.bf16 %v15_v5  ;;  %v22_v12 = vunpack.c.l.bf16 %v16_v6  ;;  %v23_v13 = vunpack.c.h.bf16 %v16_v6  ;;  %v24_v20 = vunpack.c.l.bf16 %v17_v7 }
   0x4   :  { %v30_v14 = vsub.s32 0, %v29_v4  ;;  %v34_v15 = vsub.s32 1, %v29_v4  ;;  %v38_v16 = vsub.s32 2, %v29_v4  ;;  %v42_v17 = vsub.s32 3, %v29_v4 }
   0x5   :  { %v46_v18 = vsub.s32 4, %v29_v4  ;;  %v50_v19 = vsub.s32 5, %v29_v4  ;;  %v25_v21 = vunpack.c.h.bf16 %v17_v7  ;;  %v54_v44 = vsub.s32 6, %v29_v4 }
   0x6   :  { %v31_v22 = vrot.slane %v26_v8, %v30_v14  ;;  %v35_v23 = vrot.slane %v26_v8, %v34_v15  ;;  %v81_v24 = vrot.slane %v76_v9, %v30_v14  ;;  %v85_v25 = vrot.slane %v76_v9, %v34_v15 }
   0x7   :  { %v39_v26 = vrot.slane %v26_v8, %v38_v16  ;;  %v43_v27 = vrot.slane %v26_v8, %v42_v17  ;;  %v89_v28 = vrot.slane %v76_v9, %v38_v16  ;;  %v93_v29 = vrot.slane %v76_v9, %v42_v17 }
   0x8   :  { %v68_v30 = vmul.f32 %v31_v22, %v18_v2  ;;  %v69_v31 = vmul.f32 %v35_v23, %v19_v3  ;;  %v47_v32 = vrot.slane %v26_v8, %v46_v18  ;;  %v51_v33 = vrot.slane %v26_v8, %v50_v19 }
   0x9   :  { %v70_v34 = vmul.f32 %v39_v26, %v20_v10  ;;  %v71_v35 = vmul.f32 %v43_v27, %v21_v11  ;;  %v97_v36 = vrot.slane %v76_v9, %v46_v18  ;;  %v101_v37 = vrot.slane %v76_v9, %v50_v19 }
   0xa   :  { %v118_v38 = vadd.f32 %v81_v24, %v68_v30  ;;  %v119_v39 = vadd.f32 %v85_v25, %v69_v31  ;;  %v72_v40 = vmul.f32 %v47_v32, %v22_v12  ;;  %v73_v41 = vmul.f32 %v51_v33, %v23_v13 }
   0xb   :  { %v120_v42 = vadd.f32 %v89_v28, %v70_v34  ;;  %v121_v43 = vadd.f32 %v93_v29, %v71_v35  ;;  %v58_v45 = vsub.s32 7, %v29_v4  ;;  %v55_v52 = vrot.slane %v26_v8, %v54_v44 }
   0xc   :  { %v126_v46 = vmax.f32 %v118_v38, 0.0  ;;  %v127_v47 = vmax.f32 %v119_v39, 0.0  ;;  %v122_v48 = vadd.f32 %v97_v36, %v72_v40  ;;  %v123_v49 = vadd.f32 %v101_v37, %v73_v41 }
   0xd   :  { %v128_v50 = vmax.f32 %v120_v42, 0.0  ;;  %v129_v51 = vmax.f32 %v121_v43, 0.0  ;;  %v59_v53 = vrot.slane %v26_v8, %v58_v45  ;;  %v105_v57 = vrot.slane %v76_v9, %v54_v44 }
   0xe   :  { %v178_v54 = vpack.c.bf16 %v127_v47, %v126_v46  ;;  %v130_v55 = vmax.f32 %v122_v48, 0.0  ;;  %v131_v56 = vmax.f32 %v123_v49, 0.0  ;;  %v74_v59 = vmul.f32 %v55_v52, %v24_v20 }
   0xf   :  { %v179_v58 = vpack.c.bf16 %v129_v51, %v128_v50  ;;  %v75_v60 = vmul.f32 %v59_v53, %v25_v21  ;;  %v109_v61 = vrot.slane %v76_v9, %v58_v45 }
  0x10   :  { %166 = vst [vmem:[%s235_s3] sm:$0xff] %v178_v54  ;;  %v180_v62 = vpack.c.bf16 %v131_v56, %v130_v55  ;;  %v124_v63 = vadd.f32 %v105_v57, %v74_v59 }
  0x11   :  { %167 = vst [vmem:[%s235_s3 + $0x8] sm:$0xff] %v179_v58  ;;  %v125_v0 = vadd.f32 %v109_v61, %v75_v60 }
  0x12   :  { %168 = vst [vmem:[%s235_s3 + $0x10] sm:$0xff] %v180_v62  ;;  %v132_v1 = vmax.f32 %v124_v63, 0.0 }
  0x13   :  { %v133_v2 = vmax.f32 %v125_v0, 0.0 }
  0x15   :  { %v181_v3 = vpack.c.bf16 %v133_v2, %v132_v1 }
  0x17   :  { %169 = vst [vmem:[%s235_s3 + $0x18] sm:$0xff] %v181_v3 }

// kernel: _lambda_.9
= control target key start
LH: loop header
LB: loop body
LE: loop exit
PB: predicated region body
PF: predicated region fallthrough
CT: control target
= control target key end

     0   :  { %10 = vsyncpa [#allocation3], 0  ;;  %s566_s15 = smov [#allocation2]   ;;  %s666_s0 = inlined_call_operand.vmem [shape: bf16[8,16], index: 0, kind: input, shape index: {}]   ;;  %s667_s1 = inlined_call_operand.hbm [shape: bf16[16,1024], index: 1, kind: input, shape index: {}]   ;;  %s668_s2 = inlined_call_operand.vmem [shape: bf16[8,1024], index: 2, kind: output, shape index: {0}]   ;;  %s669_s3 = inlined_call_operand.vmem [shape: f32[1,1,1024], index: 3, kind: output, shape index: {1}]   ;;  %s670_s4 = inlined_call_operand.vmem [shape: f32[1,1,1024], index: 4, kind: output, shape index: {2}]  }
   0x1   :  { %s18_s16 = sshll.u32 %s566_s15, 4  ;;  %s542_s19 = scalar_lea.hbm %s667_s1, 1024  ;;  %s19_s16 = int_to_ptr.vmem [resolvable:$true] %s18_s16 }
   0x2   :  { %p543_p0 = scmp.ne.s32.totalorder %s667_s1, %s542_s19  ;;  %p546_p1 = scmp.lt.u32.totalorder %s542_s19, %s667_s1 }
   0x4   :  { %p548_p2 = pnand %p546_p1, %p543_p0 }
   0x6   :  { %551 = shalt.err (!%p548_p2)
}
   0x7   :  { %s552_s24 = scalar_lea.vmem %s19_s16, 1024  ;;  %p557_p4 = scmp.lt.s32.totalorder %s19_s16, %s19_s16 }
   0x8   :  { %p553_p3 = scmp.ne.s32.totalorder %s19_s16, %s552_s24  ;;  %p558_p5 = scmp.lt.s32.totalorder %s552_s24, %s552_s24 }
   0xa   :  { %p559_p6 = por %p558_p5, %p557_p4 }
   0xc   :  { %p560_p7 = pnand %p559_p6, %p553_p3 }
   0xe   :  { %563 = shalt.err (!%p560_p7)
}
   0xf   :  { %s567_s25 = smov 512   ;;  %s568_s26 = smov 32  }
  0x10   :  { %24 = dma.hbm_to_vmem [thread:$0]  %s667_s1, 1024, %s19_s16, [#allocation3], %s567_s25, %s567_s25, %s568_s26  }
  0x11   :  { %564 = dma.done.wait [#allocation3], 1024  }
  0x12   :  { %565 = vsyncadd [#allocation3], 4294966272  ;;  %v569_v0 = vmov 0   ;;  %v30_v1 = vld [vmem:[#allocation2] sm:$0xff]  ;;  %v31_v3 = vld [vmem:[#allocation2 + $0x8] sm:$0xff]  ;;  %vm78_vm0 = vcmask 130048   ;;  %v345_v20 = vlaneseq }
  0x13   :  { %114 = vmatprep.mubr.bf16.mxu0 %v569_v0  ;;  %155 = vmatprep.mubr.bf16.mxu1 %v569_v0  ;;  %v34_v2 = vld [vmem:[#allocation2 + $0x20] sm:$0xff]  ;;  %v35_v5 = vld [vmem:[#allocation2 + $0x28] sm:$0xff]  ;;  %v32_v7 = vld [vmem:[#allocation2 + $0x10] sm:$0xff]  ;;  %v570_v18 = vmov 1966171168  }
  0x14   :  { %v518_v4 = vcombine.high %v30_v1, %v34_v2  ;;  %v517_v6 = vcombine.low %v30_v1, %v34_v2  ;;  %v520_v8 = vcombine.high %v31_v3, %v35_v5  ;;  %v519_v9 = vcombine.low %v31_v3, %v35_v5  ;;  %v36_v10 = vld [vmem:[#allocation2 + $0x30] sm:$0xff]  ;;  %v33_v11 = vld [vmem:[#allocation2 + $0x18] sm:$0xff]  ;;  %v29_v15 = vld [vmem:[%s666_s0] sm:$0xf] }
  0x15   :  { %v37_v12 = vld [vmem:[#allocation2 + $0x38] sm:$0xff]  ;;  %v522_v13 = vcombine.high %v32_v7, %v36_v10  ;;  %v521_v16 = vcombine.low %v32_v7, %v36_v10  ;;  %v343_v19 = vunpack.c.l.s4 %v570_v18  ;;  %v346_v22 = vshrl.u32 %v345_v20, 7 }
  0x16   :  { %82 = vmatprep.subr.bf16.mxu0 %v518_v4  ;;  %v524_v14 = vcombine.high %v33_v11, %v37_v12  ;;  %123 = vmatprep.subr.bf16.mxu1 %v520_v8  ;;  %v523_v17 = vcombine.low %v33_v11, %v37_v12 }
  0x17   :  { %83 = vmatpush1.bf16.msra.mxu0 %v517_v6  ;;  %124 = vmatpush1.bf16.msra.mxu1 %v519_v9  ;;  %v344_v21 = vunpack.c.0.s8 %v343_v19 }
  0x18   :  { %164 = vmatprep.subr.bf16.mxu0 %v522_v13  ;;  %205 = vmatprep.subr.bf16.mxu1 %v524_v14 }
  0x19   :  { %v611_v28 = vsub.s32 %v344_v21, %v346_v22 }
  0x1a   :  { %525 = vmatmul.mubr.msk.bf16.vlgmr.msra.gmra.mrb[0].mxu0 %vm78_vm0, %v29_v15  ;;  %526 = vmatmul.mubr.msk.bf16.vlgmr.msra.gmra.mrb[0].mxu1 %vm78_vm0, %v29_v15 }
  0x1b   :  { %165 = vmatpush1.bf16.msra.mxu0 %v521_v16  ;;  %206 = vmatpush1.bf16.msra.mxu1 %v523_v17 }
  0x1c   :  { %196 = vmatprep.mubr.bf16.mxu0 %v569_v0  ;;  %237 = vmatprep.mubr.bf16.mxu1 %v569_v0 }
  0x22   :  { %527 = vmatmul.mubr.msk.bf16.vlgmr.msra.gmra.mrb[4].mxu0 %vm78_vm0, %v29_v15  ;;  %528 = vmatmul.mubr.msk.bf16.vlgmr.msra.gmra.mrb[4].mxu1 %vm78_vm0, %v29_v15 }
  0xed   :  { %v116_v23 = vpop.f32.mrb[0].mxu0  ;;  %v157_v26 = vpop.f32.mrb[0].mxu1 }
  0xee   :  { %v282_v24 = vrot.slane %v116_v23, 4  ;;  %v389_v25 = vmul.f32 %v116_v23, %v116_v23  ;;  %v118_v27 = vpop.f32.mrb[1].mxu0  ;;  %v294_v29 = vrot.slane %v157_v26, 4  ;;  %v391_v30 = vmul.f32 %v157_v26, %v157_v26  ;;  %v159_v33 = vpop.f32.mrb[1].mxu1 }
  0xef   :  { %v533_v31 = vpack.c.bf16 %v118_v27, %v116_v23  ;;  %v288_v32 = vrot.slane %v118_v27, 4  ;;  %v120_v34 = vpop.f32.mrb[2].mxu0  ;;  %v390_v37 = vmul.f32 %v118_v27, %v118_v27  ;;  %v534_v38 = vpack.c.bf16 %v159_v33, %v157_v26  ;;  %v161_v39 = vpop.f32.mrb[2].mxu1 }
  0xf0   :  { %v283_v35 = vadd.f32 %v282_v24, %v116_v23  ;;  %v397_v36 = vrot.slane %v389_v25, 4  ;;  %v121_v40 = vpop.f32.mrb[3].mxu0  ;;  %v295_v41 = vadd.f32 %v294_v29, %v157_v26  ;;  %v409_v42 = vrot.slane %v391_v30, 4  ;;  %v162_v45 = vpop.f32.mrb[3].mxu1 }
  0xf1   :  { %278 = vst [vmem:[%s668_s2] sm:$0xff] %v533_v31  ;;  %v289_v43 = vadd.f32 %v288_v32, %v118_v27  ;;  %v300_v44 = vrot.slane %v159_v33, 4  ;;  %v403_v48 = vrot.slane %v390_v37, 4  ;;  %279 = vst [vmem:[%s668_s2 + $0x8] sm:$0xff] %v534_v38  ;;  %v392_v49 = vmul.f32 %v159_v33, %v159_v33 }
  0xf2   :  { %v284_v46 = vrot.slane %v283_v35, 2  ;;  %v398_v47 = vadd.f32 %v397_v36, %v389_v25  ;;  %v296_v50 = vrot.slane %v295_v41, 2  ;;  %v410_v51 = vadd.f32 %v409_v42, %v391_v30 }
  0xf3   :  { %v290_v52 = vrot.slane %v289_v43, 2  ;;  %v301_v53 = vadd.f32 %v300_v44, %v159_v33  ;;  %v404_v56 = vadd.f32 %v403_v48, %v390_v37  ;;  %v415_v57 = vrot.slane %v392_v49, 4 }
  0xf4   :  { %v285_v54 = vadd.f32 %v284_v46, %v283_v35  ;;  %v399_v55 = vrot.slane %v398_v47, 2  ;;  %v297_v58 = vadd.f32 %v296_v50, %v295_v41  ;;  %v411_v59 = vrot.slane %v410_v51, 2 }
  0xf5   :  { %v291_v60 = vadd.f32 %v290_v52, %v289_v43  ;;  %v302_v61 = vrot.slane %v301_v53, 2  ;;  %v198_v62 = vpop.f32.mrb[4].mxu0  ;;  %v405_v1 = vrot.slane %v404_v56, 2  ;;  %v416_v2 = vadd.f32 %v415_v57, %v392_v49  ;;  %v619_v3 = vpop.f32.mrb[4].mxu1 }
  0xf6   :  { %v286_v63 = vrot.slane %v285_v54, 1  ;;  %v400_v0 = vadd.f32 %v399_v55, %v398_v47  ;;  %v200_v4 = vpop.f32.mrb[5].mxu0  ;;  %v298_v5 = vrot.slane %v297_v58, 1  ;;  %v412_v6 = vadd.f32 %v411_v59, %v410_v51  ;;  %v621_v9 = vpop.f32.mrb[5].mxu1 }
  0xf7   :  { %v292_v7 = vrot.slane %v291_v60, 1  ;;  %v303_v8 = vadd.f32 %v302_v61, %v301_v53  ;;  %v202_v10 = vpop.f32.mrb[6].mxu0  ;;  %v406_v13 = vadd.f32 %v405_v1, %v404_v56  ;;  %v417_v14 = vrot.slane %v416_v2, 2  ;;  %v243_v15 = vpop.f32.mrb[6].mxu1 }
  0xf8   :  { %v287_v11 = vadd.f32 %v286_v63, %v285_v54  ;;  %v401_v12 = vrot.slane %v400_v0, 1  ;;  %v203_v16 = vpop.f32.mrb[7].mxu0  ;;  %v299_v17 = vadd.f32 %v298_v5, %v297_v58  ;;  %v413_v18 = vrot.slane %v412_v6, 1  ;;  %v244_v21 = vpop.f32.mrb[7].mxu1 }
  0xf9   :  { %v293_v19 = vadd.f32 %v292_v7, %v291_v60  ;;  %v304_v20 = vrot.slane %v303_v8, 1  ;;  %v407_v23 = vrot.slane %v406_v13, 1  ;;  %v418_v24 = vadd.f32 %v417_v14, %v416_v2 }
  0xfa   :  { %v402_v22 = vadd.f32 %v401_v12, %v400_v0  ;;  %v306_v25 = vrot.slane %v198_v62, 4  ;;  %v414_v26 = vadd.f32 %v413_v18, %v412_v6  ;;  %v393_v30 = vmul.f32 %v198_v62, %v198_v62 }
  0xfb   :  { %v338_v27 = vcombine.low %v287_v11, %v293_v19  ;;  %v305_v29 = vadd.f32 %v304_v20, %v303_v8  ;;  %v408_v31 = vadd.f32 %v407_v23, %v406_v13  ;;  %v419_v32 = vrot.slane %v418_v24, 1 }
  0xfc   :  { %v307_v33 = vadd.f32 %v306_v25, %v198_v62  ;;  %v318_v34 = vrot.slane %v619_v3, 4  ;;  %v421_v37 = vrot.slane %v393_v30, 4  ;;  %v395_v38 = vmul.f32 %v619_v3, %v619_v3 }
  0xfd   :  { %v625_v35 = vrot.slane %v338_v27, %v611_v28  ;;  %v339_v36 = vcombine.low %v299_v17, %v305_v29  ;;  %v453_v39 = vcombine.low %v402_v22, %v408_v31  ;;  %v420_v40 = vadd.f32 %v419_v32, %v418_v24 }
  0xfe   :  { %v308_v41 = vrot.slane %v307_v33, 2  ;;  %v319_v42 = vadd.f32 %v318_v34, %v619_v3  ;;  %v422_v44 = vadd.f32 %v421_v37, %v393_v30  ;;  %v433_v45 = vrot.slane %v395_v38, 4 }
  0xff   :  { %v631_v43 = vrot.slane %v339_v36, %v611_v28  ;;  %v535_v46 = vpack.c.bf16 %v200_v4, %v198_v62  ;;  %v634_v47 = vrot.slane %v453_v39, %v611_v28  ;;  %v454_v48 = vcombine.low %v414_v26, %v420_v40 }
 0x100   :  { %v309_v49 = vadd.f32 %v308_v41, %v307_v33  ;;  %v423_v51 = vrot.slane %v422_v44, 2  ;;  %v434_v52 = vadd.f32 %v433_v45, %v395_v38  ;;  %v312_v53 = vrot.slane %v200_v4, 4 }
 0x101   :  { %v370_v50 = vcombine.low %v625_v35, %v631_v43  ;;  %280 = vst [vmem:[%s668_s2 + $0x10] sm:$0xff] %v535_v46  ;;  %v470_v54 = vrot.slane %v454_v48, %v611_v28  ;;  %v320_v55 = vrot.slane %v319_v42, 2  ;;  %v394_v56 = vmul.f32 %v200_v4, %v200_v4 }
 0x102   :  { %v313_v57 = vadd.f32 %v312_v53, %v200_v4  ;;  %v424_v59 = vadd.f32 %v423_v51, %v422_v44  ;;  %v310_v61 = vrot.slane %v309_v49, 1  ;;  %v435_v62 = vrot.slane %v434_v52, 2 }
 0x103   :  { %v485_v58 = vcombine.low %v634_v47, %v470_v54  ;;  %v427_v60 = vrot.slane %v394_v56, 4  ;;  %v536_v0 = vpack.c.bf16 %v621_v9, %v619_v3  ;;  %v321_v1 = vadd.f32 %v320_v55, %v319_v42 }
 0x104   :  { %v314_v63 = vrot.slane %v313_v57, 2  ;;  %v324_v5 = vrot.slane %v621_v9, 4  ;;  %v396_v4 = vmul.f32 %v621_v9, %v621_v9  ;;  %v425_v7 = vrot.slane %v424_v59, 1 }
 0x105   :  { %v428_v2 = vadd.f32 %v427_v60, %v394_v56  ;;  %281 = vst [vmem:[%s668_s2 + $0x18] sm:$0xff] %v536_v0  ;;  %v311_v11 = vadd.f32 %v310_v61, %v309_v49  ;;  %v436_v12 = vadd.f32 %v435_v62, %v434_v52  ;;  %v322_v14 = vrot.slane %v321_v1, 1 }
 0x106   :  { %v315_v6 = vadd.f32 %v314_v63, %v313_v57  ;;  %v325_v10 = vadd.f32 %v324_v5, %v621_v9  ;;  %v439_v3 = vrot.slane %v396_v4, 4  ;;  %v426_v19 = vadd.f32 %v425_v7, %v424_v59 }
 0x107   :  { %v429_v8 = vrot.slane %v428_v2, 2  ;;  %v437_v22 = vrot.slane %v436_v12, 1  ;;  %v323_v25 = vadd.f32 %v322_v14, %v321_v1  ;;  %v378_v41 = vrot.slane %v370_v50, %v611_v28 }
 0x108   :  { %v316_v13 = vrot.slane %v315_v6, 1  ;;  %v326_v16 = vrot.slane %v325_v10, 2  ;;  %v440_v18 = vadd.f32 %v439_v3, %v396_v4  ;;  %v493_v45 = vrot.slane %v485_v58, %v611_v28 }
 0x109   :  { %v430_v15 = vadd.f32 %v429_v8, %v428_v2  ;;  %v438_v31 = vadd.f32 %v437_v22, %v436_v12 }
 0x10a   :  { %v317_v17 = vadd.f32 %v316_v13, %v315_v6  ;;  %v327_v21 = vadd.f32 %v326_v16, %v325_v10  ;;  %v441_v24 = vrot.slane %v440_v18, 2 }
 0x10b   :  { %v431_v20 = vrot.slane %v430_v15, 1 }
 0x10c   :  { %v340_v23 = vcombine.low %v311_v11, %v317_v17  ;;  %v328_v27 = vrot.slane %v327_v21, 1  ;;  %v442_v29 = vadd.f32 %v441_v24, %v440_v18 }
 0x10d   :  { %v432_v26 = vadd.f32 %v431_v20, %v430_v15 }
 0x10e   :  { %v329_v30 = vadd.f32 %v328_v27, %v327_v21  ;;  %v443_v32 = vrot.slane %v442_v29, 1  ;;  %v362_v33 = vrot.slane %v340_v23, %v611_v28 }
 0x10f   :  { %v455_v9 = vcombine.low %v426_v19, %v432_v26 }
 0x110   :  { %v341_v34 = vcombine.low %v323_v25, %v329_v30  ;;  %v444_v35 = vadd.f32 %v443_v32, %v442_v29 }
 0x111   :  { %v477_v37 = vrot.slane %v455_v9, %v611_v28 }
 0x112   :  { %v369_v36 = vrot.slane %v341_v34, %v611_v28  ;;  %v456_v38 = vcombine.low %v438_v31, %v444_v35 }
 0x114   :  { %v371_v39 = vcombine.low %v362_v33, %v369_v36  ;;  %v484_v40 = vrot.slane %v456_v38, %v611_v28 }
 0x116   :  { %v385_v42 = vrot.slane %v371_v39, %v611_v28  ;;  %v486_v43 = vcombine.low %v477_v37, %v484_v40 }
 0x118   :  { %v386_v44 = vcombine.low %v378_v41, %v385_v42  ;;  %v500_v46 = vrot.slane %v486_v43, %v611_v28 }
 0x11a   :  { %388 = vst [vmem:[%s669_s3] sm:$0xff] %v386_v44  ;;  %v501_v47 = vcombine.low %v493_v45, %v500_v46 }
 0x11c   :  { %503 = vst [vmem:[%s670_s4] sm:$0xff] %v501_v47 }
 0x11d   :  { %516 = vsyncpa [#allocation3], 1 }

// kernel: tile.38
= control target key start
LH: loop header
LB: loop body
LE: loop exit
PB: predicated region body
PF: predicated region fallthrough
CT: control target
= control target key end

     0   :  { %s22_s0 = inlined_call_operand.vmem [shape: f32[32], index: 0, kind: input, shape index: {}]   ;;  %s23_s1 = inlined_call_operand.vmem [shape: f32[4,32], index: 1, kind: output, shape index: {}]  }
   0x1   :  { %v4_v0 = vld [vmem:[%s22_s0] ss:$0 sm:$0xff] }
   0x2   :  { %5 = vst [vmem:[%s23_s1] sm:$0xf] %v4_v0 }

// kernel: _lambda_.11
= control target key start
LH: loop header
LB: loop body
LE: loop exit
PB: predicated region body
PF: predicated region fallthrough
CT: control target
= control target key end

     0   :  { %vm365_vm0 = vcmask 523264   ;;  %s941_s1 = inlined_call_operand.vmem [shape: bf16[576,128], index: 1, kind: input, shape index: {}]   ;;  %s942_s0 = inlined_call_operand.vmem [shape: bf16[32,576], index: 0, kind: input, shape index: {}]   ;;  %s943_s2 = inlined_call_operand.vmem [shape: bf16[32,128], index: 2, kind: output, shape index: {0}]   ;;  %s944_s3 = inlined_call_operand.vmem [shape: f32[1,1,128], index: 3, kind: output, shape index: {1}]   ;;  %s945_s4 = inlined_call_operand.vmem [shape: f32[1,1,128], index: 4, kind: output, shape index: {2}]  }
   0x1   :  { %v716_v0 = vld [vmem:[%s941_s1 + $0x40] sm:$0xff]   ;;  %v720_v4 = vld [vmem:[%s941_s1 + $0x48] sm:$0xff]   ;;  %v724_v8 = vld [vmem:[%s941_s1 + $0x50] sm:$0xff]  }
   0x2   :  { %v717_v1 = vld [vmem:[%s941_s1 + $0xc0] sm:$0xff]   ;;  %642 = vmatprep.subr.bf16.mxu0 %v716_v0  ;;  %v721_v5 = vld [vmem:[%s941_s1 + $0xc8] sm:$0xff]   ;;  %v725_v9 = vld [vmem:[%s941_s1 + $0xd0] sm:$0xff]  }
   0x3   :  { %v718_v2 = vld [vmem:[%s941_s1] sm:$0xff]   ;;  %670 = vmatprep.subr.bf16.mxu1 %v717_v1  ;;  %v722_v6 = vld [vmem:[%s941_s1 + $0x8] sm:$0xff]   ;;  %v726_v10 = vld [vmem:[%s941_s1 + $0x10] sm:$0xff]  }
   0x4   :  { %v719_v3 = vld [vmem:[%s941_s1 + $0x80] sm:$0xff]   ;;  %643 = vmatpush3.bf16.msra.mxu0 %v718_v2  ;;  %v723_v7 = vld [vmem:[%s941_s1 + $0x88] sm:$0xff]   ;;  %v727_v11 = vld [vmem:[%s941_s1 + $0x90] sm:$0xff]  }
   0x5   :  { %671 = vmatpush3.bf16.msra.mxu1 %v719_v3  ;;  %644 = vmatprep.subr.bf16.mxu0 %v720_v4  ;;  %v728_v12 = vld [vmem:[%s941_s1 + $0x58] sm:$0xff]   ;;  %v732_v16 = vld [vmem:[%s941_s1 + $0x60] sm:$0xff]   ;;  %v736_v20 = vld [vmem:[%s941_s1 + $0x68] sm:$0xff]  }
   0x6   :  { %672 = vmatprep.subr.bf16.mxu1 %v721_v5  ;;  %v729_v13 = vld [vmem:[%s941_s1 + $0xd8] sm:$0xff]   ;;  %v733_v17 = vld [vmem:[%s941_s1 + $0xe0] sm:$0xff]   ;;  %v737_v21 = vld [vmem:[%s941_s1 + $0xe8] sm:$0xff]  }
   0x7   :  { %v730_v14 = vld [vmem:[%s941_s1 + $0x18] sm:$0xff]   ;;  %v734_v18 = vld [vmem:[%s941_s1 + $0x20] sm:$0xff]   ;;  %v738_v22 = vld [vmem:[%s941_s1 + $0x28] sm:$0xff]  }
   0x8   :  { %645 = vmatpush3.bf16.msra.mxu0 %v722_v6  ;;  %v731_v15 = vld [vmem:[%s941_s1 + $0x98] sm:$0xff]   ;;  %v735_v19 = vld [vmem:[%s941_s1 + $0xa0] sm:$0xff]   ;;  %v739_v23 = vld [vmem:[%s941_s1 + $0xa8] sm:$0xff]  }
   0x9   :  { %673 = vmatpush3.bf16.msra.mxu1 %v723_v7  ;;  %646 = vmatprep.subr.bf16.mxu0 %v724_v8  ;;  %v740_v24 = vld [vmem:[%s941_s1 + $0x70] sm:$0xff]   ;;  %v744_v28 = vld [vmem:[%s941_s1 + $0x78] sm:$0xff]   ;;  %v753_v35 = vld [vmem:[%s942_s0 + $0xc] ss:$20 sps:$4 sm:$0xff]  }
   0xa   :  { %674 = vmatprep.subr.bf16.mxu1 %v725_v9  ;;  %v741_v25 = vld [vmem:[%s941_s1 + $0xf0] sm:$0xff]   ;;  %v745_v29 = vld [vmem:[%s941_s1 + $0xf8] sm:$0xff]   ;;  %v754_v36 = vld [vmem:[%s941_s1 + $0x100] sm:$0xff]   ;;  %453 = vmatprep.mubr.bf16.mxu1 %v753_v35 }
   0xb   :  { %v742_v26 = vld [vmem:[%s941_s1 + $0x30] sm:$0xff]   ;;  %v746_v30 = vld [vmem:[%s941_s1 + $0x38] sm:$0xff]   ;;  %v755_v37 = vld [vmem:[%s941_s1 + $0x108] sm:$0xff]  }
   0xc   :  { %647 = vmatpush3.bf16.msra.mxu0 %v726_v10  ;;  %v743_v27 = vld [vmem:[%s941_s1 + $0xb0] sm:$0xff]   ;;  %v747_v31 = vld [vmem:[%s941_s1 + $0xb8] sm:$0xff]   ;;  %v756_v38 = vld [vmem:[%s942_s0 + $0x2c] ss:$20 sps:$4 sm:$0xff]  }
   0xd   :  { %675 = vmatpush3.bf16.msra.mxu1 %v727_v11  ;;  %648 = vmatprep.subr.bf16.mxu0 %v728_v12  ;;  %v748_v32 = vld [vmem:[%s942_s0] ss:$20 sps:$4 sm:$0xff]   ;;  %v750_v33 = vld [vmem:[%s942_s0 + $0x4] ss:$20 sps:$4 sm:$0xff]   ;;  %v751_v34 = vld [vmem:[%s942_s0 + $0x8] ss:$20 sps:$4 sm:$0xff]  }
   0xe   :  { %676 = vmatprep.subr.bf16.mxu1 %v729_v13  ;;  %404 = vmatprep.mubr.bf16.mxu0 %v750_v33  ;;  %v758_v39 = vld [vmem:[%s942_s0 + $0x34] ss:$20 sps:$4 sm:$0xff]   ;;  %v761_v42 = vld [vmem:[%s942_s0 + $0x30] ss:$20 sps:$4 sm:$0xff]   ;;  %v763_v44 = vld [vmem:[%s941_s1 + $0x118] sm:$0xff]  }
   0xf   :  { %v760_v40 = vld [vmem:[%s942_s0 + $0x28] ss:$20 sps:$4 sm:$0xff]   ;;  %v762_v41 = vld [vmem:[%s941_s1 + $0x110] sm:$0xff]   ;;  %v765_v45 = vld [vmem:[%s942_s0 + $0x38] ss:$20 sps:$4 sm:$0xff]  }
  0x10   :  { %649 = vmatpush3.bf16.msra.mxu0 %v730_v14  ;;  %v764_v43 = vld [vmem:[%s942_s0 + $0x10] ss:$20 sps:$4 sm:$0xff]  }
  0x11   :  { %677 = vmatpush3.bf16.msra.mxu1 %v731_v15  ;;  %650 = vmatprep.subr.bf16.mxu0 %v732_v16 }
  0x12   :  { %678 = vmatprep.subr.bf16.mxu1 %v733_v17 }
  0x14   :  { %651 = vmatpush3.bf16.msra.mxu0 %v734_v18 }
  0x15   :  { %679 = vmatpush3.bf16.msra.mxu1 %v735_v19  ;;  %652 = vmatprep.subr.bf16.mxu0 %v736_v20 }
  0x16   :  { %680 = vmatprep.subr.bf16.mxu1 %v737_v21 }
  0x18   :  { %653 = vmatpush3.bf16.msra.mxu0 %v738_v22 }
  0x19   :  { %681 = vmatpush3.bf16.msra.mxu1 %v739_v23  ;;  %654 = vmatprep.subr.bf16.mxu0 %v740_v24 }
  0x1a   :  { %682 = vmatprep.subr.bf16.mxu1 %v741_v25 }
  0x1c   :  { %655 = vmatpush3.bf16.msra.mxu0 %v742_v26 }
  0x1d   :  { %683 = vmatpush3.bf16.msra.mxu1 %v743_v27  ;;  %656 = vmatprep.subr.bf16.mxu0 %v744_v28 }
  0x1e   :  { %684 = vmatprep.subr.bf16.mxu1 %v745_v29 }
  0x20   :  { %657 = vmatpush3.bf16.msra.mxu0 %v746_v30 }
  0x21   :  { %685 = vmatpush3.bf16.msra.mxu1 %v747_v31  ;;  %704 = vmatprep.subr.bf16.mxu0 %v754_v36 }
  0x23   :  { %405 = vmatmul.mubr.bf16.vlgmr.msra.gmra.mrb[0].mxu0 %v748_v32 }
  0x24   :  { %454 = vmatmul.mubr.bf16.vlgmr.msra.gmra.mrb[0].mxu1 %v751_v34  ;;  %705 = vmatpush3.bf16.msra.mxu0 %v754_v36 }
  0x25   :  { %706 = vmatprep.subr.bf16.mxu0 %v755_v37  ;;  %412 = vmatprep.mubr.bf16.mxu0 %v756_v38 }
  0x26   :  { %461 = vmatprep.mubr.bf16.mxu1 %v758_v39 }
  0x28   :  { %707 = vmatpush3.bf16.msra.mxu0 %v755_v37 }
  0x29   :  { %708 = vmatprep.subr.bf16.mxu0 %v762_v41 }
  0x2b   :  { %413 = vmatmul.mubr.bf16.gmra.mrb[4].mxu0 %v760_v40 }
  0x2c   :  { %462 = vmatmul.mubr.bf16.gmra.mrb[4].mxu1 %v761_v42  ;;  %712 = vmatprep.mubr.msk.bf16.mxu0 %vm365_vm0, %v764_v43 }
  0x2d   :  { %709 = vmatpush3.bf16.msra.mxu0 %v762_v41 }
  0x2e   :  { %710 = vmatprep.subr.bf16.mxu0 %v763_v44 }
  0x31   :  { %711 = vmatpush3.bf16.msra.mxu0 %v763_v44 }
  0x34   :  { %713 = vmatmul.mubr.msk.bf16.vlgmr.msra.gmra.mrb[8].mxu0 %vm365_vm0, %v765_v45 }
  0xf6   :  { %v658_v46 = vpop.f32.mrb[0].mxu0 }
  0xf7   :  { %v686_v47 = vpop.f32.mrb[0].mxu1  ;;  %v659_v48 = vpop.f32.mrb[1].mxu0 }
  0xf8   :  { %v660_v49 = vadd.f32 %v659_v48, %v658_v46  ;;  %v687_v50 = vpop.f32.mrb[1].mxu1  ;;  %v661_v51 = vpop.f32.mrb[2].mxu0 }
  0xf9   :  { %v688_v52 = vadd.f32 %v687_v50, %v686_v47  ;;  %v689_v53 = vpop.f32.mrb[2].mxu1  ;;  %v662_v54 = vpop.f32.mrb[3].mxu0 }
  0xfa   :  { %v663_v55 = vadd.f32 %v662_v54, %v661_v51  ;;  %v690_v56 = vpop.f32.mrb[3].mxu1 }
  0xfb   :  { %v691_v57 = vadd.f32 %v690_v56, %v689_v53  ;;  %v456_v58 = vadd.f32 %v688_v52, %v660_v49 }
  0xfd   :  { %v459_v59 = vadd.f32 %v691_v57, %v663_v55 }
  0xfe   :  { %v664_v60 = vpop.f32.mrb[4].mxu0 }
  0xff   :  { %v692_v61 = vpop.f32.mrb[4].mxu1  ;;  %v665_v62 = vpop.f32.mrb[5].mxu0 }
 0x100   :  { %v666_v63 = vadd.f32 %v665_v62, %v664_v60  ;;  %v693_v0 = vpop.f32.mrb[5].mxu1  ;;  %v667_v1 = vpop.f32.mrb[6].mxu0 }
 0x101   :  { %v694_v2 = vadd.f32 %v693_v0, %v692_v61  ;;  %v695_v3 = vpop.f32.mrb[6].mxu1  ;;  %v668_v4 = vpop.f32.mrb[7].mxu0 }
 0x102   :  { %v669_v5 = vadd.f32 %v668_v4, %v667_v1  ;;  %v696_v6 = vpop.f32.mrb[7].mxu1 }
 0x103   :  { %v697_v7 = vadd.f32 %v696_v6, %v695_v3  ;;  %v464_v8 = vadd.f32 %v694_v2, %v666_v63 }
 0x105   :  { %v467_v9 = vadd.f32 %v697_v7, %v669_v5 }
 0x107   :  { %v714_v10 = vpop.f32.mrb[8].mxu0 }
 0x108   :  { %v513_v11 = vadd.f32 %v714_v10, %v464_v8  ;;  %v504_v12 = vpop.f32.mrb[9].mxu0 }
 0x109   :  { %v505_v13 = vadd.f32 %v504_v12, %v456_v58  ;;  %v715_v14 = vpop.f32.mrb[10].mxu0 }
 0x10a   :  { %v516_v15 = vadd.f32 %v715_v14, %v467_v9  ;;  %v507_v16 = vpop.f32.mrb[11].mxu0  ;;  %v551_v23 = vmul.f32 %v513_v11, %v513_v11 }
 0x10b   :  { %v508_v17 = vadd.f32 %v507_v16, %v459_v59  ;;  %v549_v19 = vmul.f32 %v505_v13, %v505_v13 }
 0x10c   :  { %v639_v18 = vpack.c.bf16 %v516_v15, %v513_v11  ;;  %v552_v26 = vmul.f32 %v516_v15, %v516_v15 }
 0x10d   :  { %v634_v20 = vpack.c.bf16 %v508_v17, %v505_v13  ;;  %v539_v21 = vadd.f32 %v508_v17, %v505_v13  ;;  %v550_v22 = vmul.f32 %v508_v17, %v508_v17 }
 0x10e   :  { %641 = vst [vmem:[%s943_s2 + $0x8] sm:$0xff] %v639_v18  }
 0x10f   :  { %635 = vst [vmem:[%s943_s2] sm:$0xff] %v634_v20   ;;  %v540_v24 = vadd.f32 %v539_v21, %v513_v11  ;;  %v553_v25 = vadd.f32 %v550_v22, %v549_v19 }
 0x111   :  { %v541_v27 = vadd.f32 %v540_v24, %v516_v15  ;;  %v554_v28 = vadd.f32 %v553_v25, %v551_v23 }
 0x113   :  { %v542_v29 = vrot.slane %v541_v27, 4  ;;  %v555_v30 = vadd.f32 %v554_v28, %v552_v26 }
 0x115   :  { %v543_v31 = vadd.f32 %v542_v29, %v541_v27  ;;  %v556_v32 = vrot.slane %v555_v30, 4 }
 0x117   :  { %v544_v33 = vrot.slane %v543_v31, 2  ;;  %v557_v34 = vadd.f32 %v556_v32, %v555_v30 }
 0x119   :  { %v545_v35 = vadd.f32 %v544_v33, %v543_v31  ;;  %v558_v36 = vrot.slane %v557_v34, 2 }
 0x11b   :  { %v546_v37 = vrot.slane %v545_v35, 1  ;;  %v559_v38 = vadd.f32 %v558_v36, %v557_v34 }
 0x11d   :  { %v547_v39 = vadd.f32 %v546_v37, %v545_v35  ;;  %v560_v40 = vrot.slane %v559_v38, 1 }
 0x11f   :  { %548 = vst [vmem:[%s944_s3] sm:$0x1] %v547_v39  ;;  %v561_v41 = vadd.f32 %v560_v40, %v559_v38 }
 0x121   :  { %562 = vst [vmem:[%s945_s4] sm:$0x1] %v561_v41 }

// kernel: _lambda_.12
= control target key start
LH: loop header
LB: loop body
LE: loop exit
PB: predicated region body
PF: predicated region fallthrough
CT: control target
= control target key end

     0   :  { %s140_s0 = inlined_call_operand.vmem [shape: bf16[32,128], index: 0, kind: input, shape index: {}]   ;;  %s141_s1 = inlined_call_operand.vmem [shape: f32[1,128], index: 1, kind: input, shape index: {}]   ;;  %s142_s2 = inlined_call_operand.vmem [shape: f32[1,128], index: 2, kind: input, shape index: {}]   ;;  %s143_s3 = inlined_call_operand.vmem [shape: bf16[32,128], index: 3, kind: output, shape index: {}]  }
   0x1   :  { %v83_v0 = vld [vmem:[%s140_s0] sm:$0xff]   ;;  %v100_v4 = vld [vmem:[%s140_s0 + $0x8] sm:$0xff]  }
   0x2   :  { %v72_v1 = vld [vmem:[%s141_s1] ss:$0 sm:$0xff]  ;;  %v84_v2 = vunpack.c.l.bf16 %v83_v0  ;;  %v85_v3 = vunpack.c.h.bf16 %v83_v0  ;;  %v88_v6 = vunpack.c.l.bf16 %v100_v4  ;;  %v89_v7 = vunpack.c.h.bf16 %v100_v4 }
   0x3   :  { %v73_v5 = vld [vmem:[%s142_s2] ss:$0 sm:$0xff] }
   0x4   :  { %v29_v8 = vmul.f32 %v84_v2, %v72_v1  ;;  %v30_v9 = vmul.f32 %v85_v3, %v72_v1  ;;  %v31_v10 = vmul.f32 %v88_v6, %v72_v1  ;;  %v32_v11 = vmul.f32 %v89_v7, %v72_v1 }
   0x6   :  { %v40_v12 = vadd.f32 %v73_v5, %v29_v8  ;;  %v41_v13 = vadd.f32 %v73_v5, %v30_v9  ;;  %v42_v14 = vadd.f32 %v73_v5, %v31_v10  ;;  %v43_v15 = vadd.f32 %v73_v5, %v32_v11 }
   0x8   :  { %v44_v16 = vmax.f32 %v40_v12, 0.0  ;;  %v45_v17 = vmax.f32 %v41_v13, 0.0  ;;  %v46_v18 = vmax.f32 %v42_v14, 0.0  ;;  %v47_v19 = vmax.f32 %v43_v15, 0.0 }
   0xa   :  { %v93_v20 = vpack.c.bf16 %v45_v17, %v44_v16  ;;  %v98_v21 = vpack.c.bf16 %v47_v19, %v46_v18 }
   0xc   :  { %94 = vst [vmem:[%s143_s3] sm:$0xff] %v93_v20   ;;  %101 = vst [vmem:[%s143_s3 + $0x8] sm:$0xff] %v98_v21  }

// kernel: _lambda_.13
= control target key start
LH: loop header
LB: loop body
LE: loop exit
PB: predicated region body
PF: predicated region fallthrough
CT: control target
= control target key end

     0   :  { %vm311_vm0 = vcmask 261120   ;;  %s1172_s1 = inlined_call_operand.vmem [shape: bf16[288,128], index: 1, kind: input, shape index: {}]   ;;  %s1173_s0 = inlined_call_operand.vmem [shape: bf16[128,288], index: 0, kind: input, shape index: {}]   ;;  %s1174_s2 = inlined_call_operand.vmem [shape: bf16[128,128], index: 2, kind: output, shape index: {0}]   ;;  %s1175_s3 = inlined_call_operand.vmem [shape: f32[1,1,128], index: 3, kind: output, shape index: {1}]   ;;  %s1176_s4 = inlined_call_operand.vmem [shape: f32[1,1,128], index: 4, kind: output, shape index: {2}]  }
   0x1   :  { %v921_v0 = vld [vmem:[%s1172_s1 + $0x40] sm:$0xff]   ;;  %v923_v2 = vld [vmem:[%s1172_s1 + $0x48] sm:$0xff]   ;;  %v925_v4 = vld [vmem:[%s1172_s1 + $0x50] sm:$0xff]  }
   0x2   :  { %v922_v1 = vld [vmem:[%s1172_s1] sm:$0xff]   ;;  %811 = vmatprep.subr.bf16.mxu0 %v921_v0  ;;  %905 = vmatprep.subr.bf16.mxu1 %v921_v0  ;;  %v924_v3 = vld [vmem:[%s1172_s1 + $0x8] sm:$0xff]   ;;  %v926_v5 = vld [vmem:[%s1172_s1 + $0x10] sm:$0xff]  }
   0x3   :  { %812 = vmatpush3.bf16.msra.mxu0 %v922_v1  ;;  %913 = vmatpush3.bf16.msra.mxu1 %v922_v1  ;;  %v927_v6 = vld [vmem:[%s1172_s1 + $0x58] sm:$0xff]   ;;  %v929_v8 = vld [vmem:[%s1172_s1 + $0x60] sm:$0xff]   ;;  %v931_v10 = vld [vmem:[%s1172_s1 + $0x68] sm:$0xff]  }
   0x4   :  { %813 = vmatprep.subr.bf16.mxu0 %v923_v2  ;;  %906 = vmatprep.subr.bf16.mxu1 %v923_v2  ;;  %v928_v7 = vld [vmem:[%s1172_s1 + $0x18] sm:$0xff]   ;;  %v930_v9 = vld [vmem:[%s1172_s1 + $0x20] sm:$0xff]   ;;  %v932_v13 = vld [vmem:[%s1172_s1 + $0x28] sm:$0xff]  }
   0x5   :  { %v939_v11 = vld [vmem:[%s1173_s0 + $0x4] ss:$12 sps:$4 sm:$0xff]   ;;  %v942_v12 = vld [vmem:[%s1173_s0 + $0x94] ss:$12 sps:$4 sm:$0xff]   ;;  %v935_v16 = vld [vmem:[%s1172_s1 + $0x78] sm:$0xff]  }
   0x6   :  { %v933_v14 = vld [vmem:[%s1172_s1 + $0x70] sm:$0xff]   ;;  %368 = vmatprep.mubr.bf16.mxu0 %v939_v11  ;;  %416 = vmatprep.mubr.bf16.mxu1 %v942_v12  ;;  %v936_v17 = vld [vmem:[%s1172_s1 + $0x38] sm:$0xff]   ;;  %v937_v18 = vld [vmem:[%s1173_s0] ss:$12 sps:$4 sm:$0xff]  }
   0x7   :  { %814 = vmatpush3.bf16.msra.mxu0 %v924_v3  ;;  %914 = vmatpush3.bf16.msra.mxu1 %v924_v3  ;;  %v934_v15 = vld [vmem:[%s1172_s1 + $0x30] sm:$0xff]   ;;  %v943_v19 = vld [vmem:[%s1172_s1 + $0x80] sm:$0xff]   ;;  %v944_v21 = vld [vmem:[%s1173_s0 + $0x1c] ss:$12 sps:$4 sm:$0xff]  }
   0x8   :  { %815 = vmatprep.subr.bf16.mxu0 %v925_v4  ;;  %907 = vmatprep.subr.bf16.mxu1 %v925_v4  ;;  %v940_v20 = vld [vmem:[%s1173_s0 + $0x90] ss:$12 sps:$4 sm:$0xff]   ;;  %v946_v22 = vld [vmem:[%s1173_s0 + $0xac] ss:$12 sps:$4 sm:$0xff]   ;;  %v949_v25 = vld [vmem:[%s1173_s0 + $0xa8] ss:$12 sps:$4 sm:$0xff]  }
   0x9   :  { %v950_v23 = vld [vmem:[%s1172_s1 + $0x88] sm:$0xff]   ;;  %v948_v24 = vld [vmem:[%s1173_s0 + $0x18] ss:$12 sps:$4 sm:$0xff]   ;;  %v951_v26 = vld [vmem:[%s1173_s0 + $0x34] ss:$12 sps:$4 sm:$0xff]  }
   0xa   :  { %v953_v27 = vld [vmem:[%s1173_s0 + $0x8] ss:$12 sps:$4 sm:$0xff]   ;;  %v954_v28 = vld [vmem:[%s1173_s0 + $0x30] ss:$12 sps:$4 sm:$0xff]   ;;  %v955_v29 = vld [vmem:[%s1173_s0 + $0x20] ss:$12 sps:$4 sm:$0xff]  }
   0xb   :  { %816 = vmatpush3.bf16.msra.mxu0 %v926_v5  ;;  %915 = vmatpush3.bf16.msra.mxu1 %v926_v5  ;;  %v956_v30 = vld [vmem:[%s1173_s0 + $0x4c] ss:$12 sps:$4 sm:$0xff]   ;;  %v959_v32 = vld [vmem:[%s1173_s0 + $0x48] ss:$12 sps:$4 sm:$0xff]   ;;  %v960_v33 = vld [vmem:[%s1173_s0 + $0x50] ss:$12 sps:$4 sm:$0xff]  }
   0xc   :  { %817 = vmatprep.subr.bf16.mxu0 %v927_v6  ;;  %908 = vmatprep.subr.bf16.mxu1 %v927_v6  ;;  %v958_v31 = vld [vmem:[%s1173_s0 + $0x38] ss:$12 sps:$4 sm:$0xff]   ;;  %v963_v35 = vld [vmem:[%s1173_s0 + $0x68] ss:$12 sps:$4 sm:$0xff]   ;;  %v964_v36 = vld [vmem:[%s1173_s0 + $0x60] ss:$12 sps:$4 sm:$0xff]  }
   0xd   :  { %v961_v34 = vld [vmem:[%s1173_s0 + $0x64] ss:$12 sps:$4 sm:$0xff]   ;;  %v965_v37 = vld [vmem:[%s1173_s0 + $0x80] ss:$12 sps:$4 sm:$0xff]   ;;  %v966_v38 = vld [vmem:[%s1173_s0 + $0x7c] ss:$12 sps:$4 sm:$0xff]  }
   0xe   :  { %v968_v39 = vld [vmem:[%s1173_s0 + $0x98] ss:$12 sps:$4 sm:$0xff]   ;;  %v970_v41 = vld [vmem:[%s1173_s0 + $0xb0] ss:$12 sps:$4 sm:$0xff]  }
   0xf   :  { %818 = vmatpush3.bf16.msra.mxu0 %v928_v7  ;;  %916 = vmatpush3.bf16.msra.mxu1 %v928_v7  ;;  %v969_v40 = vld [vmem:[%s1173_s0 + $0x78] ss:$12 sps:$4 sm:$0xff]  }
  0x10   :  { %819 = vmatprep.subr.bf16.mxu0 %v929_v8  ;;  %909 = vmatprep.subr.bf16.mxu1 %v929_v8 }
  0x13   :  { %820 = vmatpush3.bf16.msra.mxu0 %v930_v9  ;;  %917 = vmatpush3.bf16.msra.mxu1 %v930_v9 }
  0x14   :  { %821 = vmatprep.subr.bf16.mxu0 %v931_v10  ;;  %910 = vmatprep.subr.bf16.mxu1 %v931_v10 }
  0x17   :  { %822 = vmatpush3.bf16.msra.mxu0 %v932_v13  ;;  %918 = vmatpush3.bf16.msra.mxu1 %v932_v13 }
  0x18   :  { %823 = vmatprep.subr.bf16.mxu0 %v933_v14  ;;  %911 = vmatprep.subr.bf16.mxu1 %v933_v14 }
  0x1b   :  { %824 = vmatpush3.bf16.msra.mxu0 %v934_v15  ;;  %919 = vmatpush3.bf16.msra.mxu1 %v934_v15 }
  0x1c   :  { %825 = vmatprep.subr.bf16.mxu0 %v935_v16  ;;  %912 = vmatprep.subr.bf16.mxu1 %v935_v16 }
  0x1f   :  { %826 = vmatpush3.bf16.msra.mxu0 %v936_v17  ;;  %920 = vmatpush3.bf16.msra.mxu1 %v936_v17 }
  0x20   :  { %885 = vmatprep.subr.bf16.mxu1 %v943_v19 }
  0x22   :  { %369 = vmatmul.mubr.bf16.vlgmr.msra.gmra.mrb[0].mxu0 %v937_v18  ;;  %417 = vmatmul.mubr.bf16.vlgmr.msra.gmra.mrb[0].mxu1 %v940_v20 }
  0x23   :  { %886 = vmatpush3.bf16.msra.mxu1 %v943_v19  ;;  %376 = vmatprep.mubr.bf16.mxu0 %v944_v21 }
  0x24   :  { %424 = vmatprep.mubr.bf16.mxu1 %v946_v22  ;;  %887 = vmatprep.subr.bf16.mxu1 %v950_v23 }
  0x27   :  { %888 = vmatpush3.bf16.msra.mxu1 %v950_v23 }
  0x2a   :  { %377 = vmatmul.mubr.bf16.gmra.mrb[4].mxu0 %v948_v24  ;;  %425 = vmatmul.mubr.bf16.gmra.mrb[4].mxu1 %v949_v25 }
  0x2b   :  { %384 = vmatprep.mubr.bf16.mxu0 %v951_v26  ;;  %889 = vmatprep.mubr.msk.bf16.mxu1 %vm311_vm0, %v953_v27 }
  0x32   :  { %385 = vmatmul.mubr.bf16.gmra.mrb[8].mxu0 %v954_v28  ;;  %890 = vmatmul.mubr.msk.bf16.vlgmr.msra.gmra.mrb[8].mxu1 %vm311_vm0, %v955_v29 }
  0x33   :  { %392 = vmatprep.mubr.bf16.mxu0 %v956_v30  ;;  %893 = vmatprep.mubr.msk.bf16.mxu1 %vm311_vm0, %v958_v31 }
  0x3a   :  { %393 = vmatmul.mubr.bf16.gmra.mrb[12].mxu0 %v959_v32  ;;  %894 = vmatmul.mubr.msk.bf16.gmra.mrb[12].mxu1 %vm311_vm0, %v960_v33 }
  0x3b   :  { %400 = vmatprep.mubr.bf16.mxu0 %v961_v34  ;;  %897 = vmatprep.mubr.msk.bf16.mxu1 %vm311_vm0, %v963_v35 }
  0x42   :  { %401 = vmatmul.mubr.bf16.gmra.mrb[16].mxu0 %v964_v36  ;;  %898 = vmatmul.mubr.msk.bf16.gmra.mrb[16].mxu1 %vm311_vm0, %v965_v37 }
  0x43   :  { %408 = vmatprep.mubr.bf16.mxu0 %v966_v38  ;;  %901 = vmatprep.mubr.msk.bf16.mxu1 %vm311_vm0, %v968_v39 }
  0x4a   :  { %409 = vmatmul.mubr.bf16.gmra.mrb[20].mxu0 %v969_v40  ;;  %902 = vmatmul.mubr.msk.bf16.gmra.mrb[20].mxu1 %vm311_vm0, %v970_v41 }
  0xf5   :  { %v827_v42 = vpop.f32.mrb[0].mxu0  ;;  %v863_v43 = vpop.f32.mrb[0].mxu1 }
  0xf6   :  { %v828_v44 = vpop.f32.mrb[1].mxu0  ;;  %v864_v45 = vpop.f32.mrb[1].mxu1 }
  0xf7   :  { %v829_v46 = vadd.f32 %v828_v44, %v827_v42  ;;  %v830_v47 = vpop.f32.mrb[2].mxu0  ;;  %v1130_v48 = vadd.f32 %v864_v45, %v863_v43  ;;  %v866_v49 = vpop.f32.mrb[2].mxu1 }
  0xf8   :  { %v831_v50 = vpop.f32.mrb[3].mxu0  ;;  %v867_v51 = vpop.f32.mrb[3].mxu1 }
  0xf9   :  { %v832_v52 = vadd.f32 %v831_v50, %v830_v47  ;;  %v1132_v53 = vadd.f32 %v867_v51, %v866_v49 }
  0xfd   :  { %v833_v54 = vpop.f32.mrb[4].mxu0  ;;  %v869_v55 = vpop.f32.mrb[4].mxu1 }
  0xfe   :  { %v834_v56 = vpop.f32.mrb[5].mxu0  ;;  %v870_v57 = vpop.f32.mrb[5].mxu1 }
  0xff   :  { %v835_v58 = vadd.f32 %v834_v56, %v833_v54  ;;  %v836_v59 = vpop.f32.mrb[6].mxu0  ;;  %v1134_v60 = vadd.f32 %v870_v57, %v869_v55  ;;  %v872_v61 = vpop.f32.mrb[6].mxu1 }
 0x100   :  { %v837_v62 = vpop.f32.mrb[7].mxu0  ;;  %v873_v63 = vpop.f32.mrb[7].mxu1 }
 0x101   :  { %v838_v0 = vadd.f32 %v837_v62, %v836_v59  ;;  %v1136_v1 = vadd.f32 %v873_v63, %v872_v61 }
 0x105   :  { %v839_v2 = vpop.f32.mrb[8].mxu0  ;;  %v891_v3 = vpop.f32.mrb[8].mxu1 }
 0x106   :  { %v476_v4 = vadd.f32 %v891_v3, %v835_v58  ;;  %v840_v5 = vpop.f32.mrb[9].mxu0  ;;  %v467_v6 = vpop.f32.mrb[9].mxu1 }
 0x107   :  { %v841_v7 = vadd.f32 %v840_v5, %v839_v2  ;;  %v468_v8 = vadd.f32 %v829_v46, %v467_v6  ;;  %v842_v9 = vpop.f32.mrb[10].mxu0  ;;  %v892_v10 = vpop.f32.mrb[10].mxu1 }
 0x108   :  { %v479_v11 = vadd.f32 %v892_v10, %v838_v0  ;;  %v843_v12 = vpop.f32.mrb[11].mxu0  ;;  %v470_v13 = vpop.f32.mrb[11].mxu1  ;;  %v634_v21 = vmul.f32 %v476_v4, %v476_v4 }
 0x109   :  { %v844_v14 = vadd.f32 %v843_v12, %v842_v9  ;;  %v471_v15 = vadd.f32 %v832_v52, %v470_v13  ;;  %v632_v17 = vmul.f32 %v468_v8, %v468_v8 }
 0x10a   :  { %v772_v16 = vpack.c.bf16 %v479_v11, %v476_v4  ;;  %v635_v26 = vmul.f32 %v479_v11, %v479_v11 }
 0x10b   :  { %v767_v18 = vpack.c.bf16 %v471_v15, %v468_v8  ;;  %v610_v19 = vadd.f32 %v471_v15, %v468_v8  ;;  %v633_v20 = vmul.f32 %v471_v15, %v471_v15 }
 0x10c   :  { %804 = vst [vmem:[%s1174_s2 + $0x8] sm:$0xff] %v772_v16  }
 0x10d   :  { %768 = vst [vmem:[%s1174_s2] sm:$0xff] %v767_v18   ;;  %v611_v22 = vadd.f32 %v610_v19, %v476_v4  ;;  %v648_v23 = vadd.f32 %v633_v20, %v632_v17  ;;  %v845_v24 = vpop.f32.mrb[12].mxu0  ;;  %v895_v25 = vpop.f32.mrb[12].mxu1 }
 0x10e   :  { %v846_v27 = vpop.f32.mrb[13].mxu0  ;;  %v483_v28 = vpop.f32.mrb[13].mxu1 }
 0x10f   :  { %v649_v29 = vadd.f32 %v648_v23, %v634_v21  ;;  %v847_v30 = vadd.f32 %v846_v27, %v845_v24  ;;  %v484_v31 = vadd.f32 %v841_v7, %v483_v28  ;;  %v612_v32 = vadd.f32 %v611_v22, %v479_v11  ;;  %v848_v33 = vpop.f32.mrb[14].mxu0  ;;  %v896_v34 = vpop.f32.mrb[14].mxu1 }
 0x110   :  { %v849_v35 = vpop.f32.mrb[15].mxu0  ;;  %v486_v36 = vpop.f32.mrb[15].mxu1 }
 0x111   :  { %v492_v37 = vadd.f32 %v895_v25, %v847_v30  ;;  %v613_v38 = vadd.f32 %v612_v32, %v484_v31  ;;  %v636_v39 = vmul.f32 %v484_v31, %v484_v31  ;;  %v650_v40 = vadd.f32 %v649_v29, %v635_v26 }
 0x112   :  { %v850_v41 = vadd.f32 %v849_v35, %v848_v33  ;;  %v487_v42 = vadd.f32 %v844_v14, %v486_v36 }
 0x113   :  { %v651_v43 = vadd.f32 %v650_v40, %v636_v39  ;;  %v638_v51 = vmul.f32 %v492_v37, %v492_v37 }
 0x114   :  { %v495_v44 = vadd.f32 %v896_v34, %v850_v41  ;;  %v777_v45 = vpack.c.bf16 %v487_v42, %v484_v31  ;;  %v614_v46 = vadd.f32 %v613_v38, %v487_v42  ;;  %v637_v47 = vmul.f32 %v487_v42, %v487_v42 }
 0x115   :  { %v851_v49 = vpop.f32.mrb[16].mxu0  ;;  %v899_v50 = vpop.f32.mrb[16].mxu1 }
 0x116   :  { %v782_v52 = vpack.c.bf16 %v495_v44, %v492_v37  ;;  %805 = vst [vmem:[%s1174_s2 + $0x10] sm:$0xff] %v777_v45   ;;  %v615_v54 = vadd.f32 %v614_v46, %v492_v37  ;;  %v652_v55 = vadd.f32 %v651_v43, %v637_v47  ;;  %v852_v56 = vpop.f32.mrb[17].mxu0  ;;  %v499_v57 = vpop.f32.mrb[17].mxu1  ;;  %v639_v62 = vmul.f32 %v495_v44, %v495_v44 }
 0x117   :  { %v853_v58 = vadd.f32 %v852_v56, %v851_v49  ;;  %v854_v59 = vpop.f32.mrb[18].mxu0  ;;  %v900_v61 = vpop.f32.mrb[18].mxu1 }
 0x118   :  { %806 = vst [vmem:[%s1174_s2 + $0x18] sm:$0xff] %v782_v52   ;;  %v653_v63 = vadd.f32 %v652_v55, %v638_v51  ;;  %v855_v0 = vpop.f32.mrb[19].mxu0  ;;  %v616_v2 = vadd.f32 %v615_v54, %v495_v44  ;;  %v502_v3 = vpop.f32.mrb[19].mxu1 }
 0x119   :  { %v856_v4 = vadd.f32 %v855_v0, %v854_v59  ;;  %v500_v5 = vadd.f32 %v853_v58, %v499_v57 }
 0x11a   :  { %v654_v6 = vadd.f32 %v653_v63, %v639_v62 }
 0x11b   :  { %v617_v7 = vadd.f32 %v616_v2, %v500_v5  ;;  %v640_v8 = vmul.f32 %v500_v5, %v500_v5  ;;  %v503_v9 = vadd.f32 %v856_v4, %v502_v3 }
 0x11d   :  { %v655_v10 = vadd.f32 %v654_v6, %v640_v8  ;;  %v787_v11 = vpack.c.bf16 %v503_v9, %v500_v5  ;;  %v618_v12 = vadd.f32 %v617_v7, %v503_v9  ;;  %v641_v13 = vmul.f32 %v503_v9, %v503_v9  ;;  %v857_v14 = vpop.f32.mrb[20].mxu0  ;;  %v903_v15 = vpop.f32.mrb[20].mxu1 }
 0x11e   :  { %v524_v16 = vadd.f32 %v903_v15, %v1134_v60  ;;  %v858_v17 = vpop.f32.mrb[21].mxu0  ;;  %v515_v18 = vpop.f32.mrb[21].mxu1 }
 0x11f   :  { %807 = vst [vmem:[%s1174_s2 + $0x20] sm:$0xff] %v787_v11   ;;  %v656_v19 = vadd.f32 %v655_v10, %v641_v13  ;;  %v859_v20 = vadd.f32 %v858_v17, %v857_v14  ;;  %v516_v21 = vadd.f32 %v1130_v48, %v515_v18  ;;  %v860_v22 = vpop.f32.mrb[22].mxu0  ;;  %v904_v23 = vpop.f32.mrb[22].mxu1 }
 0x120   :  { %v527_v24 = vadd.f32 %v904_v23, %v1136_v1  ;;  %v861_v25 = vpop.f32.mrb[23].mxu0  ;;  %v518_v26 = vpop.f32.mrb[23].mxu1  ;;  %v646_v41 = vmul.f32 %v524_v16, %v524_v16 }
 0x121   :  { %v508_v27 = vadd.f32 %v899_v50, %v859_v20  ;;  %v862_v28 = vadd.f32 %v861_v25, %v860_v22  ;;  %v519_v60 = vadd.f32 %v1132_v53, %v518_v26  ;;  %v644_v1 = vmul.f32 %v516_v21, %v516_v21 }
 0x122   :  { %v802_v29 = vpack.c.bf16 %v527_v24, %v524_v16  ;;  %v647_v44 = vmul.f32 %v527_v24, %v527_v24 }
 0x123   :  { %v619_v30 = vadd.f32 %v618_v12, %v508_v27  ;;  %v642_v31 = vmul.f32 %v508_v27, %v508_v27  ;;  %v511_v32 = vadd.f32 %v900_v61, %v862_v28  ;;  %v797_v33 = vpack.c.bf16 %v519_v60, %v516_v21 }
 0x124   :  { %810 = vst [vmem:[%s1174_s2 + $0x38] sm:$0xff] %v802_v29   ;;  %v645_v39 = vmul.f32 %v519_v60, %v519_v60 }
 0x125   :  { %v657_v48 = vadd.f32 %v656_v19, %v642_v31  ;;  %v792_v34 = vpack.c.bf16 %v511_v32, %v508_v27  ;;  %v620_v35 = vadd.f32 %v619_v30, %v511_v32  ;;  %v643_v36 = vmul.f32 %v511_v32, %v511_v32  ;;  %809 = vst [vmem:[%s1174_s2 + $0x30] sm:$0xff] %v797_v33  }
 0x127   :  { %808 = vst [vmem:[%s1174_s2 + $0x28] sm:$0xff] %v792_v34   ;;  %v658_v53 = vadd.f32 %v657_v48, %v643_v36  ;;  %v621_v37 = vadd.f32 %v620_v35, %v516_v21 }
 0x129   :  { %v622_v38 = vadd.f32 %v621_v37, %v519_v60  ;;  %v659_v40 = vadd.f32 %v658_v53, %v644_v1 }
 0x12b   :  { %v623_v42 = vadd.f32 %v622_v38, %v524_v16  ;;  %v660_v43 = vadd.f32 %v659_v40, %v645_v39 }
 0x12d   :  { %v624_v45 = vadd.f32 %v623_v42, %v527_v24  ;;  %v661_v46 = vadd.f32 %v660_v43, %v646_v41 }
 0x12f   :  { %v625_v47 = vrot.slane %v624_v45, 4  ;;  %v662_v49 = vadd.f32 %v661_v46, %v647_v44 }
 0x131   :  { %v626_v50 = vadd.f32 %v625_v47, %v624_v45  ;;  %v663_v51 = vrot.slane %v662_v49, 4 }
 0x133   :  { %v627_v52 = vrot.slane %v626_v50, 2  ;;  %v664_v54 = vadd.f32 %v663_v51, %v662_v49 }
 0x135   :  { %v628_v55 = vadd.f32 %v627_v52, %v626_v50  ;;  %v665_v56 = vrot.slane %v664_v54, 2 }
 0x137   :  { %v629_v57 = vrot.slane %v628_v55, 1  ;;  %v666_v58 = vadd.f32 %v665_v56, %v664_v54 }
 0x139   :  { %v630_v59 = vadd.f32 %v629_v57, %v628_v55  ;;  %v667_v61 = vrot.slane %v666_v58, 1 }
 0x13b   :  { %631 = vst [vmem:[%s1175_s3] sm:$0x1] %v630_v59  ;;  %v668_v62 = vadd.f32 %v667_v61, %v666_v58 }
 0x13d   :  { %669 = vst [vmem:[%s1176_s4] sm:$0x1] %v668_v62 }

// kernel: tile.53
= control target key start
LH: loop header
LB: loop body
LE: loop exit
PB: predicated region body
PF: predicated region fallthrough
CT: control target
= control target key end

     0   :  { %s22_s0 = inlined_call_operand.vmem [shape: f32[16], index: 0, kind: input, shape index: {}]   ;;  %s23_s1 = inlined_call_operand.vmem [shape: f32[4,16], index: 1, kind: output, shape index: {}]  }
   0x1   :  { %v4_v0 = vld [vmem:[%s22_s0] ss:$0 sm:$0xff] }
   0x2   :  { %5 = vst [vmem:[%s23_s1] sm:$0xf] %v4_v0 }

// kernel: tile.54
= control target key start
LH: loop header
LB: loop body
LE: loop exit
PB: predicated region body
PF: predicated region fallthrough
CT: control target
= control target key end

     0   :  { %vm7_vm0 = vcmask 130048   ;;  %s37_s8 = smov 16   ;;  %s38_s9 = smov 32   ;;  %vm13_vm1 = vcmask 523648   ;;  %vm19_vm2 = vcmask 392448   ;;  %vm25_vm3 = vcmask 261248   ;;  %s55_s0 = inlined_call_operand.vmem [shape: f32[4,16], index: 0, kind: input, shape index: {}]   ;;  %s56_s1 = inlined_call_operand.vmem [shape: f32[64], index: 1, kind: output, shape index: {}]  }
   0x1   :  { %v4_v0 = vld [vmem:[%s55_s0] sm:$0xf]  ;;  %s36_s0 = smov 48  }
   0x2   :  { %5 = vst [vmem:[#allocation1] sm:$0xf] %v4_v0 }
   0x9   :  { %v10_v1 = vld [vmem:[#allocation1 + $0x3] sm:$0x1]   ;;  %v22_v2 = vld [vmem:[#allocation1 + $0x1] sm:$0x1]   ;;  %v6_v3 = vld [vmem:[#allocation1] sm:$0x1]  }
   0xa   :  { %11 = vrot.lane.b32.xlu0 %v10_v1, %s36_s0  ;;  %23 = vrot.lane.b32.xlu1 %v22_v2, %s37_s8  ;;  %v16_v4 = vld [vmem:[#allocation1 + $0x2] sm:$0x1]   ;;  %8 = vst.msk [vmem:[#allocation0] sm:$0x1] %vm7_vm0, %v6_v3  }
   0xe   :  { %17 = vrot.lane.b32.xlu0 %v16_v4, %s38_s9 }
  0x7c   :  { %v12_v5 = vpop.permute.xlu0 %11   ;;  %v24_v6 = vpop.permute.xlu1 %23  }
  0x7d   :  { %14 = vst.msk [vmem:[#allocation0] sm:$0x1] %vm13_vm1, %v12_v5  }
  0x80   :  { %v18_v7 = vpop.permute.xlu0 %17  }
  0x81   :  { %20 = vst.msk [vmem:[#allocation0] sm:$0x1] %vm19_vm2, %v18_v7  }
  0x82   :  { %26 = vst.msk [vmem:[#allocation0] sm:$0x1] %vm25_vm3, %v24_v6  }
  0x89   :  { %v30_v8 = vld [vmem:[#allocation0] sm:$0x1] }
  0x8a   :  { %32 = vst [vmem:[%s56_s1] sm:$0x1] %v30_v8 }

// kernel: _lambda_.14
= control target key start
LH: loop header
LB: loop body
LE: loop exit
PB: predicated region body
PF: predicated region fallthrough
CT: control target
= control target key end

     0   :  { %s422_s0 = inlined_call_operand.vmem [shape: bf16[128,128], index: 0, kind: input, shape index: {}]   ;;  %s423_s1 = inlined_call_operand.vmem [shape: f32[1,128], index: 1, kind: input, shape index: {}]   ;;  %s424_s2 = inlined_call_operand.vmem [shape: f32[1,128], index: 2, kind: input, shape index: {}]   ;;  %s425_s3 = inlined_call_operand.vmem [shape: bf16[128,128], index: 3, kind: output, shape index: {}]  }
   0x1   :  { %v227_v0 = vld [vmem:[%s422_s0] sm:$0xff]   ;;  %v298_v4 = vld [vmem:[%s422_s0 + $0x8] sm:$0xff]   ;;  %v299_v5 = vld [vmem:[%s422_s0 + $0x10] sm:$0xff]  }
   0x2   :  { %v338_v1 = vld [vmem:[%s423_s1] ss:$0 sm:$0xff]  ;;  %v228_v2 = vunpack.c.l.bf16 %v227_v0  ;;  %v229_v3 = vunpack.c.h.bf16 %v227_v0  ;;  %v300_v6 = vld [vmem:[%s422_s0 + $0x18] sm:$0xff]   ;;  %v232_v8 = vunpack.c.l.bf16 %v298_v4  ;;  %v233_v9 = vunpack.c.h.bf16 %v298_v4  ;;  %v302_v33 = vld [vmem:[%s422_s0 + $0x28] sm:$0xff]  }
   0x3   :  { %v352_v7 = vld [vmem:[%s424_s2] ss:$0 sm:$0xff]  ;;  %v236_v10 = vunpack.c.l.bf16 %v299_v5  ;;  %v237_v11 = vunpack.c.h.bf16 %v299_v5  ;;  %v240_v14 = vunpack.c.l.bf16 %v300_v6  ;;  %v241_v15 = vunpack.c.h.bf16 %v300_v6  ;;  %v303_v38 = vld [vmem:[%s422_s0 + $0x30] sm:$0xff]   ;;  %v304_v43 = vld [vmem:[%s422_s0 + $0x38] sm:$0xff]  }
   0x4   :  { %v53_v12 = vmul.f32 %v228_v2, %v338_v1  ;;  %v54_v13 = vmul.f32 %v229_v3, %v338_v1  ;;  %v55_v16 = vmul.f32 %v232_v8, %v338_v1  ;;  %v56_v17 = vmul.f32 %v233_v9, %v338_v1  ;;  %v301_v28 = vld [vmem:[%s422_s0 + $0x20] sm:$0xff]  }
   0x5   :  { %v57_v18 = vmul.f32 %v236_v10, %v338_v1  ;;  %v58_v19 = vmul.f32 %v237_v11, %v338_v1  ;;  %v59_v22 = vmul.f32 %v240_v14, %v338_v1  ;;  %v60_v23 = vmul.f32 %v241_v15, %v338_v1 }
   0x6   :  { %v76_v20 = vadd.f32 %v352_v7, %v53_v12  ;;  %v77_v21 = vadd.f32 %v352_v7, %v54_v13  ;;  %v78_v24 = vadd.f32 %v352_v7, %v55_v16  ;;  %v79_v25 = vadd.f32 %v352_v7, %v56_v17 }
   0x7   :  { %v80_v26 = vadd.f32 %v352_v7, %v57_v18  ;;  %v81_v27 = vadd.f32 %v352_v7, %v58_v19  ;;  %v82_v31 = vadd.f32 %v352_v7, %v59_v22  ;;  %v83_v32 = vadd.f32 %v352_v7, %v60_v23 }
   0x8   :  { %v92_v29 = vmax.f32 %v76_v20, 0.0  ;;  %v93_v30 = vmax.f32 %v77_v21, 0.0  ;;  %v94_v34 = vmax.f32 %v78_v24, 0.0  ;;  %v95_v35 = vmax.f32 %v79_v25, 0.0 }
   0x9   :  { %v96_v36 = vmax.f32 %v80_v26, 0.0  ;;  %v97_v37 = vmax.f32 %v81_v27, 0.0  ;;  %v98_v40 = vmax.f32 %v82_v31, 0.0  ;;  %v99_v41 = vmax.f32 %v83_v32, 0.0 }
   0xa   :  { %v261_v39 = vpack.c.bf16 %v93_v30, %v92_v29  ;;  %v244_v42 = vunpack.c.l.bf16 %v301_v28  ;;  %v266_v44 = vpack.c.bf16 %v95_v35, %v94_v34  ;;  %v245_v46 = vunpack.c.h.bf16 %v301_v28 }
   0xb   :  { %v271_v45 = vpack.c.bf16 %v97_v37, %v96_v36  ;;  %v248_v47 = vunpack.c.l.bf16 %v302_v33  ;;  %v276_v48 = vpack.c.bf16 %v99_v41, %v98_v40  ;;  %v249_v50 = vunpack.c.h.bf16 %v302_v33 }
   0xc   :  { %262 = vst [vmem:[%s425_s3] sm:$0xff] %v261_v39   ;;  %v61_v49 = vmul.f32 %v244_v42, %v338_v1  ;;  %v252_v51 = vunpack.c.l.bf16 %v303_v38  ;;  %305 = vst [vmem:[%s425_s3 + $0x8] sm:$0xff] %v266_v44   ;;  %v62_v52 = vmul.f32 %v245_v46, %v338_v1  ;;  %v253_v54 = vunpack.c.h.bf16 %v303_v38 }
   0xd   :  { %306 = vst [vmem:[%s425_s3 + $0x10] sm:$0xff] %v271_v45   ;;  %v63_v53 = vmul.f32 %v248_v47, %v338_v1  ;;  %v256_v55 = vunpack.c.l.bf16 %v304_v43  ;;  %307 = vst [vmem:[%s425_s3 + $0x18] sm:$0xff] %v276_v48   ;;  %v64_v57 = vmul.f32 %v249_v50, %v338_v1  ;;  %v257_v59 = vunpack.c.h.bf16 %v304_v43 }
   0xe   :  { %v84_v56 = vadd.f32 %v352_v7, %v61_v49  ;;  %v65_v58 = vmul.f32 %v252_v51, %v338_v1  ;;  %v85_v60 = vadd.f32 %v352_v7, %v62_v52  ;;  %v66_v62 = vmul.f32 %v253_v54, %v338_v1 }
   0xf   :  { %v86_v61 = vadd.f32 %v352_v7, %v63_v53  ;;  %v67_v63 = vmul.f32 %v256_v55, %v338_v1  ;;  %v87_v2 = vadd.f32 %v352_v7, %v64_v57  ;;  %v68_v4 = vmul.f32 %v257_v59, %v338_v1 }
  0x10   :  { %v100_v0 = vmax.f32 %v84_v56, 0.0  ;;  %v88_v3 = vadd.f32 %v352_v7, %v65_v58  ;;  %v101_v5 = vmax.f32 %v85_v60, 0.0  ;;  %v89_v8 = vadd.f32 %v352_v7, %v66_v62 }
  0x11   :  { %v102_v6 = vmax.f32 %v86_v61, 0.0  ;;  %v90_v9 = vadd.f32 %v352_v7, %v67_v63  ;;  %v103_v10 = vmax.f32 %v87_v2, 0.0  ;;  %v91_v12 = vadd.f32 %v352_v7, %v68_v4 }
  0x12   :  { %v104_v11 = vmax.f32 %v88_v3, 0.0  ;;  %v281_v13 = vpack.c.bf16 %v101_v5, %v100_v0  ;;  %v105_v14 = vmax.f32 %v89_v8, 0.0 }
  0x13   :  { %v106_v15 = vmax.f32 %v90_v9, 0.0  ;;  %v286_v16 = vpack.c.bf16 %v103_v10, %v102_v6  ;;  %v107_v17 = vmax.f32 %v91_v12, 0.0 }
  0x14   :  { %308 = vst [vmem:[%s425_s3 + $0x20] sm:$0xff] %v281_v13   ;;  %v291_v1 = vpack.c.bf16 %v105_v14, %v104_v11 }
  0x15   :  { %309 = vst [vmem:[%s425_s3 + $0x28] sm:$0xff] %v286_v16   ;;  %v296_v18 = vpack.c.bf16 %v107_v17, %v106_v15 }
  0x16   :  { %310 = vst [vmem:[%s425_s3 + $0x30] sm:$0xff] %v291_v1  }
  0x17   :  { %311 = vst [vmem:[%s425_s3 + $0x38] sm:$0xff] %v296_v18  }

// kernel: tile.63
= control target key start
LH: loop header
LB: loop body
LE: loop exit
PB: predicated region body
PF: predicated region fallthrough
CT: control target
= control target key end

     0   :  { %s22_s0 = inlined_call_operand.vmem [shape: f32[8], index: 0, kind: input, shape index: {}]   ;;  %s23_s1 = inlined_call_operand.vmem [shape: f32[4,8], index: 1, kind: output, shape index: {}]  }
   0x1   :  { %v4_v0 = vld [vmem:[%s22_s0] ss:$0 sm:$0xff] }
   0x2   :  { %5 = vst [vmem:[%s23_s1] sm:$0xf] %v4_v0 }

// kernel: tile.64
= control target key start
LH: loop header
LB: loop body
LE: loop exit
PB: predicated region body
PF: predicated region fallthrough
CT: control target
= control target key end

     0   :  { %vm7_vm0 = vcmask 64512   ;;  %s37_s8 = smov 8   ;;  %s38_s9 = smov 16   ;;  %vm13_vm1 = vcmask 261312   ;;  %vm19_vm2 = vcmask 195712   ;;  %vm25_vm3 = vcmask 130112   ;;  %s55_s0 = inlined_call_operand.vmem [shape: f32[4,8], index: 0, kind: input, shape index: {}]   ;;  %s56_s1 = inlined_call_operand.vmem [shape: f32[32], index: 1, kind: output, shape index: {}]  }
   0x1   :  { %v4_v0 = vld [vmem:[%s55_s0] sm:$0xf]  ;;  %s36_s0 = smov 24  }
   0x2   :  { %5 = vst [vmem:[#allocation1] sm:$0xf] %v4_v0 }
   0x9   :  { %v10_v1 = vld [vmem:[#allocation1 + $0x3] sm:$0x1]   ;;  %v22_v2 = vld [vmem:[#allocation1 + $0x1] sm:$0x1]   ;;  %v6_v3 = vld [vmem:[#allocation1] sm:$0x1]  }
   0xa   :  { %11 = vrot.lane.b32.xlu0 %v10_v1, %s36_s0  ;;  %23 = vrot.lane.b32.xlu1 %v22_v2, %s37_s8  ;;  %v16_v4 = vld [vmem:[#allocation1 + $0x2] sm:$0x1]   ;;  %8 = vst.msk [vmem:[#allocation0] sm:$0x1] %vm7_vm0, %v6_v3  }
   0xe   :  { %17 = vrot.lane.b32.xlu0 %v16_v4, %s38_s9 }
  0x7c   :  { %v12_v5 = vpop.permute.xlu0 %11   ;;  %v24_v6 = vpop.permute.xlu1 %23  }
  0x7d   :  { %14 = vst.msk [vmem:[#allocation0] sm:$0x1] %vm13_vm1, %v12_v5  }
  0x80   :  { %v18_v7 = vpop.permute.xlu0 %17  }
  0x81   :  { %20 = vst.msk [vmem:[#allocation0] sm:$0x1] %vm19_vm2, %v18_v7  }
  0x82   :  { %26 = vst.msk [vmem:[#allocation0] sm:$0x1] %vm25_vm3, %v24_v6  }
  0x89   :  { %v30_v8 = vld [vmem:[#allocation0] sm:$0x1] }
  0x8a   :  { %32 = vst [vmem:[%s56_s1] sm:$0x1] %v30_v8 }

// kernel: _lambda_.15
= control target key start
LH: loop header
LB: loop body
LE: loop exit
PB: predicated region body
PF: predicated region fallthrough
CT: control target
= control target key end

     0   :  { %v1909_v0 = vmov 0   ;;  %vm439_vm0 = vcmask 130048   ;;  %s2480_s1 = inlined_call_operand.vmem [shape: bf16[144,128], index: 1, kind: input, shape index: {}]   ;;  %s2481_s0 = inlined_call_operand.vmem [shape: bf16[512,144], index: 0, kind: input, shape index: {}]   ;;  %s2482_s2 = inlined_call_operand.vmem [shape: bf16[512,128], index: 2, kind: output, shape index: {0}]   ;;  %s2483_s3 = inlined_call_operand.vmem [shape: f32[1,1,128], index: 3, kind: output, shape index: {1}]   ;;  %s2484_s4 = inlined_call_operand.vmem [shape: f32[1,1,128], index: 4, kind: output, shape index: {2}]  }
   0x1   :  { %536 = vmatprep.subr.bf16.mxu0 %v1909_v0  ;;  %v1804_v1 = vld [vmem:[%s2480_s1] sm:$0xff]   ;;  %1785 = vmatprep.subr.bf16.mxu1 %v1909_v0  ;;  %v1805_v2 = vld [vmem:[%s2480_s1 + $0x8] sm:$0xff]   ;;  %v1806_v3 = vld [vmem:[%s2480_s1 + $0x10] sm:$0xff]  }
   0x2   :  { %537 = vmatpush1.bf16.msra.mxu0 %v1804_v1  ;;  %1794 = vmatpush1.bf16.msra.mxu1 %v1804_v1  ;;  %v1807_v4 = vld [vmem:[%s2480_s1 + $0x18] sm:$0xff]   ;;  %v1815_v5 = vld [vmem:[%s2481_s0 + $0x4] ss:$8 sps:$4 sm:$0xff]   ;;  %v1810_v9 = vld [vmem:[%s2480_s1 + $0x30] sm:$0xff]  }
   0x3   :  { %538 = vmatprep.subr.bf16.mxu0 %v1909_v0  ;;  %1786 = vmatprep.subr.bf16.mxu1 %v1909_v0  ;;  %v1808_v6 = vld [vmem:[%s2480_s1 + $0x20] sm:$0xff]   ;;  %v1809_v7 = vld [vmem:[%s2480_s1 + $0x28] sm:$0xff]   ;;  %v1811_v10 = vld [vmem:[%s2480_s1 + $0x38] sm:$0xff]  }
   0x4   :  { %1434 = vmatprep.mubr.msk.bf16.mxu0 %vm439_vm0, %v1815_v5  ;;  %v1839_v8 = vld [vmem:[%s2481_s0 + $0x104] ss:$8 sps:$4 sm:$0xff]   ;;  %v1813_v12 = vld [vmem:[%s2481_s0] ss:$8 sps:$4 sm:$0xff]   ;;  %v1816_v13 = vld [vmem:[%s2481_s0 + $0x14] ss:$8 sps:$4 sm:$0xff]  }
   0x5   :  { %1450 = vmatprep.mubr.msk.bf16.mxu1 %vm439_vm0, %v1839_v8  ;;  %v1812_v11 = vld [vmem:[%s2480_s1 + $0x40] sm:$0xff]   ;;  %v1843_v15 = vld [vmem:[%s2481_s0 + $0x114] ss:$8 sps:$4 sm:$0xff]   ;;  %v1818_v16 = vld [vmem:[%s2481_s0 + $0x10] ss:$8 sps:$4 sm:$0xff]  }
   0x6   :  { %539 = vmatpush1.bf16.msra.mxu0 %v1805_v2  ;;  %1795 = vmatpush1.bf16.msra.mxu1 %v1805_v2  ;;  %v1837_v14 = vld [vmem:[%s2481_s0 + $0x100] ss:$8 sps:$4 sm:$0xff]   ;;  %v1819_v17 = vld [vmem:[%s2481_s0 + $0x24] ss:$8 sps:$4 sm:$0xff]   ;;  %v1845_v18 = vld [vmem:[%s2481_s0 + $0x110] ss:$8 sps:$4 sm:$0xff]  }
   0x7   :  { %540 = vmatprep.subr.bf16.mxu0 %v1909_v0  ;;  %1787 = vmatprep.subr.bf16.mxu1 %v1909_v0  ;;  %v1849_v19 = vld [vmem:[%s2481_s0 + $0x124] ss:$8 sps:$4 sm:$0xff]   ;;  %v1821_v20 = vld [vmem:[%s2481_s0 + $0x20] ss:$8 sps:$4 sm:$0xff]   ;;  %v1822_v21 = vld [vmem:[%s2481_s0 + $0x34] ss:$8 sps:$4 sm:$0xff]  }
   0x8   :  { %v1851_v22 = vld [vmem:[%s2481_s0 + $0x120] ss:$8 sps:$4 sm:$0xff]   ;;  %v1855_v23 = vld [vmem:[%s2481_s0 + $0x134] ss:$8 sps:$4 sm:$0xff]   ;;  %v1824_v24 = vld [vmem:[%s2481_s0 + $0x30] ss:$8 sps:$4 sm:$0xff]  }
   0x9   :  { %v1857_v25 = vld [vmem:[%s2481_s0 + $0x130] ss:$8 sps:$4 sm:$0xff]   ;;  %v1825_v26 = vld [vmem:[%s2481_s0 + $0x44] ss:$8 sps:$4 sm:$0xff]   ;;  %v1827_v28 = vld [vmem:[%s2481_s0 + $0x40] ss:$8 sps:$4 sm:$0xff]  }
   0xa   :  { %541 = vmatpush1.bf16.msra.mxu0 %v1806_v3  ;;  %1796 = vmatpush1.bf16.msra.mxu1 %v1806_v3  ;;  %v1861_v27 = vld [vmem:[%s2481_s0 + $0x144] ss:$8 sps:$4 sm:$0xff]   ;;  %v1863_v29 = vld [vmem:[%s2481_s0 + $0x140] ss:$8 sps:$4 sm:$0xff]   ;;  %v1828_v30 = vld [vmem:[%s2481_s0 + $0x54] ss:$8 sps:$4 sm:$0xff]  }
   0xb   :  { %542 = vmatprep.subr.bf16.mxu0 %v1909_v0  ;;  %1788 = vmatprep.subr.bf16.mxu1 %v1909_v0  ;;  %v1867_v31 = vld [vmem:[%s2481_s0 + $0x154] ss:$8 sps:$4 sm:$0xff]   ;;  %v1830_v32 = vld [vmem:[%s2481_s0 + $0x50] ss:$8 sps:$4 sm:$0xff]   ;;  %v1831_v34 = vld [vmem:[%s2481_s0 + $0x64] ss:$8 sps:$4 sm:$0xff]  }
   0xc   :  { %v1869_v33 = vld [vmem:[%s2481_s0 + $0x150] ss:$8 sps:$4 sm:$0xff]   ;;  %v1873_v35 = vld [vmem:[%s2481_s0 + $0x164] ss:$8 sps:$4 sm:$0xff]   ;;  %v1833_v36 = vld [vmem:[%s2481_s0 + $0x60] ss:$8 sps:$4 sm:$0xff]  }
   0xd   :  { %v1875_v37 = vld [vmem:[%s2481_s0 + $0x160] ss:$8 sps:$4 sm:$0xff]   ;;  %v1834_v38 = vld [vmem:[%s2481_s0 + $0x74] ss:$8 sps:$4 sm:$0xff]   ;;  %v1836_v40 = vld [vmem:[%s2481_s0 + $0x70] ss:$8 sps:$4 sm:$0xff]  }
   0xe   :  { %543 = vmatpush1.bf16.msra.mxu0 %v1807_v4  ;;  %1797 = vmatpush1.bf16.msra.mxu1 %v1807_v4  ;;  %v1879_v39 = vld [vmem:[%s2481_s0 + $0x174] ss:$8 sps:$4 sm:$0xff]   ;;  %v1881_v41 = vld [vmem:[%s2481_s0 + $0x170] ss:$8 sps:$4 sm:$0xff]   ;;  %v1840_v42 = vld [vmem:[%s2481_s0 + $0x84] ss:$8 sps:$4 sm:$0xff]  }
   0xf   :  { %544 = vmatprep.subr.bf16.mxu0 %v1909_v0  ;;  %1789 = vmatprep.subr.bf16.mxu1 %v1909_v0  ;;  %v1885_v43 = vld [vmem:[%s2481_s0 + $0x184] ss:$8 sps:$4 sm:$0xff]   ;;  %v1842_v44 = vld [vmem:[%s2481_s0 + $0x80] ss:$8 sps:$4 sm:$0xff]   ;;  %v1846_v46 = vld [vmem:[%s2481_s0 + $0x94] ss:$8 sps:$4 sm:$0xff]  }
  0x10   :  { %v1887_v45 = vld [vmem:[%s2481_s0 + $0x180] ss:$8 sps:$4 sm:$0xff]   ;;  %v1888_v47 = vld [vmem:[%s2481_s0 + $0x194] ss:$8 sps:$4 sm:$0xff]   ;;  %v1848_v48 = vld [vmem:[%s2481_s0 + $0x90] ss:$8 sps:$4 sm:$0xff]  }
  0x11   :  { %v1890_v49 = vld [vmem:[%s2481_s0 + $0x190] ss:$8 sps:$4 sm:$0xff]   ;;  %v1852_v50 = vld [vmem:[%s2481_s0 + $0xa4] ss:$8 sps:$4 sm:$0xff]   ;;  %v1854_v52 = vld [vmem:[%s2481_s0 + $0xa0] ss:$8 sps:$4 sm:$0xff]  }
  0x12   :  { %545 = vmatpush1.bf16.msra.mxu0 %v1808_v6  ;;  %1798 = vmatpush1.bf16.msra.mxu1 %v1808_v6  ;;  %v1891_v51 = vld [vmem:[%s2481_s0 + $0x1a4] ss:$8 sps:$4 sm:$0xff]   ;;  %v1893_v53 = vld [vmem:[%s2481_s0 + $0x1a0] ss:$8 sps:$4 sm:$0xff]   ;;  %v1858_v54 = vld [vmem:[%s2481_s0 + $0xb4] ss:$8 sps:$4 sm:$0xff]  }
  0x13   :  { %546 = vmatprep.subr.bf16.mxu0 %v1909_v0  ;;  %1790 = vmatprep.subr.bf16.mxu1 %v1909_v0  ;;  %v1894_v55 = vld [vmem:[%s2481_s0 + $0x1b4] ss:$8 sps:$4 sm:$0xff]   ;;  %v1860_v56 = vld [vmem:[%s2481_s0 + $0xb0] ss:$8 sps:$4 sm:$0xff]   ;;  %v1864_v58 = vld [vmem:[%s2481_s0 + $0xc4] ss:$8 sps:$4 sm:$0xff]  }
  0x14   :  { %v1896_v57 = vld [vmem:[%s2481_s0 + $0x1b0] ss:$8 sps:$4 sm:$0xff]   ;;  %v1897_v59 = vld [vmem:[%s2481_s0 + $0x1c4] ss:$8 sps:$4 sm:$0xff]   ;;  %v1866_v60 = vld [vmem:[%s2481_s0 + $0xc0] ss:$8 sps:$4 sm:$0xff]  }
  0x15   :  { %v1899_v61 = vld [vmem:[%s2481_s0 + $0x1c0] ss:$8 sps:$4 sm:$0xff]   ;;  %v1870_v62 = vld [vmem:[%s2481_s0 + $0xd4] ss:$8 sps:$4 sm:$0xff]   ;;  %v1902_v1 = vld [vmem:[%s2481_s0 + $0x1d0] ss:$8 sps:$4 sm:$0xff]  }
  0x16   :  { %547 = vmatpush1.bf16.msra.mxu0 %v1809_v7  ;;  %1799 = vmatpush1.bf16.msra.mxu1 %v1809_v7  ;;  %v1900_v63 = vld [vmem:[%s2481_s0 + $0x1d4] ss:$8 sps:$4 sm:$0xff]   ;;  %v1876_v2 = vld [vmem:[%s2481_s0 + $0xe4] ss:$8 sps:$4 sm:$0xff]   ;;  %v1878_v4 = vld [vmem:[%s2481_s0 + $0xe0] ss:$8 sps:$4 sm:$0xff]  }
  0x17   :  { %548 = vmatprep.subr.bf16.mxu0 %v1909_v0  ;;  %1791 = vmatprep.subr.bf16.mxu1 %v1909_v0  ;;  %v1903_v3 = vld [vmem:[%s2481_s0 + $0x1e4] ss:$8 sps:$4 sm:$0xff]   ;;  %v1905_v5 = vld [vmem:[%s2481_s0 + $0x1e0] ss:$8 sps:$4 sm:$0xff]   ;;  %v1882_v6 = vld [vmem:[%s2481_s0 + $0xf4] ss:$8 sps:$4 sm:$0xff]  }
  0x18   :  { %v1906_v7 = vld [vmem:[%s2481_s0 + $0x1f4] ss:$8 sps:$4 sm:$0xff]   ;;  %v1884_v8 = vld [vmem:[%s2481_s0 + $0xf0] ss:$8 sps:$4 sm:$0xff]  }
  0x1a   :  { %549 = vmatpush1.bf16.msra.mxu0 %v1810_v9  ;;  %1800 = vmatpush1.bf16.msra.mxu1 %v1810_v9  ;;  %v1908_v9 = vld [vmem:[%s2481_s0 + $0x1f0] ss:$8 sps:$4 sm:$0xff]  }
  0x1b   :  { %550 = vmatprep.subr.bf16.mxu0 %v1909_v0  ;;  %1792 = vmatprep.subr.bf16.mxu1 %v1909_v0 }
  0x1e   :  { %551 = vmatpush1.bf16.msra.mxu0 %v1811_v10  ;;  %1801 = vmatpush1.bf16.msra.mxu1 %v1811_v10 }
  0x1f   :  { %552 = vmatprep.subr.bf16.mxu0 %v1909_v0  ;;  %1793 = vmatprep.subr.bf16.mxu1 %v1909_v0  ;;  %v1872_v0 = vld [vmem:[%s2481_s0 + $0xd0] ss:$8 sps:$4 sm:$0xff]  }
  0x22   :  { %553 = vmatpush1.bf16.msra.mxu0 %v1812_v11  ;;  %1802 = vmatpush1.bf16.msra.mxu1 %v1812_v11 }
  0x25   :  { %569 = vmatmul.mubr.bf16.vlgmr.msra.gmra.mrb[0].mxu0 %v1813_v12  ;;  %697 = vmatmul.mubr.bf16.vlgmr.msra.gmra.mrb[0].mxu1 %v1837_v14 }
  0x26   :  { %1435 = vmatprep.mubr.msk.bf16.mxu0 %vm439_vm0, %v1816_v13  ;;  %1451 = vmatprep.mubr.msk.bf16.mxu1 %vm439_vm0, %v1843_v15 }
  0x2d   :  { %577 = vmatmul.mubr.bf16.gmra.mrb[4].mxu0 %v1818_v16  ;;  %705 = vmatmul.mubr.bf16.gmra.mrb[4].mxu1 %v1845_v18 }
  0x2e   :  { %1436 = vmatprep.mubr.msk.bf16.mxu0 %vm439_vm0, %v1819_v17  ;;  %1452 = vmatprep.mubr.msk.bf16.mxu1 %vm439_vm0, %v1849_v19 }
  0x35   :  { %585 = vmatmul.mubr.bf16.gmra.mrb[8].mxu0 %v1821_v20  ;;  %713 = vmatmul.mubr.bf16.gmra.mrb[8].mxu1 %v1851_v22 }
  0x36   :  { %1437 = vmatprep.mubr.msk.bf16.mxu0 %vm439_vm0, %v1822_v21  ;;  %1453 = vmatprep.mubr.msk.bf16.mxu1 %vm439_vm0, %v1855_v23 }
  0x3d   :  { %593 = vmatmul.mubr.bf16.gmra.mrb[12].mxu0 %v1824_v24  ;;  %721 = vmatmul.mubr.bf16.gmra.mrb[12].mxu1 %v1857_v25 }
  0x3e   :  { %1438 = vmatprep.mubr.msk.bf16.mxu0 %vm439_vm0, %v1825_v26  ;;  %1454 = vmatprep.mubr.msk.bf16.mxu1 %vm439_vm0, %v1861_v27 }
  0x45   :  { %601 = vmatmul.mubr.bf16.gmra.mrb[16].mxu0 %v1827_v28  ;;  %729 = vmatmul.mubr.bf16.gmra.mrb[16].mxu1 %v1863_v29 }
  0x46   :  { %1439 = vmatprep.mubr.msk.bf16.mxu0 %vm439_vm0, %v1828_v30  ;;  %1455 = vmatprep.mubr.msk.bf16.mxu1 %vm439_vm0, %v1867_v31 }
  0x4d   :  { %609 = vmatmul.mubr.bf16.gmra.mrb[20].mxu0 %v1830_v32  ;;  %737 = vmatmul.mubr.bf16.gmra.mrb[20].mxu1 %v1869_v33 }
  0x4e   :  { %1440 = vmatprep.mubr.msk.bf16.mxu0 %vm439_vm0, %v1831_v34  ;;  %1456 = vmatprep.mubr.msk.bf16.mxu1 %vm439_vm0, %v1873_v35 }
  0x55   :  { %617 = vmatmul.mubr.bf16.gmra.mrb[24].mxu0 %v1833_v36  ;;  %745 = vmatmul.mubr.bf16.gmra.mrb[24].mxu1 %v1875_v37 }
  0x56   :  { %1441 = vmatprep.mubr.msk.bf16.mxu0 %vm439_vm0, %v1834_v38  ;;  %1457 = vmatprep.mubr.msk.bf16.mxu1 %vm439_vm0, %v1879_v39 }
  0x5d   :  { %625 = vmatmul.mubr.bf16.gmra.mrb[28].mxu0 %v1836_v40  ;;  %753 = vmatmul.mubr.bf16.gmra.mrb[28].mxu1 %v1881_v41 }
  0x5e   :  { %1442 = vmatprep.mubr.msk.bf16.mxu0 %vm439_vm0, %v1840_v42  ;;  %1458 = vmatprep.mubr.msk.bf16.mxu1 %vm439_vm0, %v1885_v43 }
  0x65   :  { %633 = vmatmul.mubr.bf16.gmra.mrb[32].mxu0 %v1842_v44  ;;  %761 = vmatmul.mubr.bf16.gmra.mrb[32].mxu1 %v1887_v45 }
  0x66   :  { %1443 = vmatprep.mubr.msk.bf16.mxu0 %vm439_vm0, %v1846_v46  ;;  %1459 = vmatprep.mubr.msk.bf16.mxu1 %vm439_vm0, %v1888_v47 }
  0x6d   :  { %641 = vmatmul.mubr.bf16.gmra.mrb[36].mxu0 %v1848_v48  ;;  %769 = vmatmul.mubr.bf16.gmra.mrb[36].mxu1 %v1890_v49 }
  0x6e   :  { %1444 = vmatprep.mubr.msk.bf16.mxu0 %vm439_vm0, %v1852_v50  ;;  %1460 = vmatprep.mubr.msk.bf16.mxu1 %vm439_vm0, %v1891_v51 }
  0x75   :  { %649 = vmatmul.mubr.bf16.gmra.mrb[40].mxu0 %v1854_v52  ;;  %777 = vmatmul.mubr.bf16.gmra.mrb[40].mxu1 %v1893_v53 }
  0x76   :  { %1445 = vmatprep.mubr.msk.bf16.mxu0 %vm439_vm0, %v1858_v54  ;;  %1461 = vmatprep.mubr.msk.bf16.mxu1 %vm439_vm0, %v1894_v55 }
  0x7d   :  { %657 = vmatmul.mubr.bf16.gmra.mrb[44].mxu0 %v1860_v56  ;;  %785 = vmatmul.mubr.bf16.gmra.mrb[44].mxu1 %v1896_v57 }
  0x7e   :  { %1446 = vmatprep.mubr.msk.bf16.mxu0 %vm439_vm0, %v1864_v58  ;;  %1462 = vmatprep.mubr.msk.bf16.mxu1 %vm439_vm0, %v1897_v59 }
  0x85   :  { %665 = vmatmul.mubr.bf16.gmra.mrb[48].mxu0 %v1866_v60  ;;  %793 = vmatmul.mubr.bf16.gmra.mrb[48].mxu1 %v1899_v61 }
  0x86   :  { %1447 = vmatprep.mubr.msk.bf16.mxu0 %vm439_vm0, %v1870_v62  ;;  %1463 = vmatprep.mubr.msk.bf16.mxu1 %vm439_vm0, %v1900_v63 }
  0x8d   :  { %673 = vmatmul.mubr.bf16.gmra.mrb[52].mxu0 %v1872_v0  ;;  %801 = vmatmul.mubr.bf16.gmra.mrb[52].mxu1 %v1902_v1 }
  0x8e   :  { %1448 = vmatprep.mubr.msk.bf16.mxu0 %vm439_vm0, %v1876_v2  ;;  %1464 = vmatprep.mubr.msk.bf16.mxu1 %vm439_vm0, %v1903_v3 }
  0x95   :  { %681 = vmatmul.mubr.bf16.gmra.mrb[56].mxu0 %v1878_v4  ;;  %809 = vmatmul.mubr.bf16.gmra.mrb[56].mxu1 %v1905_v5 }
  0x96   :  { %1449 = vmatprep.mubr.msk.bf16.mxu0 %vm439_vm0, %v1882_v6  ;;  %1465 = vmatprep.mubr.msk.bf16.mxu1 %vm439_vm0, %v1906_v7 }
  0x9d   :  { %689 = vmatmul.mubr.bf16.gmra.mrb[60].mxu0 %v1884_v8  ;;  %817 = vmatmul.mubr.bf16.gmra.mrb[60].mxu1 %v1908_v9 }
  0xf8   :  { %v570_v10 = vpop.f32.mrb[0].mxu0  ;;  %v2186_v11 = vpop.f32.mrb[0].mxu1 }
  0xf9   :  { %v572_v12 = vpop.f32.mrb[1].mxu0  ;;  %v700_v13 = vpop.f32.mrb[1].mxu1  ;;  %v1215_v14 = vmul.f32 %v570_v10, %v570_v10 }
  0xfa   :  { %v573_v15 = vpop.f32.mrb[2].mxu0  ;;  %v2188_v16 = vpop.f32.mrb[2].mxu1 }
  0xfb   :  { %v1597_v17 = vpack.c.bf16 %v573_v15, %v570_v10  ;;  %v1145_v18 = vadd.f32 %v573_v15, %v570_v10  ;;  %v1216_v19 = vmul.f32 %v573_v15, %v573_v15  ;;  %v575_v20 = vpop.f32.mrb[3].mxu0  ;;  %v1677_v21 = vpack.c.bf16 %v2188_v16, %v2186_v11  ;;  %v703_v22 = vpop.f32.mrb[3].mxu1 }
  0xfd   :  { %1598 = vst [vmem:[%s2482_s2] sm:$0xff] %v1597_v17   ;;  %v1279_v23 = vadd.f32 %v1216_v19, %v1215_v14  ;;  %1769 = vst [vmem:[%s2482_s2 + $0x80] sm:$0xff] %v1677_v21  }
 0x100   :  { %v578_v24 = vpop.f32.mrb[4].mxu0  ;;  %v2198_v25 = vpop.f32.mrb[4].mxu1 }
 0x101   :  { %v1146_v26 = vadd.f32 %v1145_v18, %v578_v24  ;;  %v1217_v27 = vmul.f32 %v578_v24, %v578_v24  ;;  %v580_v28 = vpop.f32.mrb[5].mxu0  ;;  %v708_v29 = vpop.f32.mrb[5].mxu1 }
 0x102   :  { %v581_v30 = vpop.f32.mrb[6].mxu0  ;;  %v2200_v31 = vpop.f32.mrb[6].mxu1 }
 0x103   :  { %v1280_v32 = vadd.f32 %v1279_v23, %v1217_v27  ;;  %v1602_v33 = vpack.c.bf16 %v581_v30, %v578_v24  ;;  %v1147_v34 = vadd.f32 %v1146_v26, %v581_v30  ;;  %v1218_v35 = vmul.f32 %v581_v30, %v581_v30  ;;  %v583_v36 = vpop.f32.mrb[7].mxu0  ;;  %v711_v37 = vpop.f32.mrb[7].mxu1 }
 0x104   :  { %v1682_v38 = vpack.c.bf16 %v2200_v31, %v2198_v25 }
 0x105   :  { %1754 = vst [vmem:[%s2482_s2 + $0x8] sm:$0xff] %v1602_v33   ;;  %v1281_v39 = vadd.f32 %v1280_v32, %v1218_v35 }
 0x106   :  { %1770 = vst [vmem:[%s2482_s2 + $0x88] sm:$0xff] %v1682_v38  }
 0x108   :  { %v586_v40 = vpop.f32.mrb[8].mxu0  ;;  %v2210_v41 = vpop.f32.mrb[8].mxu1 }
 0x109   :  { %v1148_v42 = vadd.f32 %v1147_v34, %v586_v40  ;;  %v1219_v43 = vmul.f32 %v586_v40, %v586_v40  ;;  %v588_v44 = vpop.f32.mrb[9].mxu0  ;;  %v716_v45 = vpop.f32.mrb[9].mxu1 }
 0x10a   :  { %v589_v46 = vpop.f32.mrb[10].mxu0  ;;  %v2212_v47 = vpop.f32.mrb[10].mxu1 }
 0x10b   :  { %v1282_v48 = vadd.f32 %v1281_v39, %v1219_v43  ;;  %v1607_v49 = vpack.c.bf16 %v589_v46, %v586_v40  ;;  %v1149_v50 = vadd.f32 %v1148_v42, %v589_v46  ;;  %v1220_v51 = vmul.f32 %v589_v46, %v589_v46  ;;  %v591_v52 = vpop.f32.mrb[11].mxu0  ;;  %v719_v53 = vpop.f32.mrb[11].mxu1 }
 0x10c   :  { %v1687_v54 = vpack.c.bf16 %v2212_v47, %v2210_v41 }
 0x10d   :  { %1755 = vst [vmem:[%s2482_s2 + $0x10] sm:$0xff] %v1607_v49   ;;  %v1283_v55 = vadd.f32 %v1282_v48, %v1220_v51 }
 0x10e   :  { %1771 = vst [vmem:[%s2482_s2 + $0x90] sm:$0xff] %v1687_v54  }
 0x110   :  { %v594_v56 = vpop.f32.mrb[12].mxu0  ;;  %v2222_v57 = vpop.f32.mrb[12].mxu1 }
 0x111   :  { %v1150_v58 = vadd.f32 %v1149_v50, %v594_v56  ;;  %v1221_v59 = vmul.f32 %v594_v56, %v594_v56  ;;  %v596_v60 = vpop.f32.mrb[13].mxu0  ;;  %v724_v61 = vpop.f32.mrb[13].mxu1 }
 0x112   :  { %v597_v62 = vpop.f32.mrb[14].mxu0  ;;  %v2224_v63 = vpop.f32.mrb[14].mxu1 }
 0x113   :  { %v1284_v0 = vadd.f32 %v1283_v55, %v1221_v59  ;;  %v1612_v1 = vpack.c.bf16 %v597_v62, %v594_v56  ;;  %v1151_v2 = vadd.f32 %v1150_v58, %v597_v62  ;;  %v1222_v3 = vmul.f32 %v597_v62, %v597_v62  ;;  %v599_v4 = vpop.f32.mrb[15].mxu0  ;;  %v727_v5 = vpop.f32.mrb[15].mxu1 }
 0x114   :  { %v1692_v6 = vpack.c.bf16 %v2224_v63, %v2222_v57 }
 0x115   :  { %1756 = vst [vmem:[%s2482_s2 + $0x18] sm:$0xff] %v1612_v1   ;;  %v1285_v7 = vadd.f32 %v1284_v0, %v1222_v3 }
 0x116   :  { %1772 = vst [vmem:[%s2482_s2 + $0x98] sm:$0xff] %v1692_v6  }
 0x118   :  { %v602_v8 = vpop.f32.mrb[16].mxu0  ;;  %v2234_v9 = vpop.f32.mrb[16].mxu1 }
 0x119   :  { %v1152_v10 = vadd.f32 %v1151_v2, %v602_v8  ;;  %v1223_v12 = vmul.f32 %v602_v8, %v602_v8  ;;  %v604_v13 = vpop.f32.mrb[17].mxu0  ;;  %v732_v14 = vpop.f32.mrb[17].mxu1 }
 0x11a   :  { %v605_v15 = vpop.f32.mrb[18].mxu0  ;;  %v2236_v17 = vpop.f32.mrb[18].mxu1 }
 0x11b   :  { %v1286_v18 = vadd.f32 %v1285_v7, %v1223_v12  ;;  %v1617_v19 = vpack.c.bf16 %v605_v15, %v602_v8  ;;  %v1153_v20 = vadd.f32 %v1152_v10, %v605_v15  ;;  %v1224_v21 = vmul.f32 %v605_v15, %v605_v15  ;;  %v607_v22 = vpop.f32.mrb[19].mxu0  ;;  %v735_v23 = vpop.f32.mrb[19].mxu1 }
 0x11c   :  { %v1697_v24 = vpack.c.bf16 %v2236_v17, %v2234_v9 }
 0x11d   :  { %1757 = vst [vmem:[%s2482_s2 + $0x20] sm:$0xff] %v1617_v19   ;;  %v1287_v26 = vadd.f32 %v1286_v18, %v1224_v21 }
 0x11e   :  { %1773 = vst [vmem:[%s2482_s2 + $0xa0] sm:$0xff] %v1697_v24  }
 0x120   :  { %v610_v27 = vpop.f32.mrb[20].mxu0  ;;  %v2246_v28 = vpop.f32.mrb[20].mxu1 }
 0x121   :  { %v1154_v29 = vadd.f32 %v1153_v20, %v610_v27  ;;  %v1225_v30 = vmul.f32 %v610_v27, %v610_v27  ;;  %v612_v32 = vpop.f32.mrb[21].mxu0  ;;  %v740_v33 = vpop.f32.mrb[21].mxu1 }
 0x122   :  { %v613_v34 = vpop.f32.mrb[22].mxu0  ;;  %v2248_v35 = vpop.f32.mrb[22].mxu1 }
 0x123   :  { %v1288_v36 = vadd.f32 %v1287_v26, %v1225_v30  ;;  %v1622_v37 = vpack.c.bf16 %v613_v34, %v610_v27  ;;  %v1155_v38 = vadd.f32 %v1154_v29, %v613_v34  ;;  %v1226_v39 = vmul.f32 %v613_v34, %v613_v34  ;;  %v615_v40 = vpop.f32.mrb[23].mxu0  ;;  %v743_v42 = vpop.f32.mrb[23].mxu1 }
 0x124   :  { %v1702_v43 = vpack.c.bf16 %v2248_v35, %v2246_v28 }
 0x125   :  { %1758 = vst [vmem:[%s2482_s2 + $0x28] sm:$0xff] %v1622_v37   ;;  %v1289_v44 = vadd.f32 %v1288_v36, %v1226_v39 }
 0x126   :  { %1774 = vst [vmem:[%s2482_s2 + $0xa8] sm:$0xff] %v1702_v43  }
 0x128   :  { %v618_v45 = vpop.f32.mrb[24].mxu0  ;;  %v2258_v46 = vpop.f32.mrb[24].mxu1 }
 0x129   :  { %v1156_v48 = vadd.f32 %v1155_v38, %v618_v45  ;;  %v1227_v49 = vmul.f32 %v618_v45, %v618_v45  ;;  %v620_v50 = vpop.f32.mrb[25].mxu0  ;;  %v748_v51 = vpop.f32.mrb[25].mxu1 }
 0x12a   :  { %v621_v52 = vpop.f32.mrb[26].mxu0  ;;  %v2260_v53 = vpop.f32.mrb[26].mxu1 }
 0x12b   :  { %v1290_v54 = vadd.f32 %v1289_v44, %v1227_v49  ;;  %v1627_v55 = vpack.c.bf16 %v621_v52, %v618_v45  ;;  %v1157_v56 = vadd.f32 %v1156_v48, %v621_v52  ;;  %v1228_v58 = vmul.f32 %v621_v52, %v621_v52  ;;  %v623_v59 = vpop.f32.mrb[27].mxu0  ;;  %v751_v60 = vpop.f32.mrb[27].mxu1 }
 0x12c   :  { %v1707_v61 = vpack.c.bf16 %v2260_v53, %v2258_v46 }
 0x12d   :  { %1759 = vst [vmem:[%s2482_s2 + $0x30] sm:$0xff] %v1627_v55   ;;  %v1291_v62 = vadd.f32 %v1290_v54, %v1228_v58 }
 0x12e   :  { %1775 = vst [vmem:[%s2482_s2 + $0xb0] sm:$0xff] %v1707_v61  }
 0x130   :  { %v626_v0 = vpop.f32.mrb[28].mxu0  ;;  %v2270_v1 = vpop.f32.mrb[28].mxu1 }
 0x131   :  { %v1158_v2 = vadd.f32 %v1157_v56, %v626_v0  ;;  %v1229_v3 = vmul.f32 %v626_v0, %v626_v0  ;;  %v628_v4 = vpop.f32.mrb[29].mxu0  ;;  %v756_v5 = vpop.f32.mrb[29].mxu1 }
 0x132   :  { %v629_v6 = vpop.f32.mrb[30].mxu0  ;;  %v2272_v7 = vpop.f32.mrb[30].mxu1 }
 0x133   :  { %v1292_v8 = vadd.f32 %v1291_v62, %v1229_v3  ;;  %v1632_v10 = vpack.c.bf16 %v629_v6, %v626_v0  ;;  %v1159_v12 = vadd.f32 %v1158_v2, %v629_v6  ;;  %v1230_v13 = vmul.f32 %v629_v6, %v629_v6  ;;  %v631_v14 = vpop.f32.mrb[31].mxu0  ;;  %v759_v15 = vpop.f32.mrb[31].mxu1 }
 0x134   :  { %v1712_v18 = vpack.c.bf16 %v2272_v7, %v2270_v1 }
 0x135   :  { %1760 = vst [vmem:[%s2482_s2 + $0x38] sm:$0xff] %v1632_v10   ;;  %v1293_v19 = vadd.f32 %v1292_v8, %v1230_v13 }
 0x136   :  { %1776 = vst [vmem:[%s2482_s2 + $0xb8] sm:$0xff] %v1712_v18  }
 0x138   :  { %v634_v20 = vpop.f32.mrb[32].mxu0  ;;  %v2282_v21 = vpop.f32.mrb[32].mxu1 }
 0x139   :  { %v1160_v22 = vadd.f32 %v1159_v12, %v634_v20  ;;  %v1231_v23 = vmul.f32 %v634_v20, %v634_v20  ;;  %v636_v24 = vpop.f32.mrb[33].mxu0  ;;  %v764_v26 = vpop.f32.mrb[33].mxu1 }
 0x13a   :  { %v637_v27 = vpop.f32.mrb[34].mxu0  ;;  %v2284_v29 = vpop.f32.mrb[34].mxu1 }
 0x13b   :  { %v1294_v30 = vadd.f32 %v1293_v19, %v1231_v23  ;;  %v1637_v32 = vpack.c.bf16 %v637_v27, %v634_v20  ;;  %v1161_v33 = vadd.f32 %v1160_v22, %v637_v27  ;;  %v1232_v34 = vmul.f32 %v637_v27, %v637_v27  ;;  %v639_v36 = vpop.f32.mrb[35].mxu0  ;;  %v767_v37 = vpop.f32.mrb[35].mxu1 }
 0x13c   :  { %v1717_v38 = vpack.c.bf16 %v2284_v29, %v2282_v21 }
 0x13d   :  { %1761 = vst [vmem:[%s2482_s2 + $0x40] sm:$0xff] %v1637_v32   ;;  %v1295_v39 = vadd.f32 %v1294_v30, %v1232_v34 }
 0x13e   :  { %1777 = vst [vmem:[%s2482_s2 + $0xc0] sm:$0xff] %v1717_v38  }
 0x140   :  { %v642_v40 = vpop.f32.mrb[36].mxu0  ;;  %v2294_v42 = vpop.f32.mrb[36].mxu1 }
 0x141   :  { %v1162_v43 = vadd.f32 %v1161_v33, %v642_v40  ;;  %v1233_v44 = vmul.f32 %v642_v40, %v642_v40  ;;  %v644_v45 = vpop.f32.mrb[37].mxu0  ;;  %v772_v48 = vpop.f32.mrb[37].mxu1 }
 0x142   :  { %v645_v49 = vpop.f32.mrb[38].mxu0  ;;  %v2296_v50 = vpop.f32.mrb[38].mxu1 }
 0x143   :  { %v1296_v51 = vadd.f32 %v1295_v39, %v1233_v44  ;;  %v1642_v52 = vpack.c.bf16 %v645_v49, %v642_v40  ;;  %v1163_v54 = vadd.f32 %v1162_v43, %v645_v49  ;;  %v1234_v55 = vmul.f32 %v645_v49, %v645_v49  ;;  %v647_v56 = vpop.f32.mrb[39].mxu0  ;;  %v775_v58 = vpop.f32.mrb[39].mxu1 }
 0x144   :  { %v1722_v59 = vpack.c.bf16 %v2296_v50, %v2294_v42 }
 0x145   :  { %1762 = vst [vmem:[%s2482_s2 + $0x48] sm:$0xff] %v1642_v52   ;;  %v1297_v60 = vadd.f32 %v1296_v51, %v1234_v55 }
 0x146   :  { %1778 = vst [vmem:[%s2482_s2 + $0xc8] sm:$0xff] %v1722_v59  }
 0x148   :  { %v650_v61 = vpop.f32.mrb[40].mxu0  ;;  %v2306_v62 = vpop.f32.mrb[40].mxu1 }
 0x149   :  { %v1164_v0 = vadd.f32 %v1163_v54, %v650_v61  ;;  %v1235_v2 = vmul.f32 %v650_v61, %v650_v61  ;;  %v652_v3 = vpop.f32.mrb[41].mxu0  ;;  %v780_v4 = vpop.f32.mrb[41].mxu1 }
 0x14a   :  { %v653_v5 = vpop.f32.mrb[42].mxu0  ;;  %v2308_v6 = vpop.f32.mrb[42].mxu1 }
 0x14b   :  { %v1298_v8 = vadd.f32 %v1297_v60, %v1235_v2  ;;  %v1647_v10 = vpack.c.bf16 %v653_v5, %v650_v61  ;;  %v1165_v12 = vadd.f32 %v1164_v0, %v653_v5  ;;  %v1236_v13 = vmul.f32 %v653_v5, %v653_v5  ;;  %v655_v14 = vpop.f32.mrb[43].mxu0  ;;  %v783_v15 = vpop.f32.mrb[43].mxu1 }
 0x14c   :  { %v1727_v18 = vpack.c.bf16 %v2308_v6, %v2306_v62 }
 0x14d   :  { %1763 = vst [vmem:[%s2482_s2 + $0x50] sm:$0xff] %v1647_v10   ;;  %v1299_v19 = vadd.f32 %v1298_v8, %v1236_v13 }
 0x14e   :  { %1779 = vst [vmem:[%s2482_s2 + $0xd0] sm:$0xff] %v1727_v18  }
 0x150   :  { %v658_v20 = vpop.f32.mrb[44].mxu0  ;;  %v2318_v22 = vpop.f32.mrb[44].mxu1 }
 0x151   :  { %v1166_v23 = vadd.f32 %v1165_v12, %v658_v20  ;;  %v1237_v24 = vmul.f32 %v658_v20, %v658_v20  ;;  %v660_v26 = vpop.f32.mrb[45].mxu0  ;;  %v788_v27 = vpop.f32.mrb[45].mxu1 }
 0x152   :  { %v661_v30 = vpop.f32.mrb[46].mxu0  ;;  %v2320_v32 = vpop.f32.mrb[46].mxu1 }
 0x153   :  { %v1300_v33 = vadd.f32 %v1299_v19, %v1237_v24  ;;  %v1652_v34 = vpack.c.bf16 %v661_v30, %v658_v20  ;;  %v1167_v36 = vadd.f32 %v1166_v23, %v661_v30  ;;  %v1238_v37 = vmul.f32 %v661_v30, %v661_v30  ;;  %v663_v38 = vpop.f32.mrb[47].mxu0  ;;  %v791_v39 = vpop.f32.mrb[47].mxu1 }
 0x154   :  { %v1732_v40 = vpack.c.bf16 %v2320_v32, %v2318_v22 }
 0x155   :  { %1764 = vst [vmem:[%s2482_s2 + $0x58] sm:$0xff] %v1652_v34   ;;  %v1301_v43 = vadd.f32 %v1300_v33, %v1238_v37 }
 0x156   :  { %1780 = vst [vmem:[%s2482_s2 + $0xd8] sm:$0xff] %v1732_v40  }
 0x158   :  { %v666_v44 = vpop.f32.mrb[48].mxu0  ;;  %v2330_v45 = vpop.f32.mrb[48].mxu1 }
 0x159   :  { %v1168_v48 = vadd.f32 %v1167_v36, %v666_v44  ;;  %v1239_v49 = vmul.f32 %v666_v44, %v666_v44  ;;  %v668_v51 = vpop.f32.mrb[49].mxu0  ;;  %v796_v52 = vpop.f32.mrb[49].mxu1 }
 0x15a   :  { %v669_v54 = vpop.f32.mrb[50].mxu0  ;;  %v2332_v55 = vpop.f32.mrb[50].mxu1 }
 0x15b   :  { %v1302_v56 = vadd.f32 %v1301_v43, %v1239_v49  ;;  %v1657_v58 = vpack.c.bf16 %v669_v54, %v666_v44  ;;  %v1169_v59 = vadd.f32 %v1168_v48, %v669_v54  ;;  %v1240_v60 = vmul.f32 %v669_v54, %v669_v54  ;;  %v671_v61 = vpop.f32.mrb[51].mxu0  ;;  %v799_v0 = vpop.f32.mrb[51].mxu1 }
 0x15c   :  { %v1737_v2 = vpack.c.bf16 %v2332_v55, %v2330_v45 }
 0x15d   :  { %1765 = vst [vmem:[%s2482_s2 + $0x60] sm:$0xff] %v1657_v58   ;;  %v1303_v3 = vadd.f32 %v1302_v56, %v1240_v60 }
 0x15e   :  { %1781 = vst [vmem:[%s2482_s2 + $0xe0] sm:$0xff] %v1737_v2  }
 0x160   :  { %v674_v4 = vpop.f32.mrb[52].mxu0  ;;  %v2342_v5 = vpop.f32.mrb[52].mxu1 }
 0x161   :  { %v1170_v8 = vadd.f32 %v1169_v59, %v674_v4  ;;  %v1241_v10 = vmul.f32 %v674_v4, %v674_v4  ;;  %v676_v12 = vpop.f32.mrb[53].mxu0  ;;  %v804_v13 = vpop.f32.mrb[53].mxu1 }
 0x162   :  { %v677_v14 = vpop.f32.mrb[54].mxu0  ;;  %v2344_v15 = vpop.f32.mrb[54].mxu1 }
 0x163   :  { %v1304_v18 = vadd.f32 %v1303_v3, %v1241_v10  ;;  %v1662_v19 = vpack.c.bf16 %v677_v14, %v674_v4  ;;  %v1171_v20 = vadd.f32 %v1170_v8, %v677_v14  ;;  %v1242_v23 = vmul.f32 %v677_v14, %v677_v14  ;;  %v679_v24 = vpop.f32.mrb[55].mxu0  ;;  %v807_v26 = vpop.f32.mrb[55].mxu1 }
 0x164   :  { %v1742_v27 = vpack.c.bf16 %v2344_v15, %v2342_v5 }
 0x165   :  { %1766 = vst [vmem:[%s2482_s2 + $0x68] sm:$0xff] %v1662_v19   ;;  %v1305_v30 = vadd.f32 %v1304_v18, %v1242_v23  ;;  %v1247_v23 = vmul.f32 %v2186_v11, %v2186_v11 }
 0x166   :  { %1782 = vst [vmem:[%s2482_s2 + $0xe8] sm:$0xff] %v1742_v27   ;;  %v1248_v27 = vmul.f32 %v2188_v16, %v2188_v16 }
 0x168   :  { %v682_v33 = vpop.f32.mrb[56].mxu0  ;;  %v2354_v34 = vpop.f32.mrb[56].mxu1 }
 0x169   :  { %v1172_v36 = vadd.f32 %v1171_v20, %v682_v33  ;;  %v1243_v37 = vmul.f32 %v682_v33, %v682_v33  ;;  %v684_v38 = vpop.f32.mrb[57].mxu0  ;;  %v812_v39 = vpop.f32.mrb[57].mxu1 }
 0x16a   :  { %v685_v40 = vpop.f32.mrb[58].mxu0  ;;  %v2356_v43 = vpop.f32.mrb[58].mxu1 }
 0x16b   :  { %v1306_v44 = vadd.f32 %v1305_v30, %v1243_v37  ;;  %v1667_v48 = vpack.c.bf16 %v685_v40, %v682_v33  ;;  %v1173_v49 = vadd.f32 %v1172_v36, %v685_v40  ;;  %v1244_v51 = vmul.f32 %v685_v40, %v685_v40  ;;  %v687_v52 = vpop.f32.mrb[59].mxu0  ;;  %v815_v54 = vpop.f32.mrb[59].mxu1 }
 0x16c   :  { %v1747_v56 = vpack.c.bf16 %v2356_v43, %v2354_v34  ;;  %v1249_v36 = vmul.f32 %v2198_v25, %v2198_v25 }
 0x16d   :  { %1767 = vst [vmem:[%s2482_s2 + $0x70] sm:$0xff] %v1667_v48   ;;  %v1307_v58 = vadd.f32 %v1306_v44, %v1244_v51  ;;  %v1251_v44 = vmul.f32 %v2210_v41, %v2210_v41 }
 0x16e   :  { %1783 = vst [vmem:[%s2482_s2 + $0xf0] sm:$0xff] %v1747_v56  }
 0x170   :  { %v690_v59 = vpop.f32.mrb[60].mxu0  ;;  %v2366_v60 = vpop.f32.mrb[60].mxu1 }
 0x171   :  { %v1174_v61 = vadd.f32 %v1173_v49, %v690_v59  ;;  %v1245_v0 = vmul.f32 %v690_v59, %v690_v59  ;;  %v692_v2 = vpop.f32.mrb[61].mxu0  ;;  %v820_v3 = vpop.f32.mrb[61].mxu1 }
 0x172   :  { %v693_v4 = vpop.f32.mrb[62].mxu0  ;;  %v2368_v8 = vpop.f32.mrb[62].mxu1 }
 0x173   :  { %v1308_v10 = vadd.f32 %v1307_v58, %v1245_v0  ;;  %v1672_v12 = vpack.c.bf16 %v693_v4, %v690_v59  ;;  %v1175_v13 = vadd.f32 %v1174_v61, %v693_v4  ;;  %v1246_v14 = vmul.f32 %v693_v4, %v693_v4  ;;  %v695_v18 = vpop.f32.mrb[63].mxu0  ;;  %v823_v19 = vpop.f32.mrb[63].mxu1 }
 0x174   :  { %v1752_v20 = vpack.c.bf16 %v2368_v8, %v2366_v60 }
 0x175   :  { %1768 = vst [vmem:[%s2482_s2 + $0x78] sm:$0xff] %v1672_v12   ;;  %v1176_v24 = vadd.f32 %v1175_v13, %v2186_v11  ;;  %v1309_v26 = vadd.f32 %v1308_v10, %v1246_v14  ;;  %v1250_v11 = vmul.f32 %v2200_v31, %v2200_v31 }
 0x176   :  { %1784 = vst [vmem:[%s2482_s2 + $0xf8] sm:$0xff] %v1752_v20  }
 0x177   :  { %v1177_v30 = vadd.f32 %v1176_v24, %v2188_v16  ;;  %v1310_v33 = vadd.f32 %v1309_v26, %v1247_v23  ;;  %v1252_v16 = vmul.f32 %v2212_v47, %v2212_v47 }
 0x179   :  { %v1178_v37 = vadd.f32 %v1177_v30, %v2198_v25  ;;  %v1311_v38 = vadd.f32 %v1310_v33, %v1248_v27  ;;  %v1253_v25 = vmul.f32 %v2222_v57, %v2222_v57  ;;  %v1263_v30 = vmul.f32 %v2282_v21, %v2282_v21 }
 0x17b   :  { %v1179_v39 = vadd.f32 %v1178_v37, %v2200_v31  ;;  %v1312_v40 = vadd.f32 %v1311_v38, %v1249_v36  ;;  %v1254_v31 = vmul.f32 %v2224_v63, %v2224_v63  ;;  %v1264_v37 = vmul.f32 %v2284_v29, %v2284_v29 }
 0x17d   :  { %v1180_v48 = vadd.f32 %v1179_v39, %v2210_v41  ;;  %v1313_v49 = vadd.f32 %v1312_v40, %v1250_v11  ;;  %v1255_v41 = vmul.f32 %v2234_v9, %v2234_v9  ;;  %v1265_v11 = vmul.f32 %v2294_v42, %v2294_v42 }
 0x17e   :  { %v1266_v40 = vmul.f32 %v2296_v50, %v2296_v50 }
 0x17f   :  { %v1181_v51 = vadd.f32 %v1180_v48, %v2212_v47  ;;  %v1314_v52 = vadd.f32 %v1313_v49, %v1251_v44  ;;  %v1256_v47 = vmul.f32 %v2236_v17, %v2236_v17  ;;  %v1267_v48 = vmul.f32 %v2306_v62, %v2306_v62 }
 0x181   :  { %v1182_v54 = vadd.f32 %v1181_v51, %v2222_v57  ;;  %v1315_v56 = vadd.f32 %v1314_v52, %v1252_v16  ;;  %v1257_v57 = vmul.f32 %v2246_v28, %v2246_v28  ;;  %v1268_v16 = vmul.f32 %v2308_v6, %v2308_v6 }
 0x182   :  { %v1269_v52 = vmul.f32 %v2318_v22, %v2318_v22 }
 0x183   :  { %v1183_v58 = vadd.f32 %v1182_v54, %v2224_v63  ;;  %v1316_v59 = vadd.f32 %v1315_v56, %v1253_v25  ;;  %v1258_v63 = vmul.f32 %v2248_v35, %v2248_v35  ;;  %v1270_v54 = vmul.f32 %v2320_v32, %v2320_v32 }
 0x185   :  { %v1317_v61 = vadd.f32 %v1316_v59, %v1254_v31  ;;  %v1184_v0 = vadd.f32 %v1183_v58, %v2234_v9  ;;  %v1259_v9 = vmul.f32 %v2258_v46, %v2258_v46  ;;  %v1271_v31 = vmul.f32 %v2330_v45, %v2330_v45 }
 0x186   :  { %v1272_v59 = vmul.f32 %v2332_v55, %v2332_v55 }
 0x187   :  { %v1185_v2 = vadd.f32 %v1184_v0, %v2236_v17  ;;  %v1318_v3 = vadd.f32 %v1317_v61, %v1255_v41  ;;  %v1260_v17 = vmul.f32 %v2260_v53, %v2260_v53  ;;  %v1273_v61 = vmul.f32 %v2342_v5, %v2342_v5 }
 0x189   :  { %v1186_v4 = vadd.f32 %v1185_v2, %v2246_v28  ;;  %v1319_v10 = vadd.f32 %v1318_v3, %v1256_v47  ;;  %v1261_v28 = vmul.f32 %v2270_v1, %v2270_v1  ;;  %v1274_v47 = vmul.f32 %v2344_v15, %v2344_v15 }
 0x18a   :  { %v1275_v3 = vmul.f32 %v2354_v34, %v2354_v34 }
 0x18b   :  { %v1187_v12 = vadd.f32 %v1186_v4, %v2248_v35  ;;  %v1320_v13 = vadd.f32 %v1319_v10, %v1257_v57  ;;  %v1262_v35 = vmul.f32 %v2272_v7, %v2272_v7  ;;  %v1276_v4 = vmul.f32 %v2356_v43, %v2356_v43 }
 0x18d   :  { %v1188_v14 = vadd.f32 %v1187_v12, %v2258_v46  ;;  %v1321_v18 = vadd.f32 %v1320_v13, %v1258_v63  ;;  %v1278_v13 = vmul.f32 %v2368_v8, %v2368_v8 }
 0x18f   :  { %v1189_v19 = vadd.f32 %v1188_v14, %v2260_v53  ;;  %v1322_v20 = vadd.f32 %v1321_v18, %v1259_v9 }
 0x191   :  { %v1190_v23 = vadd.f32 %v1189_v19, %v2270_v1  ;;  %v1323_v24 = vadd.f32 %v1322_v20, %v1260_v17 }
 0x193   :  { %v1191_v26 = vadd.f32 %v1190_v23, %v2272_v7  ;;  %v1324_v27 = vadd.f32 %v1323_v24, %v1261_v28 }
 0x195   :  { %v1192_v46 = vadd.f32 %v1191_v26, %v2282_v21  ;;  %v1325_v33 = vadd.f32 %v1324_v27, %v1262_v35 }
 0x197   :  { %v1326_v53 = vadd.f32 %v1325_v33, %v1263_v30  ;;  %v1193_v36 = vadd.f32 %v1192_v46, %v2284_v29 }
 0x199   :  { %v1327_v1 = vadd.f32 %v1326_v53, %v1264_v37  ;;  %v1194_v38 = vadd.f32 %v1193_v36, %v2294_v42 }
 0x19b   :  { %v1328_v7 = vadd.f32 %v1327_v1, %v1265_v11  ;;  %v1195_v39 = vadd.f32 %v1194_v38, %v2296_v50 }
 0x19d   :  { %v1329_v21 = vadd.f32 %v1328_v7, %v1266_v40  ;;  %v1196_v44 = vadd.f32 %v1195_v39, %v2306_v62 }
 0x19f   :  { %v1330_v49 = vadd.f32 %v1329_v21, %v1267_v48  ;;  %v1197_v29 = vadd.f32 %v1196_v44, %v2308_v6 }
 0x1a1   :  { %v1331_v51 = vadd.f32 %v1330_v49, %v1268_v16  ;;  %v1198_v42 = vadd.f32 %v1197_v29, %v2318_v22 }
 0x1a3   :  { %v1332_v25 = vadd.f32 %v1331_v51, %v1269_v52  ;;  %v1199_v50 = vadd.f32 %v1198_v42, %v2320_v32 }
 0x1a5   :  { %v1333_v56 = vadd.f32 %v1332_v25, %v1270_v54  ;;  %v1200_v62 = vadd.f32 %v1199_v50, %v2330_v45 }
 0x1a7   :  { %v1334_v58 = vadd.f32 %v1333_v56, %v1271_v31  ;;  %v1201_v6 = vadd.f32 %v1200_v62, %v2332_v55 }
 0x1a9   :  { %v1335_v41 = vadd.f32 %v1334_v58, %v1272_v59  ;;  %v1202_v22 = vadd.f32 %v1201_v6, %v2342_v5  ;;  %v1277_v5 = vmul.f32 %v2366_v60, %v2366_v60 }
 0x1ab   :  { %v1336_v0 = vadd.f32 %v1335_v41, %v1273_v61  ;;  %v1203_v32 = vadd.f32 %v1202_v22, %v2344_v15 }
 0x1ad   :  { %v1337_v2 = vadd.f32 %v1336_v0, %v1274_v47  ;;  %v1204_v45 = vadd.f32 %v1203_v32, %v2354_v34 }
 0x1af   :  { %v1338_v57 = vadd.f32 %v1337_v2, %v1275_v3  ;;  %v1205_v55 = vadd.f32 %v1204_v45, %v2356_v43 }
 0x1b1   :  { %v1339_v10 = vadd.f32 %v1338_v57, %v1276_v4  ;;  %v1206_v63 = vadd.f32 %v1205_v55, %v2366_v60 }
 0x1b3   :  { %v1340_v12 = vadd.f32 %v1339_v10, %v1277_v5  ;;  %v1207_v15 = vadd.f32 %v1206_v63, %v2368_v8 }
 0x1b5   :  { %v1208_v9 = vrot.slane %v1207_v15, 4  ;;  %v1341_v34 = vadd.f32 %v1340_v12, %v1278_v13 }
 0x1b7   :  { %v1209_v14 = vadd.f32 %v1208_v9, %v1207_v15  ;;  %v1342_v18 = vrot.slane %v1341_v34, 4 }
 0x1b9   :  { %v1210_v17 = vrot.slane %v1209_v14, 2  ;;  %v1343_v19 = vadd.f32 %v1342_v18, %v1341_v34 }
 0x1bb   :  { %v1211_v20 = vadd.f32 %v1210_v17, %v1209_v14  ;;  %v1344_v43 = vrot.slane %v1343_v19, 2 }
 0x1bd   :  { %v1212_v28 = vrot.slane %v1211_v20, 1  ;;  %v1345_v23 = vadd.f32 %v1344_v43, %v1343_v19 }
 0x1bf   :  { %v1213_v24 = vadd.f32 %v1212_v28, %v1211_v20  ;;  %v1346_v35 = vrot.slane %v1345_v23, 1 }
 0x1c1   :  { %1214 = vst [vmem:[%s2483_s3] sm:$0x1] %v1213_v24  ;;  %v1347_v60 = vadd.f32 %v1346_v35, %v1345_v23 }
 0x1c3   :  { %1348 = vst [vmem:[%s2484_s4] sm:$0x1] %v1347_v60 }

// kernel: _lambda_.16
= control target key start
LH: loop header
LB: loop body
LE: loop exit
PB: predicated region body
PF: predicated region fallthrough
CT: control target
= control target key end

     0   :  { %s1502_s0 = inlined_call_operand.vmem [shape: bf16[512,128], index: 0, kind: input, shape index: {}]   ;;  %s1503_s1 = inlined_call_operand.vmem [shape: f32[1,128], index: 1, kind: input, shape index: {}]   ;;  %s1504_s2 = inlined_call_operand.vmem [shape: f32[1,128], index: 2, kind: input, shape index: {}]   ;;  %s1505_s3 = inlined_call_operand.vmem [shape: bf16[512,128], index: 3, kind: output, shape index: {}]  }
   0x1   :  { %v803_v0 = vld [vmem:[%s1502_s0] sm:$0xff]   ;;  %v1090_v4 = vld [vmem:[%s1502_s0 + $0x8] sm:$0xff]   ;;  %v1091_v5 = vld [vmem:[%s1502_s0 + $0x10] sm:$0xff]  }
   0x2   :  { %v1178_v1 = vld [vmem:[%s1503_s1] ss:$0 sm:$0xff]  ;;  %v804_v2 = vunpack.c.l.bf16 %v803_v0  ;;  %v805_v3 = vunpack.c.h.bf16 %v803_v0  ;;  %v1092_v6 = vld [vmem:[%s1502_s0 + $0x18] sm:$0xff]   ;;  %v808_v8 = vunpack.c.l.bf16 %v1090_v4  ;;  %v809_v9 = vunpack.c.h.bf16 %v1090_v4  ;;  %v1094_v33 = vld [vmem:[%s1502_s0 + $0x28] sm:$0xff]  }
   0x3   :  { %v1192_v7 = vld [vmem:[%s1504_s2] ss:$0 sm:$0xff]  ;;  %v812_v10 = vunpack.c.l.bf16 %v1091_v5  ;;  %v813_v11 = vunpack.c.h.bf16 %v1091_v5  ;;  %v816_v14 = vunpack.c.l.bf16 %v1092_v6  ;;  %v817_v15 = vunpack.c.h.bf16 %v1092_v6  ;;  %v1095_v38 = vld [vmem:[%s1502_s0 + $0x30] sm:$0xff]   ;;  %v1096_v43 = vld [vmem:[%s1502_s0 + $0x38] sm:$0xff]  }
   0x4   :  { %v149_v12 = vmul.f32 %v804_v2, %v1178_v1  ;;  %v150_v13 = vmul.f32 %v805_v3, %v1178_v1  ;;  %v151_v16 = vmul.f32 %v808_v8, %v1178_v1  ;;  %v152_v17 = vmul.f32 %v809_v9, %v1178_v1  ;;  %v1093_v28 = vld [vmem:[%s1502_s0 + $0x20] sm:$0xff]  }
   0x5   :  { %v153_v18 = vmul.f32 %v812_v10, %v1178_v1  ;;  %v154_v19 = vmul.f32 %v813_v11, %v1178_v1  ;;  %v155_v22 = vmul.f32 %v816_v14, %v1178_v1  ;;  %v156_v23 = vmul.f32 %v817_v15, %v1178_v1  ;;  %v1097_v0 = vld [vmem:[%s1502_s0 + $0x40] sm:$0xff]   ;;  %v1098_v11 = vld [vmem:[%s1502_s0 + $0x48] sm:$0xff]  }
   0x6   :  { %v220_v20 = vadd.f32 %v1192_v7, %v149_v12  ;;  %v221_v21 = vadd.f32 %v1192_v7, %v150_v13  ;;  %v222_v24 = vadd.f32 %v1192_v7, %v151_v16  ;;  %v223_v25 = vadd.f32 %v1192_v7, %v152_v17  ;;  %v1099_v16 = vld [vmem:[%s1502_s0 + $0x50] sm:$0xff]  }
   0x7   :  { %v224_v26 = vadd.f32 %v1192_v7, %v153_v18  ;;  %v225_v27 = vadd.f32 %v1192_v7, %v154_v19  ;;  %v226_v31 = vadd.f32 %v1192_v7, %v155_v22  ;;  %v227_v32 = vadd.f32 %v1192_v7, %v156_v23 }
   0x8   :  { %v284_v29 = vmax.f32 %v220_v20, 0.0  ;;  %v285_v30 = vmax.f32 %v221_v21, 0.0  ;;  %v286_v34 = vmax.f32 %v222_v24, 0.0  ;;  %v287_v35 = vmax.f32 %v223_v25, 0.0  ;;  %v1100_v25 = vld [vmem:[%s1502_s0 + $0x58] sm:$0xff]  }
   0x9   :  { %v288_v36 = vmax.f32 %v224_v26, 0.0  ;;  %v289_v37 = vmax.f32 %v225_v27, 0.0  ;;  %v290_v40 = vmax.f32 %v226_v31, 0.0  ;;  %v291_v41 = vmax.f32 %v227_v32, 0.0 }
   0xa   :  { %v933_v39 = vpack.c.bf16 %v285_v30, %v284_v29  ;;  %v820_v42 = vunpack.c.l.bf16 %v1093_v28  ;;  %v938_v44 = vpack.c.bf16 %v287_v35, %v286_v34  ;;  %v821_v46 = vunpack.c.h.bf16 %v1093_v28 }
   0xb   :  { %v943_v45 = vpack.c.bf16 %v289_v37, %v288_v36  ;;  %v824_v47 = vunpack.c.l.bf16 %v1094_v33  ;;  %v948_v48 = vpack.c.bf16 %v291_v41, %v290_v40  ;;  %v825_v50 = vunpack.c.h.bf16 %v1094_v33 }
   0xc   :  { %934 = vst [vmem:[%s1505_s3] sm:$0xff] %v933_v39   ;;  %v157_v49 = vmul.f32 %v820_v42, %v1178_v1  ;;  %v828_v51 = vunpack.c.l.bf16 %v1095_v38  ;;  %1121 = vst [vmem:[%s1505_s3 + $0x8] sm:$0xff] %v938_v44   ;;  %v158_v52 = vmul.f32 %v821_v46, %v1178_v1  ;;  %v829_v54 = vunpack.c.h.bf16 %v1095_v38  ;;  %v1101_v38 = vld [vmem:[%s1502_s0 + $0x60] sm:$0xff]  }
   0xd   :  { %1122 = vst [vmem:[%s1505_s3 + $0x10] sm:$0xff] %v943_v45   ;;  %v159_v53 = vmul.f32 %v824_v47, %v1178_v1  ;;  %v832_v55 = vunpack.c.l.bf16 %v1096_v43  ;;  %1123 = vst [vmem:[%s1505_s3 + $0x18] sm:$0xff] %v948_v48   ;;  %v160_v57 = vmul.f32 %v825_v50, %v1178_v1  ;;  %v833_v59 = vunpack.c.h.bf16 %v1096_v43 }
   0xe   :  { %v228_v56 = vadd.f32 %v1192_v7, %v157_v49  ;;  %v161_v58 = vmul.f32 %v828_v51, %v1178_v1  ;;  %v229_v60 = vadd.f32 %v1192_v7, %v158_v52  ;;  %v162_v62 = vmul.f32 %v829_v54, %v1178_v1  ;;  %v1102_v51 = vld [vmem:[%s1502_s0 + $0x68] sm:$0xff]  }
   0xf   :  { %v230_v61 = vadd.f32 %v1192_v7, %v159_v53  ;;  %v163_v63 = vmul.f32 %v832_v55, %v1178_v1  ;;  %v231_v3 = vadd.f32 %v1192_v7, %v160_v57  ;;  %v164_v5 = vmul.f32 %v833_v59, %v1178_v1 }
  0x10   :  { %v292_v2 = vmax.f32 %v228_v56, 0.0  ;;  %v232_v4 = vadd.f32 %v1192_v7, %v161_v58  ;;  %v293_v6 = vmax.f32 %v229_v60, 0.0  ;;  %v233_v9 = vadd.f32 %v1192_v7, %v162_v62  ;;  %v1103_v60 = vld [vmem:[%s1502_s0 + $0x70] sm:$0xff]  }
  0x11   :  { %v294_v8 = vmax.f32 %v230_v61, 0.0  ;;  %v234_v10 = vadd.f32 %v1192_v7, %v163_v63  ;;  %v295_v12 = vmax.f32 %v231_v3, 0.0  ;;  %v235_v14 = vadd.f32 %v1192_v7, %v164_v5 }
  0x12   :  { %v296_v13 = vmax.f32 %v232_v4, 0.0  ;;  %v836_v15 = vunpack.c.l.bf16 %v1097_v0  ;;  %v953_v17 = vpack.c.bf16 %v293_v6, %v292_v2  ;;  %v297_v18 = vmax.f32 %v233_v9, 0.0  ;;  %v1104_v2 = vld [vmem:[%s1502_s0 + $0x78] sm:$0xff]  }
  0x13   :  { %v298_v19 = vmax.f32 %v234_v10, 0.0  ;;  %v837_v20 = vunpack.c.h.bf16 %v1097_v0  ;;  %v958_v21 = vpack.c.bf16 %v295_v12, %v294_v8  ;;  %v299_v22 = vmax.f32 %v235_v14, 0.0  ;;  %v1105_v12 = vld [vmem:[%s1502_s0 + $0x80] sm:$0xff]  }
  0x14   :  { %v165_v23 = vmul.f32 %v836_v15, %v1178_v1  ;;  %v840_v24 = vunpack.c.l.bf16 %v1098_v11  ;;  %1124 = vst [vmem:[%s1505_s3 + $0x20] sm:$0xff] %v953_v17   ;;  %v963_v26 = vpack.c.bf16 %v297_v18, %v296_v13  ;;  %v841_v28 = vunpack.c.h.bf16 %v1098_v11 }
  0x15   :  { %v166_v27 = vmul.f32 %v837_v20, %v1178_v1  ;;  %v844_v29 = vunpack.c.l.bf16 %v1099_v16  ;;  %1125 = vst [vmem:[%s1505_s3 + $0x28] sm:$0xff] %v958_v21   ;;  %v968_v30 = vpack.c.bf16 %v299_v22, %v298_v19  ;;  %v845_v33 = vunpack.c.h.bf16 %v1099_v16 }
  0x16   :  { %v236_v31 = vadd.f32 %v1192_v7, %v165_v23  ;;  %v167_v32 = vmul.f32 %v840_v24, %v1178_v1  ;;  %1126 = vst [vmem:[%s1505_s3 + $0x30] sm:$0xff] %v963_v26   ;;  %v168_v35 = vmul.f32 %v841_v28, %v1178_v1  ;;  %v848_v37 = vunpack.c.l.bf16 %v1100_v25 }
  0x17   :  { %v237_v34 = vadd.f32 %v1192_v7, %v166_v27  ;;  %v169_v36 = vmul.f32 %v844_v29, %v1178_v1  ;;  %1127 = vst [vmem:[%s1505_s3 + $0x38] sm:$0xff] %v968_v30   ;;  %v170_v41 = vmul.f32 %v845_v33, %v1178_v1  ;;  %v849_v42 = vunpack.c.h.bf16 %v1100_v25  ;;  %v1106_v29 = vld [vmem:[%s1502_s0 + $0x88] sm:$0xff]  }
  0x18   :  { %v300_v39 = vmax.f32 %v236_v31, 0.0  ;;  %v238_v40 = vadd.f32 %v1192_v7, %v167_v32  ;;  %v239_v44 = vadd.f32 %v1192_v7, %v168_v35  ;;  %v171_v46 = vmul.f32 %v848_v37, %v1178_v1 }
  0x19   :  { %v301_v43 = vmax.f32 %v237_v34, 0.0  ;;  %v240_v45 = vadd.f32 %v1192_v7, %v169_v36  ;;  %v241_v48 = vadd.f32 %v1192_v7, %v170_v41  ;;  %v172_v49 = vmul.f32 %v849_v42, %v1178_v1  ;;  %v1107_v34 = vld [vmem:[%s1502_s0 + $0x90] sm:$0xff]  }
  0x1a   :  { %v302_v47 = vmax.f32 %v238_v40, 0.0  ;;  %v852_v50 = vunpack.c.l.bf16 %v1101_v38  ;;  %v303_v53 = vmax.f32 %v239_v44, 0.0  ;;  %v242_v55 = vadd.f32 %v1192_v7, %v171_v46 }
  0x1b   :  { %v973_v52 = vpack.c.bf16 %v301_v43, %v300_v39  ;;  %v304_v54 = vmax.f32 %v240_v45, 0.0  ;;  %v305_v56 = vmax.f32 %v241_v48, 0.0  ;;  %v243_v57 = vadd.f32 %v1192_v7, %v172_v49  ;;  %v1108_v43 = vld [vmem:[%s1502_s0 + $0x98] sm:$0xff]  }
  0x1c   :  { %v853_v58 = vunpack.c.h.bf16 %v1101_v38  ;;  %v173_v59 = vmul.f32 %v852_v50, %v1178_v1  ;;  %v978_v61 = vpack.c.bf16 %v303_v53, %v302_v47  ;;  %v306_v62 = vmax.f32 %v242_v55, 0.0 }
  0x1d   :  { %1128 = vst [vmem:[%s1505_s3 + $0x40] sm:$0xff] %v973_v52   ;;  %v856_v63 = vunpack.c.l.bf16 %v1102_v51  ;;  %v857_v0 = vunpack.c.h.bf16 %v1102_v51  ;;  %v983_v3 = vpack.c.bf16 %v305_v56, %v304_v54  ;;  %v307_v4 = vmax.f32 %v243_v57, 0.0  ;;  %v1109_v56 = vld [vmem:[%s1502_s0 + $0xa0] sm:$0xff]  }
  0x1e   :  { %v174_v5 = vmul.f32 %v853_v58, %v1178_v1  ;;  %v244_v6 = vadd.f32 %v1192_v7, %v173_v59  ;;  %1129 = vst [vmem:[%s1505_s3 + $0x48] sm:$0xff] %v978_v61   ;;  %v860_v10 = vunpack.c.l.bf16 %v1103_v60  ;;  %v861_v11 = vunpack.c.h.bf16 %v1103_v60 }
  0x1f   :  { %v175_v8 = vmul.f32 %v856_v63, %v1178_v1  ;;  %v176_v9 = vmul.f32 %v857_v0, %v1178_v1  ;;  %1130 = vst [vmem:[%s1505_s3 + $0x50] sm:$0xff] %v983_v3   ;;  %v988_v13 = vpack.c.bf16 %v307_v4, %v306_v62  ;;  %v864_v16 = vunpack.c.l.bf16 %v1104_v2 }
  0x20   :  { %v245_v14 = vadd.f32 %v1192_v7, %v174_v5  ;;  %v308_v15 = vmax.f32 %v244_v6, 0.0  ;;  %v177_v19 = vmul.f32 %v860_v10, %v1178_v1  ;;  %v178_v20 = vmul.f32 %v861_v11, %v1178_v1 }
  0x21   :  { %v246_v17 = vadd.f32 %v1192_v7, %v175_v8  ;;  %v247_v18 = vadd.f32 %v1192_v7, %v176_v9  ;;  %1131 = vst [vmem:[%s1505_s3 + $0x58] sm:$0xff] %v988_v13   ;;  %v865_v22 = vunpack.c.h.bf16 %v1104_v2  ;;  %v179_v23 = vmul.f32 %v864_v16, %v1178_v1  ;;  %v1110_v2 = vld [vmem:[%s1502_s0 + $0xa8] sm:$0xff]   ;;  %v1111_v16 = vld [vmem:[%s1502_s0 + $0xb0] sm:$0xff]  }
  0x22   :  { %v309_v21 = vmax.f32 %v245_v14, 0.0  ;;  %v868_v24 = vunpack.c.l.bf16 %v1105_v12  ;;  %v248_v27 = vadd.f32 %v1192_v7, %v177_v19  ;;  %v249_v28 = vadd.f32 %v1192_v7, %v178_v20 }
  0x23   :  { %v310_v25 = vmax.f32 %v246_v17, 0.0  ;;  %v311_v26 = vmax.f32 %v247_v18, 0.0  ;;  %v180_v31 = vmul.f32 %v865_v22, %v1178_v1  ;;  %v250_v32 = vadd.f32 %v1192_v7, %v179_v23 }
  0x24   :  { %v993_v30 = vpack.c.bf16 %v309_v21, %v308_v15  ;;  %v869_v33 = vunpack.c.h.bf16 %v1105_v12  ;;  %v312_v36 = vmax.f32 %v248_v27, 0.0  ;;  %v313_v37 = vmax.f32 %v249_v28, 0.0  ;;  %v1112_v21 = vld [vmem:[%s1502_s0 + $0xb8] sm:$0xff]  }
  0x25   :  { %v998_v35 = vpack.c.bf16 %v311_v26, %v310_v25  ;;  %v181_v38 = vmul.f32 %v868_v24, %v1178_v1  ;;  %v251_v39 = vadd.f32 %v1192_v7, %v180_v31  ;;  %v314_v40 = vmax.f32 %v250_v32, 0.0 }
  0x26   :  { %1132 = vst [vmem:[%s1505_s3 + $0x60] sm:$0xff] %v993_v30   ;;  %v182_v41 = vmul.f32 %v869_v33, %v1178_v1  ;;  %v872_v42 = vunpack.c.l.bf16 %v1106_v29  ;;  %v1003_v44 = vpack.c.bf16 %v313_v37, %v312_v36  ;;  %v873_v46 = vunpack.c.h.bf16 %v1106_v29 }
  0x27   :  { %1133 = vst [vmem:[%s1505_s3 + $0x68] sm:$0xff] %v998_v35   ;;  %v252_v45 = vadd.f32 %v1192_v7, %v181_v38  ;;  %v876_v47 = vunpack.c.l.bf16 %v1107_v34  ;;  %v315_v48 = vmax.f32 %v251_v39, 0.0  ;;  %v877_v51 = vunpack.c.h.bf16 %v1107_v34  ;;  %v1113_v34 = vld [vmem:[%s1502_s0 + $0xc0] sm:$0xff]  }
  0x28   :  { %v253_v49 = vadd.f32 %v1192_v7, %v182_v41  ;;  %v183_v50 = vmul.f32 %v872_v42, %v1178_v1  ;;  %1134 = vst [vmem:[%s1505_s3 + $0x70] sm:$0xff] %v1003_v44   ;;  %v184_v53 = vmul.f32 %v873_v46, %v1178_v1  ;;  %v880_v55 = vunpack.c.l.bf16 %v1108_v43 }
  0x29   :  { %v316_v52 = vmax.f32 %v252_v45, 0.0  ;;  %v185_v54 = vmul.f32 %v876_v47, %v1178_v1  ;;  %v1008_v57 = vpack.c.bf16 %v315_v48, %v314_v40  ;;  %v186_v60 = vmul.f32 %v877_v51, %v1178_v1  ;;  %v1114_v47 = vld [vmem:[%s1502_s0 + $0xc8] sm:$0xff]  }
  0x2a   :  { %v317_v58 = vmax.f32 %v253_v49, 0.0  ;;  %v254_v59 = vadd.f32 %v1192_v7, %v183_v50  ;;  %v255_v61 = vadd.f32 %v1192_v7, %v184_v53  ;;  %v881_v63 = vunpack.c.h.bf16 %v1108_v43 }
  0x2b   :  { %v256_v62 = vadd.f32 %v1192_v7, %v185_v54  ;;  %v187_v0 = vmul.f32 %v880_v55, %v1178_v1  ;;  %1135 = vst [vmem:[%s1505_s3 + $0x78] sm:$0xff] %v1008_v57   ;;  %v257_v5 = vadd.f32 %v1192_v7, %v186_v60  ;;  %v884_v6 = vunpack.c.l.bf16 %v1109_v56 }
  0x2c   :  { %v1013_v3 = vpack.c.bf16 %v317_v58, %v316_v52  ;;  %v318_v4 = vmax.f32 %v254_v59, 0.0  ;;  %v319_v8 = vmax.f32 %v255_v61, 0.0  ;;  %v188_v10 = vmul.f32 %v881_v63, %v1178_v1  ;;  %v1115_v52 = vld [vmem:[%s1502_s0 + $0xd0] sm:$0xff]   ;;  %v1116_v61 = vld [vmem:[%s1502_s0 + $0xd8] sm:$0xff]  }
  0x2d   :  { %v320_v9 = vmax.f32 %v256_v62, 0.0  ;;  %v258_v11 = vadd.f32 %v1192_v7, %v187_v0  ;;  %v321_v12 = vmax.f32 %v257_v5, 0.0  ;;  %v885_v13 = vunpack.c.h.bf16 %v1109_v56 }
  0x2e   :  { %1136 = vst [vmem:[%s1505_s3 + $0x80] sm:$0xff] %v1013_v3   ;;  %v189_v14 = vmul.f32 %v884_v6, %v1178_v1  ;;  %v888_v15 = vunpack.c.l.bf16 %v1110_v2  ;;  %v1018_v17 = vpack.c.bf16 %v319_v8, %v318_v4  ;;  %v259_v18 = vadd.f32 %v1192_v7, %v188_v10 }
  0x2f   :  { %v322_v19 = vmax.f32 %v258_v11, 0.0  ;;  %v889_v20 = vunpack.c.h.bf16 %v1110_v2  ;;  %v1023_v22 = vpack.c.bf16 %v321_v12, %v320_v9  ;;  %v190_v23 = vmul.f32 %v885_v13, %v1178_v1  ;;  %v1117_v12 = vld [vmem:[%s1502_s0 + $0xe0] sm:$0xff]  }
  0x30   :  { %v260_v24 = vadd.f32 %v1192_v7, %v189_v14  ;;  %v191_v25 = vmul.f32 %v888_v15, %v1178_v1  ;;  %1137 = vst [vmem:[%s1505_s3 + $0x88] sm:$0xff] %v1018_v17   ;;  %v323_v26 = vmax.f32 %v259_v18, 0.0  ;;  %v892_v28 = vunpack.c.l.bf16 %v1111_v16 }
  0x31   :  { %v192_v27 = vmul.f32 %v889_v20, %v1178_v1  ;;  %v893_v29 = vunpack.c.h.bf16 %v1111_v16  ;;  %1138 = vst [vmem:[%s1505_s3 + $0x90] sm:$0xff] %v1023_v22   ;;  %v261_v30 = vadd.f32 %v1192_v7, %v190_v23  ;;  %v896_v33 = vunpack.c.l.bf16 %v1112_v21 }
  0x32   :  { %v324_v31 = vmax.f32 %v260_v24, 0.0  ;;  %v262_v32 = vadd.f32 %v1192_v7, %v191_v25  ;;  %v1028_v35 = vpack.c.bf16 %v323_v26, %v322_v19  ;;  %v193_v37 = vmul.f32 %v892_v28, %v1178_v1 }
  0x33   :  { %v263_v36 = vadd.f32 %v1192_v7, %v192_v27  ;;  %v194_v38 = vmul.f32 %v893_v29, %v1178_v1  ;;  %v325_v39 = vmax.f32 %v261_v30, 0.0  ;;  %v897_v41 = vunpack.c.h.bf16 %v1112_v21  ;;  %v1118_v21 = vld [vmem:[%s1502_s0 + $0xe8] sm:$0xff]  }
  0x34   :  { %v326_v40 = vmax.f32 %v262_v32, 0.0  ;;  %v195_v42 = vmul.f32 %v896_v33, %v1178_v1  ;;  %1139 = vst [vmem:[%s1505_s3 + $0x98] sm:$0xff] %v1028_v35   ;;  %v264_v44 = vadd.f32 %v1192_v7, %v193_v37  ;;  %v900_v46 = vunpack.c.l.bf16 %v1113_v34 }
  0x35   :  { %v327_v43 = vmax.f32 %v263_v36, 0.0  ;;  %v265_v45 = vadd.f32 %v1192_v7, %v194_v38  ;;  %v1033_v48 = vpack.c.bf16 %v325_v39, %v324_v31  ;;  %v196_v49 = vmul.f32 %v897_v41, %v1178_v1  ;;  %v1120_v39 = vld [vmem:[%s1502_s0 + $0xf8] sm:$0xff]  }
  0x36   :  { %v266_v50 = vadd.f32 %v1192_v7, %v195_v42  ;;  %v901_v51 = vunpack.c.h.bf16 %v1113_v34  ;;  %v328_v54 = vmax.f32 %v264_v44, 0.0  ;;  %v197_v56 = vmul.f32 %v900_v46, %v1178_v1  ;;  %v1119_v34 = vld [vmem:[%s1502_s0 + $0xf0] sm:$0xff]  }
  0x37   :  { %v1038_v53 = vpack.c.bf16 %v327_v43, %v326_v40  ;;  %v329_v55 = vmax.f32 %v265_v45, 0.0  ;;  %1140 = vst [vmem:[%s1505_s3 + $0xa0] sm:$0xff] %v1033_v48   ;;  %v267_v57 = vadd.f32 %v1192_v7, %v196_v49  ;;  %v904_v60 = vunpack.c.l.bf16 %v1114_v47 }
  0x38   :  { %v330_v58 = vmax.f32 %v266_v50, 0.0  ;;  %v198_v59 = vmul.f32 %v901_v51, %v1178_v1  ;;  %v268_v63 = vadd.f32 %v1192_v7, %v197_v56  ;;  %v905_v0 = vunpack.c.h.bf16 %v1114_v47 }
  0x39   :  { %1141 = vst [vmem:[%s1505_s3 + $0xa8] sm:$0xff] %v1038_v53   ;;  %v1043_v62 = vpack.c.bf16 %v329_v55, %v328_v54  ;;  %v908_v2 = vunpack.c.l.bf16 %v1115_v52  ;;  %v331_v3 = vmax.f32 %v267_v57, 0.0  ;;  %v199_v5 = vmul.f32 %v904_v60, %v1178_v1 }
  0x3a   :  { %v269_v4 = vadd.f32 %v1192_v7, %v198_v59  ;;  %v909_v6 = vunpack.c.h.bf16 %v1115_v52  ;;  %v332_v8 = vmax.f32 %v268_v63, 0.0  ;;  %v200_v9 = vmul.f32 %v905_v0, %v1178_v1 }
  0x3b   :  { %1142 = vst [vmem:[%s1505_s3 + $0xb0] sm:$0xff] %v1043_v62   ;;  %v201_v10 = vmul.f32 %v908_v2, %v1178_v1  ;;  %v912_v11 = vunpack.c.l.bf16 %v1116_v61  ;;  %v1048_v13 = vpack.c.bf16 %v331_v3, %v330_v58  ;;  %v270_v15 = vadd.f32 %v1192_v7, %v199_v5 }
  0x3c   :  { %v333_v14 = vmax.f32 %v269_v4, 0.0  ;;  %v202_v16 = vmul.f32 %v909_v6, %v1178_v1  ;;  %v271_v17 = vadd.f32 %v1192_v7, %v200_v9  ;;  %v913_v19 = vunpack.c.h.bf16 %v1116_v61 }
  0x3d   :  { %v272_v18 = vadd.f32 %v1192_v7, %v201_v10  ;;  %v203_v20 = vmul.f32 %v912_v11, %v1178_v1  ;;  %1143 = vst [vmem:[%s1505_s3 + $0xb8] sm:$0xff] %v1048_v13   ;;  %v334_v23 = vmax.f32 %v270_v15, 0.0  ;;  %v916_v25 = vunpack.c.l.bf16 %v1117_v12 }
  0x3e   :  { %v1053_v22 = vpack.c.bf16 %v333_v14, %v332_v8  ;;  %v273_v24 = vadd.f32 %v1192_v7, %v202_v16  ;;  %v335_v26 = vmax.f32 %v271_v17, 0.0  ;;  %v204_v28 = vmul.f32 %v913_v19, %v1178_v1 }
  0x3f   :  { %v336_v27 = vmax.f32 %v272_v18, 0.0  ;;  %v274_v29 = vadd.f32 %v1192_v7, %v203_v20  ;;  %v917_v31 = vunpack.c.h.bf16 %v1117_v12  ;;  %v205_v32 = vmul.f32 %v916_v25, %v1178_v1 }
  0x40   :  { %1144 = vst [vmem:[%s1505_s3 + $0xc0] sm:$0xff] %v1053_v22   ;;  %v337_v30 = vmax.f32 %v273_v24, 0.0  ;;  %v920_v33 = vunpack.c.l.bf16 %v1118_v21  ;;  %v1058_v35 = vpack.c.bf16 %v335_v26, %v334_v23  ;;  %v275_v36 = vadd.f32 %v1192_v7, %v204_v28 }
  0x41   :  { %v338_v37 = vmax.f32 %v274_v29, 0.0  ;;  %v921_v38 = vunpack.c.h.bf16 %v1118_v21  ;;  %v206_v41 = vmul.f32 %v917_v31, %v1178_v1  ;;  %v276_v42 = vadd.f32 %v1192_v7, %v205_v32 }
  0x42   :  { %v1063_v40 = vpack.c.bf16 %v337_v30, %v336_v27  ;;  %v207_v43 = vmul.f32 %v920_v33, %v1178_v1  ;;  %1145 = vst [vmem:[%s1505_s3 + $0xc8] sm:$0xff] %v1058_v35   ;;  %v339_v44 = vmax.f32 %v275_v36, 0.0  ;;  %v924_v46 = vunpack.c.l.bf16 %v1119_v34 }
  0x43   :  { %v208_v45 = vmul.f32 %v921_v38, %v1178_v1  ;;  %v925_v47 = vunpack.c.h.bf16 %v1119_v34  ;;  %v277_v48 = vadd.f32 %v1192_v7, %v206_v41  ;;  %v340_v49 = vmax.f32 %v276_v42, 0.0 }
  0x44   :  { %1146 = vst [vmem:[%s1505_s3 + $0xd0] sm:$0xff] %v1063_v40   ;;  %v278_v50 = vadd.f32 %v1192_v7, %v207_v43  ;;  %v928_v51 = vunpack.c.l.bf16 %v1120_v39  ;;  %v1068_v52 = vpack.c.bf16 %v339_v44, %v338_v37  ;;  %v209_v54 = vmul.f32 %v924_v46, %v1178_v1 }
  0x45   :  { %v279_v53 = vadd.f32 %v1192_v7, %v208_v45  ;;  %v210_v55 = vmul.f32 %v925_v47, %v1178_v1  ;;  %v341_v56 = vmax.f32 %v277_v48, 0.0  ;;  %v929_v58 = vunpack.c.h.bf16 %v1120_v39 }
  0x46   :  { %v342_v57 = vmax.f32 %v278_v50, 0.0  ;;  %v211_v59 = vmul.f32 %v928_v51, %v1178_v1  ;;  %1147 = vst [vmem:[%s1505_s3 + $0xd8] sm:$0xff] %v1068_v52   ;;  %v280_v61 = vadd.f32 %v1192_v7, %v209_v54 }
  0x47   :  { %v343_v60 = vmax.f32 %v279_v53, 0.0  ;;  %v281_v62 = vadd.f32 %v1192_v7, %v210_v55  ;;  %v1073_v63 = vpack.c.bf16 %v341_v56, %v340_v49  ;;  %v212_v0 = vmul.f32 %v929_v58, %v1178_v1 }
  0x48   :  { %v282_v2 = vadd.f32 %v1192_v7, %v211_v59  ;;  %v344_v4 = vmax.f32 %v280_v61, 0.0 }
  0x49   :  { %v1078_v3 = vpack.c.bf16 %v343_v60, %v342_v57  ;;  %v345_v5 = vmax.f32 %v281_v62, 0.0  ;;  %1148 = vst [vmem:[%s1505_s3 + $0xe0] sm:$0xff] %v1073_v63   ;;  %v283_v6 = vadd.f32 %v1192_v7, %v212_v0 }
  0x4a   :  { %v346_v8 = vmax.f32 %v282_v2, 0.0 }
  0x4b   :  { %1149 = vst [vmem:[%s1505_s3 + $0xe8] sm:$0xff] %v1078_v3   ;;  %v1083_v9 = vpack.c.bf16 %v345_v5, %v344_v4  ;;  %v347_v10 = vmax.f32 %v283_v6, 0.0 }
  0x4d   :  { %1150 = vst [vmem:[%s1505_s3 + $0xf0] sm:$0xff] %v1083_v9   ;;  %v1088_v1 = vpack.c.bf16 %v347_v10, %v346_v8 }
  0x4f   :  { %1151 = vst [vmem:[%s1505_s3 + $0xf8] sm:$0xff] %v1088_v1  }

// kernel: tile.68
= control target key start
LH: loop header
LB: loop body
LE: loop exit
PB: predicated region body
PF: predicated region fallthrough
CT: control target
= control target key end

     0   :  { %s22_s0 = inlined_call_operand.vmem [shape: f32[3], index: 0, kind: input, shape index: {}]   ;;  %s23_s1 = inlined_call_operand.vmem [shape: f32[4,3], index: 1, kind: output, shape index: {}]  }
   0x1   :  { %v4_v0 = vld [vmem:[%s22_s0] ss:$0 sm:$0xff] }
   0x2   :  { %5 = vst [vmem:[%s23_s1] sm:$0xf] %v4_v0 }

// kernel: tile.69
= control target key start
LH: loop header
LB: loop body
LE: loop exit
PB: predicated region body
PF: predicated region fallthrough
CT: control target
= control target key end

     0   :  { %vm7_vm0 = vcmask 23552   ;;  %s37_s8 = smov 3   ;;  %s38_s9 = smov 6   ;;  %vm13_vm1 = vcmask 97352   ;;  %vm19_vm2 = vcmask 72752   ;;  %vm25_vm3 = vcmask 48152   ;;  %s55_s0 = inlined_call_operand.vmem [shape: f32[4,3], index: 0, kind: input, shape index: {}]   ;;  %s56_s1 = inlined_call_operand.vmem [shape: f32[12], index: 1, kind: output, shape index: {}]  }
   0x1   :  { %v4_v0 = vld [vmem:[%s55_s0] sm:$0xf]  ;;  %s36_s0 = smov 9  }
   0x2   :  { %5 = vst [vmem:[#allocation1] sm:$0xf] %v4_v0 }
   0x9   :  { %v10_v1 = vld [vmem:[#allocation1 + $0x3] sm:$0x1]   ;;  %v22_v2 = vld [vmem:[#allocation1 + $0x1] sm:$0x1]   ;;  %v6_v3 = vld [vmem:[#allocation1] sm:$0x1]  }
   0xa   :  { %11 = vrot.lane.b32.xlu0 %v10_v1, %s36_s0  ;;  %23 = vrot.lane.b32.xlu1 %v22_v2, %s37_s8  ;;  %v16_v4 = vld [vmem:[#allocation1 + $0x2] sm:$0x1]   ;;  %8 = vst.msk [vmem:[#allocation0] sm:$0x1] %vm7_vm0, %v6_v3  }
   0xe   :  { %17 = vrot.lane.b32.xlu0 %v16_v4, %s38_s9 }
  0x7c   :  { %v12_v5 = vpop.permute.xlu0 %11   ;;  %v24_v6 = vpop.permute.xlu1 %23  }
  0x7d   :  { %14 = vst.msk [vmem:[#allocation0] sm:$0x1] %vm13_vm1, %v12_v5  }
  0x80   :  { %v18_v7 = vpop.permute.xlu0 %17  }
  0x81   :  { %20 = vst.msk [vmem:[#allocation0] sm:$0x1] %vm19_vm2, %v18_v7  }
  0x82   :  { %26 = vst.msk [vmem:[#allocation0] sm:$0x1] %vm25_vm3, %v24_v6  }
  0x89   :  { %v30_v8 = vld [vmem:[#allocation0] sm:$0x1] }
  0x8a   :  { %32 = vst [vmem:[%s56_s1] sm:$0x1] %v30_v8 }

// kernel: _lambda_.17
= control target key start
LH: loop header
LB: loop body
LE: loop exit
PB: predicated region body
PF: predicated region fallthrough
CT: control target
= control target key end

     0   :  { %s1421_s12 = smov 0   ;;  %s1658_s0 = inlined_call_operand.vmem [shape: bf16[2048,72], index: 0, kind: input, shape index: {}]   ;;  %s1659_s1 = inlined_call_operand.vmem [shape: bf16[72,128], index: 1, kind: input, shape index: {}]   ;;  %s1660_s2 = inlined_call_operand.vmem [shape: f32[1,128], index: 2, kind: input, shape index: {}]   ;;  %s1661_s3 = inlined_call_operand.vmem [shape: f32[2048,128], index: 3, kind: output, shape index: {}]  }
   0x1 LB: > { %s1016_s13 = sadd.s32 4294967295, %s1399_s12   ;;  %p1020_p0 = scmp.ge.s32.totalorder %s1399_s12, 1  ;;  %s1399_s12 = sphi %s1421_s12, %s13_s12  }
   0x2   : > { %p138_p1 = scmp.lt.s32.totalorder %s1399_s12, 5 }
   0x4   : > { %p139_p2 = pnand %p1020_p0, %p138_p1 }
   0x5   : > { %v1228_v0 = vld [vmem:[%s1659_s1] sm:$0xff] (!%p139_p2)   ;;  %v1229_v1 = vld [vmem:[%s1659_s1 + $0x8] sm:$0xff] (!%p139_p2)   ;;  %s1021_s18 = sshll.u32 (!%p139_p2), %s1016_s13, 6  ;;  %v1230_v2 = vld [vmem:[%s1659_s1 + $0x10] sm:$0xff] (!%p139_p2)   ;;  %vm442_vm0 = vcmask (!%p139_p2), 588800   ;;  %vm539_vm1 = vcmask (!%p139_p2), 1043456  }
   0x6   : > { %142 = sbr.rel (%p139_p2) target bundleno = 318 (0x13e), region = 32  ;;  %1134 = vmatprep.subr.bf16.mxu0 (!%p139_p2), %v1228_v0  ;;  %1208 = vmatprep.subr.bf16.mxu1 (!%p139_p2), %v1228_v0  ;;  %p163_p3 = scmp.lt.s32.totalorder (!%p139_p2), %s1021_s18, 255  ;;  %v1231_v3 = vld [vmem:[%s1659_s1 + $0x18] sm:$0xff] (!%p139_p2)   ;;  %v1232_v6 = vld [vmem:[%s1659_s1 + $0x20] ss:$0 sps:$4 sm:$0xff] (!%p139_p2)  }
   0x7   : > { %1135 = vmatpush3.bf16.msra.mxu0 (!%p139_p2), %v1228_v0  ;;  %1213 = vmatpush3.bf16.msra.mxu1 (!%p139_p2), %v1228_v0  ;;  %v541_v7 = vsel (!%p139_p2), %vm539_vm1, %v1232_v6, 0  ;;  %v1519_v38 = vld [vmem:[%s1660_s2] ss:$0 sm:$0xff] (!%p139_p2) }
   0x8   : > { %1136 = vmatprep.subr.bf16.mxu0 (!%p139_p2), %v1229_v1  ;;  %1209 = vmatprep.subr.bf16.mxu1 (!%p139_p2), %v1229_v1 }
   0xb   : > { %1137 = vmatpush3.bf16.msra.mxu0 (!%p139_p2), %v1229_v1  ;;  %1214 = vmatpush3.bf16.msra.mxu1 (!%p139_p2), %v1229_v1 }
   0xc   : > { %1138 = vmatprep.subr.bf16.mxu0 (!%p139_p2), %v1230_v2  ;;  %1210 = vmatprep.subr.bf16.mxu1 (!%p139_p2), %v1230_v2 }
   0xd   : > { %s1663_s18 = smov (!%p163_p3, %s1021_s18), 255 }
   0xe   : > { %s1022_s21 = sshll.u32 %s1663_s18, 2  ;;  %s1024_s4 = sshll.u32 %s1663_s18, 3 }
   0xf   : > { %s1447_s26 = scalar_lea.vmem %s1658_s0, %s1022_s21  ;;  %1139 = vmatpush3.bf16.msra.mxu0 %v1230_v2  ;;  %1215 = vmatpush3.bf16.msra.mxu1 %v1230_v2  ;;  %s1537_s7 = scalar_lea.vmem %s1661_s3, %s1024_s4 }
  0x10   : > { %v1233_v4 = vld [vmem:[%s1447_s26] sm:$0xff]   ;;  %1140 = vmatprep.subr.bf16.mxu0 %v1231_v3  ;;  %1211 = vmatprep.subr.bf16.mxu1 %v1231_v3  ;;  %v1235_v8 = vld [vmem:[%s1447_s26 + $0x8] sm:$0xff]   ;;  %v1237_v10 = vld [vmem:[%s1447_s26 + $0x10] sm:$0xff]  }
  0x11   : > { %v1234_v5 = vld [vmem:[%s1447_s26 + $0x80] sm:$0xff]   ;;  %1144 = vmatprep.mubr.msk.bf16.mxu0 %vm442_vm0, %v1233_v4  ;;  %v1236_v9 = vld [vmem:[%s1447_s26 + $0x88] sm:$0xff]   ;;  %v1238_v11 = vld [vmem:[%s1447_s26 + $0x90] sm:$0xff]  }
  0x12   : > { %1176 = vmatprep.mubr.msk.bf16.mxu1 %vm442_vm0, %v1234_v5  ;;  %v1239_v12 = vld [vmem:[%s1447_s26 + $0x18] sm:$0xff]   ;;  %v1241_v14 = vld [vmem:[%s1447_s26 + $0x20] sm:$0xff]   ;;  %v1243_v16 = vld [vmem:[%s1447_s26 + $0x28] sm:$0xff]  }
  0x13   : > { %1141 = vmatpush3.bf16.msra.mxu0 %v1231_v3  ;;  %1216 = vmatpush3.bf16.msra.mxu1 %v1231_v3  ;;  %v1240_v13 = vld [vmem:[%s1447_s26 + $0x98] sm:$0xff]   ;;  %v1242_v15 = vld [vmem:[%s1447_s26 + $0xa0] sm:$0xff]   ;;  %v1244_v17 = vld [vmem:[%s1447_s26 + $0xa8] sm:$0xff]  }
  0x14   : > { %1218 = vmatprep.subr.msk.bf16.mxu0 %vm539_vm1, %v1232_v6  ;;  %1219 = vmatprep.subr.msk.bf16.mxu1 %vm539_vm1, %v1232_v6  ;;  %v1245_v18 = vld [vmem:[%s1447_s26 + $0x30] sm:$0xff]   ;;  %v1247_v20 = vld [vmem:[%s1447_s26 + $0x38] sm:$0xff]   ;;  %v1249_v22 = vld [vmem:[%s1447_s26 + $0x40] sm:$0xff]  }
  0x15   : > { %v1246_v19 = vld [vmem:[%s1447_s26 + $0xb0] sm:$0xff]   ;;  %v1248_v21 = vld [vmem:[%s1447_s26 + $0xb8] sm:$0xff]   ;;  %v1250_v23 = vld [vmem:[%s1447_s26 + $0xc0] sm:$0xff]  }
  0x16   : > { %v1251_v24 = vld [vmem:[%s1447_s26 + $0x48] sm:$0xff]   ;;  %v1253_v26 = vld [vmem:[%s1447_s26 + $0x50] sm:$0xff]   ;;  %v1255_v28 = vld [vmem:[%s1447_s26 + $0x58] sm:$0xff]  }
  0x17   : > { %1143 = vmatpush3.bf16.msra.mxu0 %v541_v7  ;;  %1217 = vmatpush3.bf16.msra.mxu1 %v541_v7  ;;  %v1252_v25 = vld [vmem:[%s1447_s26 + $0xc8] sm:$0xff]   ;;  %v1254_v27 = vld [vmem:[%s1447_s26 + $0xd0] sm:$0xff]   ;;  %v1256_v29 = vld [vmem:[%s1447_s26 + $0xd8] sm:$0xff]  }
  0x18   : > { %v1257_v30 = vld [vmem:[%s1447_s26 + $0x60] sm:$0xff]   ;;  %v1259_v32 = vld [vmem:[%s1447_s26 + $0x68] sm:$0xff]   ;;  %v1261_v34 = vld [vmem:[%s1447_s26 + $0x70] sm:$0xff]  }
  0x19   : > { %v1258_v31 = vld [vmem:[%s1447_s26 + $0xe0] sm:$0xff]   ;;  %v1260_v33 = vld [vmem:[%s1447_s26 + $0xe8] sm:$0xff]   ;;  %v1262_v35 = vld [vmem:[%s1447_s26 + $0xf0] sm:$0xff]  }
  0x1a   : > { %1145 = vmatmul.mubr.msk.bf16.vlgmr.msra.gmra.mrb[0].mxu0 %vm442_vm0, %v1235_v8  ;;  %1177 = vmatmul.mubr.msk.bf16.vlgmr.msra.gmra.mrb[0].mxu1 %vm442_vm0, %v1236_v9  ;;  %v1263_v36 = vld [vmem:[%s1447_s26 + $0x78] sm:$0xff]  }
  0x1b   : > { %1148 = vmatprep.mubr.msk.bf16.mxu0 %vm442_vm0, %v1237_v10  ;;  %1180 = vmatprep.mubr.msk.bf16.mxu1 %vm442_vm0, %v1238_v11  ;;  %v1264_v37 = vld [vmem:[%s1447_s26 + $0xf8] sm:$0xff]  }
  0x22   : > { %1149 = vmatmul.mubr.msk.bf16.gmra.mrb[4].mxu0 %vm442_vm0, %v1239_v12  ;;  %1181 = vmatmul.mubr.msk.bf16.gmra.mrb[4].mxu1 %vm442_vm0, %v1240_v13 }
  0x23   : > { %1152 = vmatprep.mubr.msk.bf16.mxu0 %vm442_vm0, %v1241_v14  ;;  %1184 = vmatprep.mubr.msk.bf16.mxu1 %vm442_vm0, %v1242_v15 }
  0x2a   : > { %1153 = vmatmul.mubr.msk.bf16.gmra.mrb[8].mxu0 %vm442_vm0, %v1243_v16  ;;  %1185 = vmatmul.mubr.msk.bf16.gmra.mrb[8].mxu1 %vm442_vm0, %v1244_v17 }
  0x2b   : > { %1156 = vmatprep.mubr.msk.bf16.mxu0 %vm442_vm0, %v1245_v18  ;;  %1188 = vmatprep.mubr.msk.bf16.mxu1 %vm442_vm0, %v1246_v19 }
  0x32   : > { %1157 = vmatmul.mubr.msk.bf16.gmra.mrb[12].mxu0 %vm442_vm0, %v1247_v20  ;;  %1189 = vmatmul.mubr.msk.bf16.gmra.mrb[12].mxu1 %vm442_vm0, %v1248_v21 }
  0x33   : > { %1160 = vmatprep.mubr.msk.bf16.mxu0 %vm442_vm0, %v1249_v22  ;;  %1192 = vmatprep.mubr.msk.bf16.mxu1 %vm442_vm0, %v1250_v23 }
  0x3a   : > { %1161 = vmatmul.mubr.msk.bf16.gmra.mrb[16].mxu0 %vm442_vm0, %v1251_v24  ;;  %1193 = vmatmul.mubr.msk.bf16.gmra.mrb[16].mxu1 %vm442_vm0, %v1252_v25 }
  0x3b   : > { %1164 = vmatprep.mubr.msk.bf16.mxu0 %vm442_vm0, %v1253_v26  ;;  %1196 = vmatprep.mubr.msk.bf16.mxu1 %vm442_vm0, %v1254_v27 }
  0x42   : > { %1165 = vmatmul.mubr.msk.bf16.gmra.mrb[20].mxu0 %vm442_vm0, %v1255_v28  ;;  %1197 = vmatmul.mubr.msk.bf16.gmra.mrb[20].mxu1 %vm442_vm0, %v1256_v29 }
  0x43   : > { %1168 = vmatprep.mubr.msk.bf16.mxu0 %vm442_vm0, %v1257_v30  ;;  %1200 = vmatprep.mubr.msk.bf16.mxu1 %vm442_vm0, %v1258_v31 }
  0x4a   : > { %1169 = vmatmul.mubr.msk.bf16.gmra.mrb[24].mxu0 %vm442_vm0, %v1259_v32  ;;  %1201 = vmatmul.mubr.msk.bf16.gmra.mrb[24].mxu1 %vm442_vm0, %v1260_v33 }
  0x4b   : > { %1172 = vmatprep.mubr.msk.bf16.mxu0 %vm442_vm0, %v1261_v34  ;;  %1204 = vmatprep.mubr.msk.bf16.mxu1 %vm442_vm0, %v1262_v35 }
  0x52   : > { %1173 = vmatmul.mubr.msk.bf16.gmra.mrb[28].mxu0 %vm442_vm0, %v1263_v36  ;;  %1205 = vmatmul.mubr.msk.bf16.gmra.mrb[28].mxu1 %vm442_vm0, %v1264_v37 }
  0xed   : > { %v1146_v39 = vpop.f32.mrb[0].mxu0  ;;  %v1178_v40 = vpop.f32.mrb[0].mxu1 }
  0xee   : > { %v586_v41 = vadd.f32 %v1146_v39, %v1519_v38  ;;  %v714_v42 = vadd.f32 %v1178_v40, %v1519_v38  ;;  %v577_v43 = vpop.f32.mrb[1].mxu0  ;;  %v705_v44 = vpop.f32.mrb[1].mxu1 }
  0xef   : > { %v578_v45 = vadd.f32 %v1519_v38, %v577_v43  ;;  %v706_v46 = vadd.f32 %v1519_v38, %v705_v44  ;;  %v1147_v47 = vpop.f32.mrb[2].mxu0  ;;  %v1179_v48 = vpop.f32.mrb[2].mxu1 }
  0xf0   : > { %1265 = vtanh.f32 %v586_v41  ;;  %v589_v49 = vadd.f32 %v1147_v47, %v1519_v38  ;;  %v580_v50 = vpop.f32.mrb[3].mxu0  ;;  %v708_v51 = vpop.f32.mrb[3].mxu1  ;;  %v717_v52 = vadd.f32 %v1179_v48, %v1519_v38 }
  0xf1   : > { %1267 = vtanh.f32 %v714_v42  ;;  %v581_v53 = vadd.f32 %v1519_v38, %v580_v50  ;;  %v709_v54 = vadd.f32 %v1519_v38, %v708_v51 }
  0xf2   : > { %1269 = vtanh.f32 %v578_v45 }
  0xf3   : > { %1271 = vtanh.f32 %v706_v46 }
  0xf4   : > { %1273 = vtanh.f32 %v589_v49 }
  0xf5   : > { %1275 = vtanh.f32 %v717_v52  ;;  %v1150_v55 = vpop.f32.mrb[4].mxu0  ;;  %v1182_v56 = vpop.f32.mrb[4].mxu1 }
  0xf6   : > { %1277 = vtanh.f32 %v581_v53  ;;  %v602_v57 = vadd.f32 %v1150_v55, %v1519_v38  ;;  %v730_v58 = vadd.f32 %v1182_v56, %v1519_v38  ;;  %v593_v59 = vpop.f32.mrb[5].mxu0  ;;  %v721_v60 = vpop.f32.mrb[5].mxu1 }
  0xf7   : > { %1279 = vtanh.f32 %v709_v54  ;;  %v594_v61 = vadd.f32 %v1519_v38, %v593_v59  ;;  %v722_v62 = vadd.f32 %v1519_v38, %v721_v60  ;;  %v1151_v63 = vpop.f32.mrb[6].mxu0  ;;  %v1183_v0 = vpop.f32.mrb[6].mxu1 }
  0xf8   : > { %1281 = vtanh.f32 %v602_v57  ;;  %v605_v1 = vadd.f32 %v1151_v63, %v1519_v38  ;;  %v596_v2 = vpop.f32.mrb[7].mxu0  ;;  %v724_v3 = vpop.f32.mrb[7].mxu1  ;;  %v733_v4 = vadd.f32 %v1183_v0, %v1519_v38 }
  0xf9   : > { %1283 = vtanh.f32 %v730_v58  ;;  %v597_v6 = vadd.f32 %v1519_v38, %v596_v2  ;;  %v725_v8 = vadd.f32 %v1519_v38, %v724_v3 }
  0xfa   : > { %v1266_v5 = vpop.eup %1265  ;;  %1285 = vtanh.f32 %v594_v61 }
  0xfb   : > { %v1268_v7 = vpop.eup %1267  ;;  %898 = vst [vmem:[%s1537_s7 + $0x10] sm:$0xff] %v1266_v5  ;;  %1287 = vtanh.f32 %v722_v62 }
  0xfc   : > { %v1270_v9 = vpop.eup %1269  ;;  %930 = vst [vmem:[%s1537_s7 + $0x110] sm:$0xff] %v1268_v7  ;;  %1289 = vtanh.f32 %v605_v1 }
  0xfd   : > { %v1272_v10 = vpop.eup %1271  ;;  %896 = vst [vmem:[%s1537_s7] sm:$0xff] %v1270_v9  ;;  %1291 = vtanh.f32 %v733_v4  ;;  %v1154_v11 = vpop.f32.mrb[8].mxu0 }
  0xfe   : > { %v1186_v12 = vpop.f32.mrb[8].mxu1  ;;  %v1274_v13 = vpop.eup %1273  ;;  %928 = vst [vmem:[%s1537_s7 + $0x100] sm:$0xff] %v1272_v10  ;;  %1293 = vtanh.f32 %v597_v6  ;;  %v618_v14 = vadd.f32 %v1154_v11, %v1519_v38 }
  0xff   : > { %v746_v15 = vadd.f32 %v1186_v12, %v1519_v38  ;;  %v609_v16 = vpop.f32.mrb[9].mxu0  ;;  %v737_v17 = vpop.f32.mrb[9].mxu1  ;;  %899 = vst [vmem:[%s1537_s7 + $0x18] sm:$0xff] %v1274_v13  ;;  %1295 = vtanh.f32 %v725_v8 }
 0x100   : > { %v1276_v18 = vpop.eup %1275  ;;  %v610_v19 = vadd.f32 %v1519_v38, %v609_v16  ;;  %v738_v20 = vadd.f32 %v1519_v38, %v737_v17  ;;  %v1155_v21 = vpop.f32.mrb[10].mxu0  ;;  %1297 = vtanh.f32 %v618_v14 }
 0x101   : > { %v1187_v22 = vpop.f32.mrb[10].mxu1  ;;  %v1278_v23 = vpop.eup %1277  ;;  %931 = vst [vmem:[%s1537_s7 + $0x118] sm:$0xff] %v1276_v18  ;;  %v621_v24 = vadd.f32 %v1155_v21, %v1519_v38  ;;  %1299 = vtanh.f32 %v746_v15 }
 0x102   : > { %v612_v25 = vpop.f32.mrb[11].mxu0  ;;  %v740_v26 = vpop.f32.mrb[11].mxu1  ;;  %897 = vst [vmem:[%s1537_s7 + $0x8] sm:$0xff] %v1278_v23  ;;  %v749_v28 = vadd.f32 %v1187_v22, %v1519_v38  ;;  %1301 = vtanh.f32 %v610_v19 }
 0x103   : > { %v1280_v27 = vpop.eup %1279  ;;  %v613_v30 = vadd.f32 %v1519_v38, %v612_v25  ;;  %1303 = vtanh.f32 %v738_v20  ;;  %v741_v32 = vadd.f32 %v1519_v38, %v740_v26 }
 0x104   : > { %v1282_v29 = vpop.eup %1281  ;;  %929 = vst [vmem:[%s1537_s7 + $0x108] sm:$0xff] %v1280_v27  ;;  %1305 = vtanh.f32 %v621_v24 }
 0x105   : > { %v1284_v31 = vpop.eup %1283  ;;  %902 = vst [vmem:[%s1537_s7 + $0x30] sm:$0xff] %v1282_v29  ;;  %1307 = vtanh.f32 %v749_v28  ;;  %v1158_v35 = vpop.f32.mrb[12].mxu0 }
 0x106   : > { %v1286_v33 = vpop.eup %1285  ;;  %934 = vst [vmem:[%s1537_s7 + $0x130] sm:$0xff] %v1284_v31  ;;  %v1190_v36 = vpop.f32.mrb[12].mxu1  ;;  %1309 = vtanh.f32 %v613_v30  ;;  %v634_v39 = vadd.f32 %v1158_v35, %v1519_v38 }
 0x107   : > { %v1288_v34 = vpop.eup %1287  ;;  %900 = vst [vmem:[%s1537_s7 + $0x20] sm:$0xff] %v1286_v33  ;;  %v762_v40 = vadd.f32 %v1190_v36, %v1519_v38  ;;  %v625_v41 = vpop.f32.mrb[13].mxu0  ;;  %1311 = vtanh.f32 %v741_v32 }
 0x108   : > { %v1290_v37 = vpop.eup %1289  ;;  %932 = vst [vmem:[%s1537_s7 + $0x120] sm:$0xff] %v1288_v34  ;;  %v753_v42 = vpop.f32.mrb[13].mxu1  ;;  %v626_v44 = vadd.f32 %v1519_v38, %v625_v41  ;;  %1313 = vtanh.f32 %v634_v39 }
 0x109   : > { %v1292_v43 = vpop.eup %1291  ;;  %903 = vst [vmem:[%s1537_s7 + $0x38] sm:$0xff] %v1290_v37  ;;  %v754_v45 = vadd.f32 %v1519_v38, %v753_v42  ;;  %v1159_v46 = vpop.f32.mrb[14].mxu0  ;;  %1315 = vtanh.f32 %v762_v40 }
 0x10a   : > { %v1191_v47 = vpop.f32.mrb[14].mxu1  ;;  %v1294_v48 = vpop.eup %1293  ;;  %935 = vst [vmem:[%s1537_s7 + $0x138] sm:$0xff] %v1292_v43  ;;  %v637_v49 = vadd.f32 %v1159_v46, %v1519_v38  ;;  %1317 = vtanh.f32 %v626_v44 }
 0x10b   : > { %v628_v50 = vpop.f32.mrb[15].mxu0  ;;  %v756_v51 = vpop.f32.mrb[15].mxu1  ;;  %901 = vst [vmem:[%s1537_s7 + $0x28] sm:$0xff] %v1294_v48  ;;  %v765_v53 = vadd.f32 %v1191_v47, %v1519_v38  ;;  %1319 = vtanh.f32 %v754_v45 }
 0x10c   : > { %v1296_v52 = vpop.eup %1295  ;;  %v629_v55 = vadd.f32 %v1519_v38, %v628_v50  ;;  %v757_v57 = vadd.f32 %v1519_v38, %v756_v51  ;;  %1321 = vtanh.f32 %v637_v49 }
 0x10d   : > { %v1298_v54 = vpop.eup %1297  ;;  %933 = vst [vmem:[%s1537_s7 + $0x128] sm:$0xff] %v1296_v52  ;;  %1323 = vtanh.f32 %v765_v53  ;;  %v1162_v60 = vpop.f32.mrb[16].mxu0 }
 0x10e   : > { %v1300_v56 = vpop.eup %1299  ;;  %906 = vst [vmem:[%s1537_s7 + $0x50] sm:$0xff] %v1298_v54  ;;  %v1194_v61 = vpop.f32.mrb[16].mxu1  ;;  %1325 = vtanh.f32 %v629_v55  ;;  %v650_v63 = vadd.f32 %v1162_v60, %v1519_v38 }
 0x10f   : > { %v1302_v58 = vpop.eup %1301  ;;  %938 = vst [vmem:[%s1537_s7 + $0x150] sm:$0xff] %v1300_v56  ;;  %v778_v0 = vadd.f32 %v1194_v61, %v1519_v38  ;;  %v641_v1 = vpop.f32.mrb[17].mxu0  ;;  %1327 = vtanh.f32 %v757_v57 }
 0x110   : > { %v1304_v59 = vpop.eup %1303  ;;  %904 = vst [vmem:[%s1537_s7 + $0x40] sm:$0xff] %v1302_v58  ;;  %v769_v2 = vpop.f32.mrb[17].mxu1  ;;  %v642_v4 = vadd.f32 %v1519_v38, %v641_v1  ;;  %1329 = vtanh.f32 %v650_v63 }
 0x111   : > { %v1306_v62 = vpop.eup %1305  ;;  %936 = vst [vmem:[%s1537_s7 + $0x140] sm:$0xff] %v1304_v59  ;;  %v770_v5 = vadd.f32 %v1519_v38, %v769_v2  ;;  %v1163_v6 = vpop.f32.mrb[18].mxu0  ;;  %1331 = vtanh.f32 %v778_v0 }
 0x112   : > { %v1308_v3 = vpop.eup %1307  ;;  %907 = vst [vmem:[%s1537_s7 + $0x58] sm:$0xff] %v1306_v62  ;;  %v1195_v7 = vpop.f32.mrb[18].mxu1  ;;  %v653_v9 = vadd.f32 %v1163_v6, %v1519_v38  ;;  %1333 = vtanh.f32 %v642_v4 }
 0x113   : > { %v1310_v8 = vpop.eup %1309  ;;  %939 = vst [vmem:[%s1537_s7 + $0x158] sm:$0xff] %v1308_v3  ;;  %v644_v10 = vpop.f32.mrb[19].mxu0  ;;  %v781_v13 = vadd.f32 %v1195_v7, %v1519_v38  ;;  %1335 = vtanh.f32 %v770_v5 }
 0x114   : > { %v772_v11 = vpop.f32.mrb[19].mxu1  ;;  %v1312_v12 = vpop.eup %1311  ;;  %905 = vst [vmem:[%s1537_s7 + $0x48] sm:$0xff] %v1310_v8  ;;  %v645_v15 = vadd.f32 %v1519_v38, %v644_v10  ;;  %1337 = vtanh.f32 %v653_v9 }
 0x115   : > { %v1314_v14 = vpop.eup %1313  ;;  %937 = vst [vmem:[%s1537_s7 + $0x148] sm:$0xff] %v1312_v12  ;;  %v773_v17 = vadd.f32 %v1519_v38, %v772_v11  ;;  %1339 = vtanh.f32 %v781_v13  ;;  %v1166_v20 = vpop.f32.mrb[20].mxu0 }
 0x116   : > { %v1316_v16 = vpop.eup %1315  ;;  %910 = vst [vmem:[%s1537_s7 + $0x70] sm:$0xff] %v1314_v14  ;;  %v1198_v21 = vpop.f32.mrb[20].mxu1  ;;  %1341 = vtanh.f32 %v645_v15  ;;  %v666_v23 = vadd.f32 %v1166_v20, %v1519_v38 }
 0x117   : > { %v1318_v18 = vpop.eup %1317  ;;  %942 = vst [vmem:[%s1537_s7 + $0x170] sm:$0xff] %v1316_v16  ;;  %v794_v24 = vadd.f32 %v1198_v21, %v1519_v38  ;;  %v657_v25 = vpop.f32.mrb[21].mxu0  ;;  %1343 = vtanh.f32 %v773_v17 }
 0x118   : > { %v1320_v19 = vpop.eup %1319  ;;  %908 = vst [vmem:[%s1537_s7 + $0x60] sm:$0xff] %v1318_v18  ;;  %v785_v26 = vpop.f32.mrb[21].mxu1  ;;  %v658_v28 = vadd.f32 %v1519_v38, %v657_v25  ;;  %1345 = vtanh.f32 %v666_v23 }
 0x119   : > { %v1322_v22 = vpop.eup %1321  ;;  %940 = vst [vmem:[%s1537_s7 + $0x160] sm:$0xff] %v1320_v19  ;;  %v786_v29 = vadd.f32 %v1519_v38, %v785_v26  ;;  %v1167_v30 = vpop.f32.mrb[22].mxu0  ;;  %1347 = vtanh.f32 %v794_v24 }
 0x11a   : > { %v1324_v27 = vpop.eup %1323  ;;  %911 = vst [vmem:[%s1537_s7 + $0x78] sm:$0xff] %v1322_v22  ;;  %v1199_v31 = vpop.f32.mrb[22].mxu1  ;;  %v669_v33 = vadd.f32 %v1167_v30, %v1519_v38  ;;  %1349 = vtanh.f32 %v658_v28 }
 0x11b   : > { %v1326_v32 = vpop.eup %1325  ;;  %943 = vst [vmem:[%s1537_s7 + $0x178] sm:$0xff] %v1324_v27  ;;  %v660_v34 = vpop.f32.mrb[23].mxu0  ;;  %v797_v37 = vadd.f32 %v1199_v31, %v1519_v38  ;;  %1351 = vtanh.f32 %v786_v29 }
 0x11c   : > { %v788_v35 = vpop.f32.mrb[23].mxu1  ;;  %v1328_v36 = vpop.eup %1327  ;;  %909 = vst [vmem:[%s1537_s7 + $0x68] sm:$0xff] %v1326_v32  ;;  %v661_v40 = vadd.f32 %v1519_v38, %v660_v34  ;;  %1353 = vtanh.f32 %v669_v33 }
 0x11d   : > { %v1330_v39 = vpop.eup %1329  ;;  %941 = vst [vmem:[%s1537_s7 + $0x168] sm:$0xff] %v1328_v36  ;;  %v789_v42 = vadd.f32 %v1519_v38, %v788_v35  ;;  %1355 = vtanh.f32 %v797_v37  ;;  %v1170_v45 = vpop.f32.mrb[24].mxu0 }
 0x11e   : > { %v1332_v41 = vpop.eup %1331  ;;  %914 = vst [vmem:[%s1537_s7 + $0x90] sm:$0xff] %v1330_v39  ;;  %v1202_v46 = vpop.f32.mrb[24].mxu1  ;;  %1357 = vtanh.f32 %v661_v40  ;;  %v682_v48 = vadd.f32 %v1170_v45, %v1519_v38 }
 0x11f   : > { %v1334_v43 = vpop.eup %1333  ;;  %946 = vst [vmem:[%s1537_s7 + $0x190] sm:$0xff] %v1332_v41  ;;  %v810_v49 = vadd.f32 %v1202_v46, %v1519_v38  ;;  %v673_v50 = vpop.f32.mrb[25].mxu0  ;;  %1359 = vtanh.f32 %v789_v42 }
 0x120   : > { %v1336_v44 = vpop.eup %1335  ;;  %912 = vst [vmem:[%s1537_s7 + $0x80] sm:$0xff] %v1334_v43  ;;  %v801_v51 = vpop.f32.mrb[25].mxu1  ;;  %v674_v53 = vadd.f32 %v1519_v38, %v673_v50  ;;  %1361 = vtanh.f32 %v682_v48 }
 0x121   : > { %v1338_v47 = vpop.eup %1337  ;;  %944 = vst [vmem:[%s1537_s7 + $0x180] sm:$0xff] %v1336_v44  ;;  %v802_v54 = vadd.f32 %v1519_v38, %v801_v51  ;;  %v1171_v55 = vpop.f32.mrb[26].mxu0  ;;  %1363 = vtanh.f32 %v810_v49 }
 0x122   : > { %v1340_v52 = vpop.eup %1339  ;;  %915 = vst [vmem:[%s1537_s7 + $0x98] sm:$0xff] %v1338_v47  ;;  %v1203_v56 = vpop.f32.mrb[26].mxu1  ;;  %v685_v58 = vadd.f32 %v1171_v55, %v1519_v38  ;;  %1365 = vtanh.f32 %v674_v53 }
 0x123   : > { %v1342_v57 = vpop.eup %1341  ;;  %947 = vst [vmem:[%s1537_s7 + $0x198] sm:$0xff] %v1340_v52  ;;  %v676_v59 = vpop.f32.mrb[27].mxu0  ;;  %v813_v62 = vadd.f32 %v1203_v56, %v1519_v38  ;;  %1367 = vtanh.f32 %v802_v54 }
 0x124   : > { %v804_v60 = vpop.f32.mrb[27].mxu1  ;;  %v1344_v61 = vpop.eup %1343  ;;  %913 = vst [vmem:[%s1537_s7 + $0x88] sm:$0xff] %v1342_v57  ;;  %v677_v0 = vadd.f32 %v1519_v38, %v676_v59  ;;  %1369 = vtanh.f32 %v685_v58 }
 0x125   : > { %v1346_v63 = vpop.eup %1345  ;;  %945 = vst [vmem:[%s1537_s7 + $0x188] sm:$0xff] %v1344_v61  ;;  %v805_v2 = vadd.f32 %v1519_v38, %v804_v60  ;;  %1371 = vtanh.f32 %v813_v62  ;;  %v1174_v5 = vpop.f32.mrb[28].mxu0 }
 0x126   : > { %v1348_v1 = vpop.eup %1347  ;;  %918 = vst [vmem:[%s1537_s7 + $0xb0] sm:$0xff] %v1346_v63  ;;  %v1206_v6 = vpop.f32.mrb[28].mxu1  ;;  %1373 = vtanh.f32 %v677_v0  ;;  %v698_v8 = vadd.f32 %v1174_v5, %v1519_v38 }
 0x127   : > { %v1350_v3 = vpop.eup %1349  ;;  %950 = vst [vmem:[%s1537_s7 + $0x1b0] sm:$0xff] %v1348_v1  ;;  %v826_v9 = vadd.f32 %v1206_v6, %v1519_v38  ;;  %v689_v10 = vpop.f32.mrb[29].mxu0  ;;  %1375 = vtanh.f32 %v805_v2 }
 0x128   : > { %v1352_v4 = vpop.eup %1351  ;;  %916 = vst [vmem:[%s1537_s7 + $0xa0] sm:$0xff] %v1350_v3  ;;  %v817_v11 = vpop.f32.mrb[29].mxu1  ;;  %v690_v13 = vadd.f32 %v1519_v38, %v689_v10  ;;  %1377 = vtanh.f32 %v698_v8 }
 0x129   : > { %v1354_v7 = vpop.eup %1353  ;;  %948 = vst [vmem:[%s1537_s7 + $0x1a0] sm:$0xff] %v1352_v4  ;;  %v818_v14 = vadd.f32 %v1519_v38, %v817_v11  ;;  %v1175_v15 = vpop.f32.mrb[30].mxu0  ;;  %1379 = vtanh.f32 %v826_v9 }
 0x12a   : > { %v1356_v12 = vpop.eup %1355  ;;  %919 = vst [vmem:[%s1537_s7 + $0xb8] sm:$0xff] %v1354_v7  ;;  %v1207_v16 = vpop.f32.mrb[30].mxu1  ;;  %v701_v18 = vadd.f32 %v1175_v15, %v1519_v38  ;;  %1381 = vtanh.f32 %v690_v13 }
 0x12b   : > { %v1358_v17 = vpop.eup %1357  ;;  %951 = vst [vmem:[%s1537_s7 + $0x1b8] sm:$0xff] %v1356_v12  ;;  %v692_v19 = vpop.f32.mrb[31].mxu0  ;;  %v829_v22 = vadd.f32 %v1207_v16, %v1519_v38  ;;  %1383 = vtanh.f32 %v818_v14 }
 0x12c   : > { %v820_v20 = vpop.f32.mrb[31].mxu1  ;;  %v1360_v21 = vpop.eup %1359  ;;  %917 = vst [vmem:[%s1537_s7 + $0xa8] sm:$0xff] %v1358_v17  ;;  %v693_v24 = vadd.f32 %v1519_v38, %v692_v19  ;;  %1385 = vtanh.f32 %v701_v18 }
 0x12d   : > { %v1362_v23 = vpop.eup %1361  ;;  %949 = vst [vmem:[%s1537_s7 + $0x1a8] sm:$0xff] %v1360_v21  ;;  %v821_v26 = vadd.f32 %v1519_v38, %v820_v20  ;;  %1387 = vtanh.f32 %v829_v22 }
 0x12e   : > { %v1364_v25 = vpop.eup %1363  ;;  %922 = vst [vmem:[%s1537_s7 + $0xd0] sm:$0xff] %v1362_v23  ;;  %1389 = vtanh.f32 %v693_v24 }
 0x12f   : > { %v1366_v27 = vpop.eup %1365  ;;  %954 = vst [vmem:[%s1537_s7 + $0x1d0] sm:$0xff] %v1364_v25  ;;  %1391 = vtanh.f32 %v821_v26 }
 0x130   : > { %v1368_v28 = vpop.eup %1367  ;;  %920 = vst [vmem:[%s1537_s7 + $0xc0] sm:$0xff] %v1366_v27 }
 0x131   : > { %v1370_v29 = vpop.eup %1369  ;;  %952 = vst [vmem:[%s1537_s7 + $0x1c0] sm:$0xff] %v1368_v28 }
 0x132   : > { %v1372_v30 = vpop.eup %1371  ;;  %923 = vst [vmem:[%s1537_s7 + $0xd8] sm:$0xff] %v1370_v29 }
 0x133   : > { %v1374_v38 = vpop.eup %1373  ;;  %955 = vst [vmem:[%s1537_s7 + $0x1d8] sm:$0xff] %v1372_v30 }
 0x134   : > { %v1376_v31 = vpop.eup %1375  ;;  %921 = vst [vmem:[%s1537_s7 + $0xc8] sm:$0xff] %v1374_v38 }
 0x135   : > { %v1378_v32 = vpop.eup %1377  ;;  %953 = vst [vmem:[%s1537_s7 + $0x1c8] sm:$0xff] %v1376_v31 }
 0x136   : > { %v1380_v33 = vpop.eup %1379  ;;  %926 = vst [vmem:[%s1537_s7 + $0xf0] sm:$0xff] %v1378_v32 }
 0x137   : > { %v1382_v34 = vpop.eup %1381  ;;  %958 = vst [vmem:[%s1537_s7 + $0x1f0] sm:$0xff] %v1380_v33 }
 0x138   : > { %v1384_v35 = vpop.eup %1383  ;;  %924 = vst [vmem:[%s1537_s7 + $0xe0] sm:$0xff] %v1382_v34 }
 0x139   : > { %v1386_v36 = vpop.eup %1385  ;;  %956 = vst [vmem:[%s1537_s7 + $0x1e0] sm:$0xff] %v1384_v35 }
 0x13a   : > { %v1388_v37 = vpop.eup %1387  ;;  %927 = vst [vmem:[%s1537_s7 + $0xf8] sm:$0xff] %v1386_v36 }
 0x13b   : > { %v1390_v39 = vpop.eup %1389  ;;  %959 = vst [vmem:[%s1537_s7 + $0x1f8] sm:$0xff] %v1388_v37 }
 0x13c   : > { %v1392_v40 = vpop.eup %1391  ;;  %925 = vst [vmem:[%s1537_s7 + $0xe8] sm:$0xff] %v1390_v39 }
 0x13d   : > { %957 = vst [vmem:[%s1537_s7 + $0x1e8] sm:$0xff] %v1392_v40 }
 0x13e PF: > { %s13_s12 = sadd.s32 1, %s1399_s12  }
 0x13f   : > { %p10_p4 = scmp.ge.s32.totalorder %s13_s12, 6  }
 0x141   :  { %12 = sbr.rel (!%p10_p4) target bundleno = 1 (0x1), region = 62 }

</bundles_post_ra>
